<compile_context>
chip_gen: v7x
topology: tpu7x:2x2x1
jax: 0.10.0
libtpu: 0.0.40
codegen_flags: <defaults>
</compile_context>

<pallas_src>
import functools

import jax
import jax.numpy as jnp
import numpy as np
from jax import lax
from jax.experimental import pallas as pl
from jax.experimental.pallas import tpu as pltpu


# ---------------------------------------------------------------------------
# generation-aware knobs
# ---------------------------------------------------------------------------
def _vmem_budget():
    """(M budget bytes, vmem_limit cap bytes): tighter on v7x (64 MiB/TC)."""
    cap = 64 << 20
    try:
        info = pltpu.get_tpu_info()
        cap = int(getattr(info, "vmem_capacity_bytes", cap))
    except Exception:
        pass
    if cap >= (100 << 20):              # v5e / v6e: 128 MiB per TensorCore
        return 16 << 20, 96 << 20
    return 6 << 20, 48 << 20            # v7x: 64 MiB per TensorCore


def _m_build_dtype():
    """Build M directly in bf16 on chips with a bf16 VPU (v6e/v7x); f32 on v5e
    and older (bf16 elementwise there would be emulated via converts).  The
    four corner weights never collide on the same element, so bf16 accumulation
    loses nothing vs f32-then-cast."""
    try:
        kind = jax.devices()[0].device_kind.lower()
    except Exception:
        return jnp.float32
    if ("v6" in kind) or ("v7" in kind):
        return jnp.bfloat16
    return jnp.float32


def _choose_tiles(hw, r2, m_budget):
    """Pick (tile_p, k_tile): output-pixel tile (lanes = r2*tile_p) and
    source-pixel tile (rows of M / lanes of the feature block)."""
    if hw * (r2 * hw) * 4 <= m_budget:
        return hw, hw                   # small map: one step per (b, g)
    tile_p = 128                        # cols = r2*128 is lane-dense (mult of 128)
    cols = r2 * tile_p
    k_tile = max(128, (m_budget // (cols * 4)) // 128 * 128)
    k_tile = min(k_tile, ((hw + 127) // 128) * 128)
    return tile_p, k_tile


# ---------------------------------------------------------------------------
# kernel
# ---------------------------------------------------------------------------
def _dysample_kernel(x_ref, idx_ref, w_ref, o_ref, acc_ref, *, W, k_tile, m_dtype):
    """One grid step = (batch b, group g, output-pixel tile t, source tile k)."""
    k = pl.program_id(3)

    @pl.when(k == 0)
    def _():
        acc_ref[...] = jnp.zeros_like(acc_ref)

    xg = x_ref[0, 0]                     # (Cg, k_tile) bf16 features
    idx00 = idx_ref[0, 0]                # (1, cols) int32 flat top-left corner
    w = w_ref[0, 0]                      # (4, cols) f32 bilinear weights

    base = k * k_tile
    src = base + lax.broadcasted_iota(jnp.int32, (k_tile, 1), 0)   # global rows

    # Incremental fused compare+select accumulation: at most 2 (k_tile x cols)
    # matrices live at once.  Out-of-range corner indices never match any src
    # row, and they only occur when the corresponding weight is exactly zero
    # (border padding + align_corners=False), so no clamping is required.
    zero = jnp.zeros((), m_dtype)
    m = jnp.where(src == idx00, w[0:1, :].astype(m_dtype), zero)
    m = m + jnp.where(src == idx00 + 1, w[1:2, :].astype(m_dtype), zero)
    m = m + jnp.where(src == idx00 + W, w[2:3, :].astype(m_dtype), zero)
    m = m + jnp.where(src == idx00 + (W + 1), w[3:4, :].astype(m_dtype), zero)

    # Single lane-dense bf16 MXU contraction == bilinear grid_sample of all Cg
    # channels for all r^2 subpixels of this output-pixel tile / source tile.
    acc_ref[...] += jnp.dot(xg, m.astype(jnp.bfloat16),
                            preferred_element_type=jnp.float32)

    @pl.when(k == pl.num_programs(3) - 1)
    def _():
        o_ref[0, 0, 0] = acc_ref[...].astype(o_ref.dtype)


# ---------------------------------------------------------------------------
# wrapper
# ---------------------------------------------------------------------------
def dysample_lp(x_nchw, weight, bias, init_pos_flat, *, scale=2, groups=4):
    B, C, H, W = x_nchw.shape
    r = scale
    r2 = r * r
    cg = C // groups
    hw = H * W
    f32 = jnp.float32

    # ---- offset conv hoisted to XLA (f32 / HIGHEST: feeds floor()/clip()) ----
    off = jnp.einsum('oc,bchw->bohw', weight.astype(f32), x_nchw.astype(f32),
                     precision=lax.Precision.HIGHEST)
    off = (off + bias.astype(f32)[None, :, None, None]) * 0.25 \
        + init_pos_flat.astype(f32)[None, :, None, None]
    # conv channel o = a*G*r^2 + g*r^2 + k   (a: 0 = x-offset, 1 = y-offset)
    off = off.reshape(B, 2, groups, r2, hw)

    # ---- hoisted grid_sample coordinate math (per output column) ----
    pix = jnp.arange(hw, dtype=jnp.int32)
    wpix = (pix % W).astype(f32)
    hpix = (pix // W).astype(f32)
    gx = 2.0 * (wpix + 0.5 + off[:, 0]) / W - 1.0          # (B, G, r2, hw)
    gy = 2.0 * (hpix + 0.5 + off[:, 1]) / H - 1.0
    ix = jnp.clip(((gx + 1.0) * W - 1.0) * 0.5, 0.0, W - 1.0)
    iy = jnp.clip(((gy + 1.0) * H - 1.0) * 0.5, 0.0, H - 1.0)
    x0 = jnp.floor(ix)
    y0 = jnp.floor(iy)
    wx = ix - x0
    wy = iy - y0
    idx00 = (y0 * W + x0).astype(jnp.int32)                 # (B, G, r2, hw)
    wts = jnp.stack([(1.0 - wy) * (1.0 - wx), (1.0 - wy) * wx,
                     wy * (1.0 - wx), wy * wx], axis=2)     # (B, G, 4, r2, hw)

    # column ordering: col = p*r2 + k
    idx_cols = idx00.transpose(0, 1, 3, 2).reshape(B, groups, 1, hw * r2)
    w_cols = wts.transpose(0, 1, 2, 4, 3).reshape(B, groups, 4, hw * r2)

    # ---- tiling (generation-aware) ----
    m_budget, vmem_cap = _vmem_budget()
    m_dtype = _m_build_dtype()
    tile_p, k_tile = _choose_tiles(hw, r2, m_budget)
    cols = r2 * tile_p
    n_tiles = -(-hw // tile_p)
    hw_pad_t = n_tiles * tile_p
    n_k = -(-hw // k_tile)
    hw_pad_k = n_k * k_tile

    if hw_pad_t > hw:                    # padded output columns: zero weight, cropped later
        pad = (hw_pad_t - hw) * r2
        idx_cols = jnp.pad(idx_cols, ((0, 0), (0, 0), (0, 0), (0, pad)))
        w_cols = jnp.pad(w_cols, ((0, 0), (0, 0), (0, 0), (0, pad)))

    # group-sliced features straight to bf16 (no f32 flat intermediate)
    x_grouped = x_nchw.reshape(B, groups, cg, hw).astype(jnp.bfloat16)
    if hw_pad_k > hw:                    # padded source rows are zero features
        x_grouped = jnp.pad(x_grouped, ((0, 0), (0, 0), (0, 0), (0, hw_pad_k - hw)))

    # explicit VMEM limit: ~2 live M matrices + bf16 copy + double-buffered I/O
    m_bytes = k_tile * cols * jnp.dtype(m_dtype).itemsize
    est = (2 * m_bytes + k_tile * cols * 2
           + 2 * cg * k_tile * 2
           + 2 * (1 * cols * 4 + 4 * cols * 4)
           + 2 * cg * cols * x_nchw.dtype.itemsize
           + cg * cols * 4
           + (2 << 20))
    vmem_limit = int(min(max(2 * est, 32 << 20), vmem_cap))

    kernel = functools.partial(_dysample_kernel, W=W, k_tile=k_tile, m_dtype=m_dtype)

    out = pl.pallas_call(
        kernel,
        out_shape=jax.ShapeDtypeStruct((B, groups, n_tiles, cg, cols), x_nchw.dtype),
        grid_spec=pltpu.PrefetchScalarGridSpec(
            num_scalar_prefetch=0,
            grid=(B, groups, n_tiles, n_k),
            in_specs=[
                pl.BlockSpec((1, 1, cg, k_tile), lambda b, g, t, k: (b, g, 0, k)),
                pl.BlockSpec((1, 1, 1, cols), lambda b, g, t, k: (b, g, 0, t)),
                pl.BlockSpec((1, 1, 4, cols), lambda b, g, t, k: (b, g, 0, t)),
            ],
            out_specs=pl.BlockSpec((1, 1, 1, cg, cols),
                                   lambda b, g, t, k: (b, g, t, 0, 0)),
            scratch_shapes=[pltpu.VMEM((cg, cols), jnp.float32)],
        ),
        compiler_params=pltpu.CompilerParams(
            dimension_semantics=("parallel", "parallel", "parallel", "arbitrary"),
            vmem_limit_bytes=vmem_limit),
    )(x_grouped, idx_cols, w_cols)

    # glue: (B, G, NT, Cg, tile*r*r) -> NCHW (B, C, r*H, r*W)
    out = out.reshape(B, groups, n_tiles, cg, tile_p, r, r)  # (b,g,t,c,p,i,j)
    out = out.transpose(0, 1, 3, 2, 4, 5, 6)                 # (b,g,c,t,p,i,j)
    out = out.reshape(B, groups, cg, hw_pad_t, r, r)[:, :, :, :hw]
    out = out.reshape(B, groups, cg, H, W, r, r)
    out = out.transpose(0, 1, 2, 3, 5, 4, 6)                 # (b,g,c,h,i,w,j)
    return out.reshape(B, C, r * H, r * W)


# ---------------------------------------------------------------------------
# reference / init helpers (pure JAX, for verification)
# ---------------------------------------------------------------------------
def make_init_pos(scale, groups):
    """Replicates DySample._init_pos as a flat (2*groups*scale^2,) vector."""
    h = (jnp.arange(scale, dtype=jnp.float32) - (scale - 1) / 2.0) / scale
    t0 = jnp.broadcast_to(h[None, :], (scale, scale))   # h[q]
    t1 = jnp.broadcast_to(h[:, None], (scale, scale))   # h[p]
    stacked = jnp.stack([t0, t1])                        # (2, s, s)
    tiled = jnp.tile(stacked, (1, groups, 1))            # (2, s*groups, s)
    return tiled.reshape(-1)


def ref_dysample_lp(x, weight, bias, init_pos_flat, scale, groups):
    """Pure-JAX faithful translation of DySample.forward_lp (for verification)."""
    B, C, H, W = x.shape
    r = scale
    off = jnp.einsum('oc,bchw->bohw', weight, x,
                     precision=lax.Precision.HIGHEST) + bias[None, :, None, None]
    off = off * 0.25 + init_pos_flat[None, :, None, None]
    off = off.reshape(B, 2, groups * r * r, H, W)
    cw = jnp.arange(W, dtype=x.dtype) + 0.5
    ch = jnp.arange(H, dtype=x.dtype) + 0.5
    cx = jnp.broadcast_to(cw[None, :], (H, W))
    cy = jnp.broadcast_to(ch[:, None], (H, W))
    coords = jnp.stack([cx, cy])[None, :, None]                      # (1, 2, 1, H, W)
    normalizer = jnp.array([W, H], dtype=x.dtype).reshape(1, 2, 1, 1, 1)
    coords = 2 * (coords + off) / normalizer - 1                     # (B, 2, G*r^2, H, W)
    c2 = coords.reshape(B, 2 * groups * r * r, H, W)
    cps = 2 * groups
    ps = c2.reshape(B, cps, r, r, H, W).transpose(0, 1, 4, 2, 5, 3).reshape(B, cps, r * H, r * W)
    grid = ps.reshape(B, 2, groups, r * H, r * W).transpose(0, 2, 3, 4, 1)
    grid = grid.reshape(B * groups, r * H, r * W, 2)
    xg = x.reshape(B * groups, C // groups, H, W)
    gx, gy = grid[..., 0], grid[..., 1]
    ix = jnp.clip(((gx + 1) * W - 1) / 2, 0.0, W - 1.0)
    iy = jnp.clip(((gy + 1) * H - 1) / 2, 0.0, H - 1.0)
    x0 = jnp.floor(ix).astype(jnp.int32)
    y0 = jnp.floor(iy).astype(jnp.int32)
    wx, wy = ix - x0, iy - y0
    x1 = jnp.minimum(x0 + 1, W - 1)
    y1 = jnp.minimum(y0 + 1, H - 1)
    flat = xg.reshape(B * groups, C // groups, H * W)

    def gather(yi, xi):
        idx = (yi * W + xi).reshape(B * groups, 1, -1)
        idx = jnp.broadcast_to(idx, (B * groups, C // groups, idx.shape[-1]))
        return jnp.take_along_axis(flat, idx, axis=2).reshape(
            B * groups, C // groups, r * H, r * W)

    wxb, wyb = wx[:, None], wy[:, None]
    out = (gather(y0, x0) * (1 - wyb) * (1 - wxb)
           + gather(y0, x1) * (1 - wyb) * wxb
           + gather(y1, x0) * wyb * (1 - wxb)
           + gather(y1, x1) * wyb * wxb)
    return out.reshape(B, C, r * H, r * W)


if __name__ == "__main__":
    B, C, H, W = 2, 32, 16, 16
    scale, groups = 2, 4

    key = jax.random.PRNGKey(0)
    kx, kw = jax.random.split(key)
    x = jax.random.normal(kx, (B, C, H, W), dtype=jnp.float32)

    cout = 2 * groups * scale * scale
    # normal_init(self.offset, std=0.001), bias=0 — deterministic synthetic init
    weight = jax.random.normal(kw, (cout, C), dtype=jnp.float32) * 0.001
    bias = jnp.zeros((cout,), dtype=jnp.float32)
    init_pos = make_init_pos(scale, groups)

    out = dysample_lp(x, weight, bias, init_pos, scale=scale, groups=groups)
    out = jax.block_until_ready(out)

    ref = ref_dysample_lp(x, weight, bias, init_pos, scale, groups)
    assert out.shape == (B, C, scale * H, scale * W)
    # bf16 MXU gather -> tolerance loosened vs the f32 reference
    np.testing.assert_allclose(np.asarray(out), np.asarray(ref), rtol=2e-2, atol=2e-2)
    print("KERNEL_OK")
</pallas_src>

<mosaic_0001>
module attributes {stable_mosaic.version = 11 : i64} {
  func.func @_dysample_kernel(%arg0: i32, %arg1: i32, %arg2: i32, %arg3: i32, %arg4: memref<1x1x8x256xbf16, #tpu.memory_space<vmem>>, %arg5: memref<1x1x1x1024xi32, #tpu.memory_space<vmem>>, %arg6: memref<1x1x4x1024xf32, #tpu.memory_space<vmem>>, %arg7: memref<1x1x1x8x1024xf32, #tpu.memory_space<vmem>>, %arg8: memref<8x1024xf32, #tpu.memory_space<vmem>>) attributes {dimension_semantics = [#tpu.dimension_semantics<parallel>, #tpu.dimension_semantics<parallel>, #tpu.dimension_semantics<parallel>, #tpu.dimension_semantics<arbitrary>], iteration_bounds = array<i64: 2, 4, 1, 1>, scalar_prefetch = 0 : i64, scratch_operands = 1 : i64, tpu.core_type = #tpu.core_type<tc>, window_params = [{transform_indices = @transform_0, window_bounds = array<i64: 1, 1, 8, 256>}, {transform_indices = @transform_1, window_bounds = array<i64: 1, 1, 1, 1024>}, {transform_indices = @transform_2, window_bounds = array<i64: 1, 1, 4, 1024>}, {transform_indices = @transform_3, window_bounds = array<i64: 1, 1, 1, 8, 1024>}]} {
    %c0_i32 = arith.constant 0 : i32
    %0 = arith.cmpi eq, %arg3, %c0_i32 : i32
    %1 = arith.extui %0 : i1 to i32
    %c0_i32_0 = arith.constant 0 : i32
    %2 = arith.cmpi ne, %1, %c0_i32_0 : i32
    scf.if %2 {
      %cst_22 = arith.constant 0.000000e+00 : f32
      %62 = vector.broadcast %cst_22 : f32 to vector<8x1024xf32>
      %c0_23 = arith.constant 0 : index
      %c0_24 = arith.constant 0 : index
      %63 = vector.load %arg8[%c0_23, %c0_24] : memref<8x1024xf32, #tpu.memory_space<vmem>>, vector<8x1024xf32>
      tpu.vector_store %arg8[%c0_23, %c0_24], %62 {strides = array<i32>} : memref<8x1024xf32, #tpu.memory_space<vmem>>, vector<8x1024xf32>,
    } else {
    }
    %c0 = arith.constant 0 : index
    %c0_1 = arith.constant 0 : index
    %c0_2 = arith.constant 0 : index
    %c0_3 = arith.constant 0 : index
    %3 = vector.load %arg4[%c0, %c0_1, %c0_2, %c0_3] : memref<1x1x8x256xbf16, #tpu.memory_space<vmem>>, vector<1x1x8x256xbf16>
    %4 = vector.shape_cast %3 : vector<1x1x8x256xbf16> to vector<8x256xbf16>
    %c0_4 = arith.constant 0 : index
    %c0_5 = arith.constant 0 : index
    %c0_6 = arith.constant 0 : index
    %c0_7 = arith.constant 0 : index
    %5 = vector.load %arg5[%c0_4, %c0_5, %c0_6, %c0_7] : memref<1x1x1x1024xi32, #tpu.memory_space<vmem>>, vector<1x1x1x1024xi32>
    %6 = vector.shape_cast %5 : vector<1x1x1x1024xi32> to vector<1x1024xi32>
    %c0_8 = arith.constant 0 : index
    %c0_9 = arith.constant 0 : index
    %c0_10 = arith.constant 0 : index
    %c0_11 = arith.constant 0 : index
    %7 = vector.load %arg6[%c0_8, %c0_9, %c0_10, %c0_11] : memref<1x1x4x1024xf32, #tpu.memory_space<vmem>>, vector<1x1x4x1024xf32>
    %8 = vector.shape_cast %7 : vector<1x1x4x1024xf32> to vector<4x1024xf32>
    %c256_i32 = arith.constant 256 : i32
    %9 = arith.muli %arg3, %c256_i32 : i32
    %10 = tpu.iota {dimensions = array<i32: 0>} : vector<256x1xi32>
    %11 = vector.broadcast %9 : i32 to vector<256x1xi32>
    %12 = arith.addi %11, %10 : vector<256x1xi32>
    %13 = vector.broadcast %12 : vector<256x1xi32> to vector<256x1024xi32>
    %14 = vector.broadcast %6 : vector<1x1024xi32> to vector<256x1024xi32>
    %15 = arith.cmpi eq, %13, %14 : vector<256x1024xi32>
    %16 = vector.extract_strided_slice %8 {offsets = [0, 0], sizes = [1, 1024], strides = [1, 1]} : vector<4x1024xf32> to vector<1x1024xf32>
    %cst = arith.constant 0.000000e+00 : f32
    %17 = vector.shape_cast %16 : vector<1x1024xf32> to vector<1x1024xf32>
    %18 = vector.broadcast %17 : vector<1x1024xf32> to vector<256x1024xf32>
    %19 = vector.broadcast %cst : f32 to vector<256x1024xf32>
    %20 = arith.select %15, %18, %19 : vector<256x1024xi1>, vector<256x1024xf32>
    %c1_i32 = arith.constant 1 : i32
    %21 = vector.broadcast %c1_i32 : i32 to vector<1x1024xi32>
    %22 = arith.addi %6, %21 : vector<1x1024xi32>
    %23 = vector.broadcast %12 : vector<256x1xi32> to vector<256x1024xi32>
    %24 = vector.broadcast %22 : vector<1x1024xi32> to vector<256x1024xi32>
    %25 = arith.cmpi eq, %23, %24 : vector<256x1024xi32>
    %26 = vector.extract_strided_slice %8 {offsets = [1, 0], sizes = [1, 1024], strides = [1, 1]} : vector<4x1024xf32> to vector<1x1024xf32>
    %cst_12 = arith.constant 0.000000e+00 : f32
    %27 = vector.shape_cast %26 : vector<1x1024xf32> to vector<1x1024xf32>
    %28 = vector.broadcast %27 : vector<1x1024xf32> to vector<256x1024xf32>
    %29 = vector.broadcast %cst_12 : f32 to vector<256x1024xf32>
    %30 = arith.select %25, %28, %29 : vector<256x1024xi1>, vector<256x1024xf32>
    %31 = arith.addf %20, %30 : vector<256x1024xf32>
    %c16_i32 = arith.constant 16 : i32
    %32 = vector.broadcast %c16_i32 : i32 to vector<1x1024xi32>
    %33 = arith.addi %6, %32 : vector<1x1024xi32>
    %34 = vector.broadcast %12 : vector<256x1xi32> to vector<256x1024xi32>
    %35 = vector.broadcast %33 : vector<1x1024xi32> to vector<256x1024xi32>
    %36 = arith.cmpi eq, %34, %35 : vector<256x1024xi32>
    %37 = vector.extract_strided_slice %8 {offsets = [2, 0], sizes = [1, 1024], strides = [1, 1]} : vector<4x1024xf32> to vector<1x1024xf32>
    %cst_13 = arith.constant 0.000000e+00 : f32
    %38 = vector.shape_cast %37 : vector<1x1024xf32> to vector<1x1024xf32>
    %39 = vector.broadcast %38 : vector<1x1024xf32> to vector<256x1024xf32>
    %40 = vector.broadcast %cst_13 : f32 to vector<256x1024xf32>
    %41 = arith.select %36, %39, %40 : vector<256x1024xi1>, vector<256x1024xf32>
    %42 = arith.addf %31, %41 : vector<256x1024xf32>
    %c17_i32 = arith.constant 17 : i32
    %43 = vector.broadcast %c17_i32 : i32 to vector<1x1024xi32>
    %44 = arith.addi %6, %43 : vector<1x1024xi32>
    %45 = vector.broadcast %12 : vector<256x1xi32> to vector<256x1024xi32>
    %46 = vector.broadcast %44 : vector<1x1024xi32> to vector<256x1024xi32>
    %47 = arith.cmpi eq, %45, %46 : vector<256x1024xi32>
    %48 = vector.extract_strided_slice %8 {offsets = [3, 0], sizes = [1, 1024], strides = [1, 1]} : vector<4x1024xf32> to vector<1x1024xf32>
    %cst_14 = arith.constant 0.000000e+00 : f32
    %49 = vector.shape_cast %48 : vector<1x1024xf32> to vector<1x1024xf32>
    %50 = vector.broadcast %49 : vector<1x1024xf32> to vector<256x1024xf32>
    %51 = vector.broadcast %cst_14 : f32 to vector<256x1024xf32>
    %52 = arith.select %47, %50, %51 : vector<256x1024xi1>, vector<256x1024xf32>
    %53 = arith.addf %42, %52 : vector<256x1024xf32>
    %c0_15 = arith.constant 0 : index
    %c0_16 = arith.constant 0 : index
    %54 = vector.load %arg8[%c0_15, %c0_16] : memref<8x1024xf32, #tpu.memory_space<vmem>>, vector<8x1024xf32>
    %55 = arith.truncf %53 : vector<256x1024xf32> to vector<256x1024xbf16>
    %cst_17 = arith.constant dense<0.000000e+00> : vector<8x1024xf32>
    %56 = tpu.matmul %4, %55, %cst_17 {dimension_numbers = #tpu.dot_dimension_numbers<[1], [0], [0], [1], [0, 0, 1, 1], [], []>} : vector<8x256xbf16>, vector<256x1024xbf16>, vector<8x1024xf32> -> vector<8x1024xf32>
    %57 = arith.addf %54, %56 : vector<8x1024xf32>
    %c0_18 = arith.constant 0 : index
    %c0_19 = arith.constant 0 : index
    %58 = vector.load %arg8[%c0_18, %c0_19] : memref<8x1024xf32, #tpu.memory_space<vmem>>, vector<8x1024xf32>
    tpu.vector_store %arg8[%c0_18, %c0_19], %57 {strides = array<i32>} : memref<8x1024xf32, #tpu.memory_space<vmem>>, vector<8x1024xf32>,
    %c0_i32_20 = arith.constant 0 : i32
    %59 = arith.cmpi eq, %arg3, %c0_i32_20 : i32
    %60 = arith.extui %59 : i1 to i32
    %c0_i32_21 = arith.constant 0 : i32
    %61 = arith.cmpi ne, %60, %c0_i32_21 : i32
    scf.if %61 {
      %c0_22 = arith.constant 0 : index
      %c0_23 = arith.constant 0 : index
      %62 = vector.load %arg8[%c0_22, %c0_23] : memref<8x1024xf32, #tpu.memory_space<vmem>>, vector<8x1024xf32>
      %c0_24 = arith.constant 0 : index
      %c0_25 = arith.constant 0 : index
      %c0_26 = arith.constant 0 : index
      %c0_27 = arith.constant 0 : index
      %c0_28 = arith.constant 0 : index
      %63 = vector.load %arg7[%c0_24, %c0_25, %c0_26, %c0_27, %c0_28] : memref<1x1x1x8x1024xf32, #tpu.memory_space<vmem>>, vector<1x1x1x8x1024xf32>
      %64 = vector.shape_cast %63 : vector<1x1x1x8x1024xf32> to vector<8x1024xf32>
      %65 = vector.shape_cast %62 : vector<8x1024xf32> to vector<1x1x1x8x1024xf32>
      tpu.vector_store %arg7[%c0_24, %c0_25, %c0_26, %c0_27, %c0_28], %65 {strides = array<i32>} : memref<1x1x1x8x1024xf32, #tpu.memory_space<vmem>>, vector<1x1x1x8x1024xf32>,
    } else {
    }
    return
  }
  func.func @transform_0(%arg0: i32, %arg1: i32, %arg2: i32, %arg3: i32) -> (i32, i32, i32, i32) {
    %c0_i32 = arith.constant 0 : i32
    %c0_i32_0 = arith.constant 0 : i32
    return %arg0, %arg1, %c0_i32, %arg3 : i32, i32, i32, i32
  }
  func.func @transform_1(%arg0: i32, %arg1: i32, %arg2: i32, %arg3: i32) -> (i32, i32, i32, i32) {
    %c0_i32 = arith.constant 0 : i32
    %c0_i32_0 = arith.constant 0 : i32
    return %arg0, %arg1, %c0_i32, %arg2 : i32, i32, i32, i32
  }
  func.func @transform_2(%arg0: i32, %arg1: i32, %arg2: i32, %arg3: i32) -> (i32, i32, i32, i32) {
    %c0_i32 = arith.constant 0 : i32
    %c0_i32_0 = arith.constant 0 : i32
    return %arg0, %arg1, %c0_i32, %arg2 : i32, i32, i32, i32
  }
  func.func @transform_3(%arg0: i32, %arg1: i32, %arg2: i32, %arg3: i32) -> (i32, i32, i32, i32, i32) {
    %c0_i32 = arith.constant 0 : i32
    %c0_i32_0 = arith.constant 0 : i32
    %c0_i32_1 = arith.constant 0 : i32
    return %arg0, %arg1, %arg2, %c0_i32, %c0_i32_0 : i32, i32, i32, i32, i32
  }
}

</mosaic_0001>

<bundles_post_ra>
// kernel: tpu_custom_call.1
= control target key start
LH: loop header
LB: loop body
LE: loop exit
PB: predicated region body
PF: predicated region fallthrough
CT: control target
= control target key end

     0   :  { %s8253_s0 = inlined_call_operand.hbm [shape: bf16[2,4,8,256], index: 0, kind: input, shape index: {}]   ;;  %s8254_s1 = inlined_call_operand.hbm [shape: s32[2,4,1,1024], index: 1, kind: input, shape index: {}]   ;;  %s8255_s2 = inlined_call_operand.hbm [shape: f32[2,4,4,1024], index: 2, kind: input, shape index: {}]   ;;  %s8256_s3 = inlined_call_operand.hbm [shape: f32[2,4,1,8,1024], index: 3, kind: output, shape index: {}]  }
   0x1   :  { %8334 = sst [smem:[#allocation65_spill]] %s8254_s1 }
   0x2   :  { %8 = vsyncpa [#allocation4], 0 }
   0x3   :  { %10 = vsyncpa [#allocation4 + $0x1], 0 }
   0x4   :  { %11 = vsyncpa [#allocation7], 0 }
   0x5   :  { %13 = vsyncpa [#allocation7 + $0x1], 0 }
   0x6   :  { %14 = vsyncpa [#allocation5], 0 }
   0x7   :  { %16 = vsyncpa [#allocation5 + $0x1], 0  ;;  %s4489_s12 = smov 0   ;;  %s4491_s13 = smov 0  }
   0x8   :  { %s4493_s14 = smov 0   ;;  %s4495_s15 = smov 0  }
   0x9   :  { %s4497_s16 = smov 0   ;;  %s4499_s17 = smov 0  }
   0xa   :  { %s4501_s18 = smov 0   ;;  %s4503_s19 = smov 0  }
   0xb LB: > { %8335 = sst [smem:[#allocation13_spill]] %s4435_s12  ;;  %s4530_s20 = sadd.s32 4294967295, %s4463_s19   ;;  %s4463_s19 = sphi %s4503_s19, %s22_s19   ;;  %s4459_s18 = sphi %s4501_s18, %s8453_s18   ;;  %s4455_s17 = sphi %s4499_s17, %s8452_s17   ;;  %s4451_s16 = sphi %s4497_s16, %s8451_s16   ;;  %s4447_s15 = sphi %s4495_s15, %s8450_s15   ;;  %s4443_s14 = sphi %s4493_s14, %s8449_s14   ;;  %s4439_s13 = sphi %s4491_s13, %s8455_s13   ;;  %s4435_s12 = sphi %s4489_s12, %s8454_s12  }
   0xc   : > { %8336 = sst [smem:[#allocation14_spill]] %s4443_s14  ;;  %s4153_s21 = sadd.s32 4294967294, %s4463_s19  }
   0xd   : > { %8337 = sst [smem:[#allocation15_spill]] %s4455_s17  ;;  %s44_s22 = sadd.s32 1, %s4455_s17 }
   0xe   : > { %8338 = sst [smem:[#allocation16_spill]] %s4459_s18  ;;  %s48_s23 = sadd.s32 1, %s4459_s18 }
   0xf   : > { %p46_p0 = scmp.ge.s32.totalorder %s44_s22, 4  ;;  %s59_s24 = sadd.s32 1, %s4443_s14 }
  0x10   : > { %p66_p1 = scmp.ne.s32.totalorder %s4443_s14, %s4439_s13  ;;  %p67_p2 = scmp.eq.s32.totalorder %s4463_s19, 0 }
  0x11   : > { %s8457_s22 = smov (%p46_p0, %s44_s22), 0  ;;  %s8459_s23 = smov (!%p46_p0, %s48_s23), %s4459_s18 }
  0x12   : > { %8339 = sst [smem:[#allocation17_spill]] %s8457_s22  ;;  %s53_s25 = ssub.s32 %s4455_s17, %s8457_s22 }
  0x13   : > { %p4544_p3 = por %p67_p2, %p66_p1  ;;  %p50_p4 = scmp.ge.s32.totalorder %s8459_s23, 2 }
  0x14   : > { %p72_p5 = scmp.ne.s32.totalorder %s4439_s13, %s4435_s12  ;;  %p73_p6 = scmp.eq.s32.totalorder %s4530_s20, 0 }
  0x15   : > { %p160_p7 = scmp.eq.s32.totalorder %s4530_s20, 7  ;;  %s8461_s23 = smov (%p50_p4, %s8459_s23), 0 }
  0x16   : > { %8341 = sst [smem:[#allocation18_spill]] %s8461_s23  ;;  %p4554_p8 = por %p73_p6, %p72_p5 }
  0x17   : > { %p4558_p9 = por %p160_p7, %p66_p1  ;;  %s52_s29 = ssub.s32 %s4459_s18, %s8461_s23 }
  0x18   : > { %s8342_s27 = scalar_select %p4554_p8, 1, 0 }
  0x19   : > { %s8343_s28 = scalar_select %p4558_p9, 1, 0 }
  0x1a   : > { %p166_p10 = scmp.eq.s32.totalorder %s4153_s21, 7  ;;  %s54_s30 = sor.u32 %s53_s25, %s52_s29 }
  0x1b   : > { %p57_p11 = scmp.eq.s32.totalorder %s54_s30, 0  ;;  %p4203_p13 = scmp.lt.s32.totalorder %s4463_s19, 8 }
  0x1c   : > { %p4564_p12 = por %p166_p10, %p72_p5  ;;  %s4570_s5 = sand.u32 1, %s4443_s14  }
  0x1d   : > { %s4573_s6 = scalar_select %p57_p11, %s4443_s14, %s59_s24  }
  0x1e   : > { %s8344_s4 = scalar_select %p4564_p12, 1, 0 }
  0x1f   : > { %8346 = sst [smem:[#allocation20_spill]] %s4573_s6  ;;  %s8259_s7 = sshll.u32 %s4570_s5, 3 }
  0x20   : > { %8345 = sst [smem:[#allocation19_spill]] %s8344_s4  ;;  %p4578_p0 = pnand %p4203_p13, %p4544_p3 }
  0x21   : > { %s209_s9 = sand.u32 1, %s4463_s19   ;;  %s4161_s10 = sshll.u32 %s4455_s17, 3 }
  0x22   : > { %s8347_s8 = scalar_select %p4578_p0, 1, 0 }
  0x23   : > { %s4162_s11 = sshll.u32 %s4459_s18, 5  ;;  %s213_s25 = scalar_lea.vmem [#allocation6], %s8259_s7 }
  0x24   : > { %s4585_s21 = sadd.s32 %s4162_s11, %s4161_s10  ;;  %s225_s29 = sshll.u32 %s213_s25, 4  ;;  %s4590_s29 = int_to_ptr.vmem [resolvable:$true] %s225_s29 }
  0x25   : > { %s4163_s30 = sshll.u32 %s4585_s21, 4  ;;  %s8348_s1 = sld [smem:[#allocation65_spill]] }
  0x26   : > { %s4598_s10 = scalar_lea.sflag [#allocation7], %s209_s9  ;;  %p4604_p2 = pneg %p4578_p0 }
  0x2b   : > { %s4595_s23 = scalar_lea.hbm %s8348_s1, %s4163_s30  ;;  %s4276_s26 = scalar_lea.hbm %s8348_s1, 1024 }
  0x2c   : > { %s4271_s11 = scalar_lea.hbm %s4595_s23, 128  ;;  %p4277_p5 = scmp.lt.u32.totalorder %s4595_s23, %s8348_s1 }
  0x2d   : > { %p4272_p1 = scmp.ne.s32.totalorder %s4595_s23, %s4271_s11  ;;  %p4278_p6 = scmp.lt.u32.totalorder %s4276_s26, %s4271_s11 }
  0x2e   : > { %p4280_p10 = scmp.lt.u32.totalorder %s4271_s11, %s4595_s23 }
  0x2f   : > { %p4274_p3 = pnand %p4604_p2, %p4272_p1  ;;  %p4279_p7 = por %p4278_p6, %p4277_p5 }
  0x31   : > { %p4275_p4 = pneg %p4274_p3  ;;  %p4281_p11 = por %p4280_p10, %p4279_p7 }
  0x33   : > { %p4282_p13 = pnand %p4281_p11, %p4275_p4 }
  0x35   : > { %4285 = shalt.err (!%p4282_p13)
}
  0x36   : > { %s4286_s9 = scalar_lea.vmem %s4590_s29, 128  ;;  %s4465_s30 = smov [#allocation6]  }
  0x37   : > { %p4287_p1 = scmp.ne.s32.totalorder %s4590_s29, %s4286_s9  ;;  %s4291_s24 = sshll.u32 %s4465_s30, 4  ;;  %s4292_s24 = int_to_ptr.vmem [resolvable:$false] %s4291_s24 }
  0x38   : > { %s4293_s6 = scalar_lea.vmem %s4292_s24, 256  ;;  %p4294_p9 = scmp.lt.s32.totalorder %s4590_s29, %s4292_s24 }
  0x39   : > { %p4289_p3 = pnand %p4287_p1, %p4604_p2  ;;  %p4295_p8 = scmp.lt.s32.totalorder %s4293_s6, %s4286_s9 }
  0x3b   : > { %p4290_p12 = pneg %p4289_p3  ;;  %p4296_p5 = por %p4295_p8, %p4294_p9 }
  0x3d   : > { %p4297_p6 = pnand %p4296_p5, %p4290_p12 }
  0x3f   : > { %4300 = shalt.err (!%p4297_p6)
}
  0x40   : > { %4195 = dma.hbm_to_vmem [thread:$0]  (!%p4578_p0), %s4595_s23, 128, %s4590_s29, %s4598_s10  }
  0x41   : > { %p4168_p4 = scmp.ge.s32.totalorder %s4463_s19, 1  ;;  %p253_p7 = scmp.lt.s32.totalorder %s4463_s19, 9 }
  0x42   : > { %s4157_s11 = sshll.u32 %s4455_s17, 1  ;;  %s4158_s26 = sshll.u32 %s4459_s18, 3 }
  0x43   : > { %p4630_p10 = pnand %p4168_p4, %p253_p7  ;;  %s8351_s9 = sshll.u32 %s4570_s5, 3 }
  0x44   : > { %s190_s30 = scalar_lea.vmem [#allocation3], %s8351_s9  ;;  %s198_s6 = sadd.s32 %s4158_s26, %s4157_s11 }
  0x45   : > { %s8350_s7 = scalar_select %p4630_p10, 1, 0 }
  0x46   : > { %s202_s24 = sshll.u32 %s190_s30, 4  ;;  %s4159_s22 = sshll.u32 %s198_s6, 6  ;;  %s4638_s24 = int_to_ptr.vmem [resolvable:$true] %s202_s24 }
  0x47   : > { %s4164_s1 = sshll.u32 %s4570_s5, 5  ;;  %s200_s23 = scalar_lea.hbm %s8253_s0, %s4159_s22 }
  0x48   : > { %s187_s29 = scalar_lea.sflag [#allocation4], %s4570_s5  ;;  %s4301_s12 = scalar_lea.hbm %s200_s23, 128 }
  0x49   : > { %p4302_p8 = scmp.ne.s32.totalorder %s200_s23, %s4301_s12  ;;  %s4306_s9 = scalar_lea.hbm %s8253_s0, 1024 }
  0x4a   : > { %p4307_p11 = scmp.lt.u32.totalorder %s200_s23, %s8253_s0  ;;  %p4308_p13 = scmp.lt.u32.totalorder %s4306_s9, %s4301_s12 }
  0x4b   : > { %p4304_p9 = pnand %p4302_p8, %p4604_p2  ;;  %p4310_p3 = scmp.lt.u32.totalorder %s4301_s12, %s200_s23 }
  0x4c   : > { %p4309_p1 = por %p4308_p13, %p4307_p11 }
  0x4d   : > { %p4305_p12 = pneg %p4304_p9 }
  0x4e   : > { %p4311_p5 = por %p4310_p3, %p4309_p1 }
  0x50   : > { %p4312_p6 = pnand %p4311_p5, %p4305_p12 }
  0x52   : > { %4315 = shalt.err (!%p4312_p6)
}
  0x53   : > { %s4316_s14 = scalar_lea.vmem %s4638_s24, 128  ;;  %s4466_s17 = smov [#allocation3]  }
  0x54   : > { %p4317_p4 = scmp.ne.s32.totalorder %s4638_s24, %s4316_s14  ;;  %s4321_s18 = sshll.u32 %s4466_s17, 4  ;;  %s4322_s18 = int_to_ptr.vmem [resolvable:$false] %s4321_s18 }
  0x55   : > { %s4323_s22 = scalar_lea.vmem %s4322_s18, 256  ;;  %p4324_p9 = scmp.lt.s32.totalorder %s4638_s24, %s4322_s18 }
  0x56   : > { %p4319_p7 = pnand %p4317_p4, %p4604_p2  ;;  %p4325_p10 = scmp.lt.s32.totalorder %s4323_s22, %s4316_s14 }
  0x58   : > { %p4320_p8 = pneg %p4319_p7  ;;  %p4326_p11 = por %p4325_p10, %p4324_p9 }
  0x5a   : > { %p4327_p13 = pnand %p4326_p11, %p4320_p8 }
  0x5c   : > { %4330 = shalt.err (!%p4327_p13)
}
  0x5d   : > { %4192 = dma.hbm_to_vmem [thread:$0]  (!%p4578_p0), %s200_s23, 128, %s4638_s24, %s187_s29  }
  0x5e   : > { %s8352_s12 = sshll.u32 %s4585_s21, 6  ;;  %s236_s9 = scalar_lea.vmem [#allocation8], %s4164_s1 }
  0x5f   : > { %s4666_s6 = scalar_lea.hbm %s8255_s2, %s8352_s12  ;;  %s248_s30 = sshll.u32 %s236_s9, 4  ;;  %s249_s30 = int_to_ptr.vmem [resolvable:$true] %s248_s30 }
  0x60   : > { %s4331_s11 = scalar_lea.hbm %s4666_s6, 512  ;;  %s4336_s23 = scalar_lea.hbm %s8255_s2, 4096 }
  0x61   : > { %p4332_p10 = scmp.ne.s32.totalorder %s4666_s6, %s4331_s11  ;;  %p4337_p3 = scmp.lt.u32.totalorder %s4666_s6, %s8255_s2 }
  0x62   : > { %p4338_p5 = scmp.lt.u32.totalorder %s4336_s23, %s4331_s11  ;;  %p4340_p4 = scmp.lt.u32.totalorder %s4331_s11, %s4666_s6 }
  0x63   : > { %p4334_p12 = pnand %p4332_p10, %p4604_p2 }
  0x64   : > { %p4339_p6 = por %p4338_p5, %p4337_p3 }
  0x65   : > { %p4335_p1 = pneg %p4334_p12 }
  0x66   : > { %p4341_p7 = por %p4340_p4, %p4339_p6 }
  0x68   : > { %p4342_p8 = pnand %p4341_p7, %p4335_p1 }
  0x6a   : > { %4345 = shalt.err (!%p4342_p8)
}
  0x6b   : > { %s4346_s1 = scalar_lea.vmem %s249_s30, 512  ;;  %s4467_s5 = smov [#allocation8]  }
  0x6c   : > { %p4347_p9 = scmp.ne.s32.totalorder %s249_s30, %s4346_s1  ;;  %s4351_s17 = sshll.u32 %s4467_s5, 4  ;;  %s4352_s17 = int_to_ptr.vmem [resolvable:$false] %s4351_s17 }
  0x6d   : > { %s4353_s18 = scalar_lea.vmem %s4352_s17, 1024  ;;  %p4354_p10 = scmp.lt.s32.totalorder %s249_s30, %s4352_s17 }
  0x6e   : > { %p4349_p11 = pnand %p4347_p9, %p4604_p2  ;;  %p4355_p12 = scmp.lt.s32.totalorder %s4353_s18, %s4346_s1 }
  0x70   : > { %p4350_p13 = pneg %p4349_p11  ;;  %p4356_p0 = por %p4355_p12, %p4354_p10 }
  0x72   : > { %p4357_p3 = pnand %p4356_p0, %p4350_p13 }
  0x74   : > { %4360 = shalt.err (!%p4357_p3)
}
  0x75   : > { %p8353_p5 = scmp.ne.s32.totalorder %s8347_s8, 0  ;;  %p8354_p1 = scmp.ne.s32.totalorder %s8350_s7, 0 }
  0x77   : > { %4198 = dma.hbm_to_vmem [thread:$0]  (!%p8353_p5), %s4666_s6, 512, %s249_s30, %s4598_s10  }
  0x78   : > { %257 = sbr.rel (%p8354_p1) target bundleno = 1147 (0x47b), region = 32 }
  0x7f   : > { %s4691_s25 = sand.u32 1, %s4439_s13   ;;  %p8355_p0 = scmp.ne.s32.totalorder %s8342_s27, 0 }
  0x80   : > { %s4169_s22 = sshll.u32 %s4691_s25, 3  ;;  %s260_s12 = scalar_lea.sflag [#allocation4], %s4691_s25 }
  0x81   : > { %s4695_s4 = scalar_lea.vmem [#allocation3], %s4169_s22 }
  0x82   : > { %4422 = dma.done.wait (%p8355_p0), %s260_s12, 128  }
  0x83   : > { %4424 = vsyncadd (%p8355_p0), %s260_s12, 4294967168  ;;  %s268_s8 = sand.u32 1, %s4530_s20   ;;  %s272_s7 = scalar_lea.vmem [#allocation6], %s4169_s22 }
  0x84   : > { %s269_s10 = scalar_lea.sflag [#allocation7], %s268_s8 }
  0x85   : > { %4426 = dma.done.wait (%p8355_p0), %s269_s10, 640  }
  0x86   : > { %4428 = vsyncadd (%p8355_p0), %s269_s10, 4294966656  ;;  %v336_v0 = vlaneseq  ;;  %s4171_s26 = sshll.u32 %s4691_s25, 5  ;;  %v4745_v14 = vld [vmem:[%s272_s7] sm:$0xff]  ;;  %s4172_s27 = sshll.u32 %s4691_s25, 6 }
  0x87   : > { %s281_s20 = scalar_lea.vmem [#allocation8], %s4171_s26  ;;  %v1022_v46 = vadd.s32 1, %v4745_v14  ;;  %s7694_s6 = scalar_lea.vmem [#allocation9], %s4172_s27 }
  0x88   : > { %v4707_v1 = vshrl.u32 %v336_v0, 7  ;;  %v4747_v15 = vld [vmem:[%s281_s20] sm:$0xff]  ;;  %v4749_v16 = vld [vmem:[%s281_s20 + $0x8] sm:$0xff]  ;;  %v4760_v20 = vld [vmem:[%s281_s20 + $0x10] sm:$0xff]  ;;  %s4176_s9 = sshll.u32 %s4447_s15, 3  ;;  %s4177_s30 = sshll.u32 %s4451_s16, 5 }
  0x89   : > { %v4762_v21 = vld [vmem:[%s281_s20 + $0x18] sm:$0xff]  ;;  %s3998_s11 = sadd.s32 %s4177_s30, %s4176_s9  ;;  %s4002_s21 = sshll.u32 %s7694_s6, 4  ;;  %s8199_s21 = int_to_ptr.vmem [resolvable:$true] %s4002_s21 }
  0x8a   : > { %v4710_v2 = vsub.s32 0, %v4707_v1  ;;  %v4713_v3 = vsub.s32 1, %v4707_v1  ;;  %v4716_v4 = vsub.s32 2, %v4707_v1  ;;  %v4719_v5 = vsub.s32 3, %v4707_v1  ;;  %s4178_s24 = sshll.u32 %s3998_s11, 7  ;;  %s3984_s15 = scalar_lea.sflag [#allocation5], %s4691_s25 }
  0x8b   : > { %v4722_v6 = vsub.s32 4, %v4707_v1  ;;  %v4725_v7 = vsub.s32 5, %v4707_v1  ;;  %v4728_v8 = vsub.s32 6, %v4707_v1  ;;  %v4731_v9 = vsub.s32 7, %v4707_v1  ;;  %s8197_s14 = scalar_lea.hbm %s8256_s3, %s4178_s24  ;;  %s4361_s16 = scalar_lea.vmem %s8199_s21, 1024 }
  0x8c   : > { %v4734_v10 = vadd.s32 8, %v4707_v1  ;;  %v4737_v11 = vadd.s32 16, %v4707_v1  ;;  %v4740_v12 = vadd.s32 24, %v4707_v1  ;;  %v4743_v13 = vadd.s32 32, %v4707_v1  ;;  %p4362_p2 = scmp.ne.s32.totalorder %s8199_s21, %s4361_s16  ;;  %p8444_p6 = scmp.ne.s32.totalorder %s8343_s28, 0 }
  0x8d   : > { %v4752_v17 = vadd.s32 40, %v4707_v1  ;;  %v4755_v18 = vadd.s32 48, %v4707_v1  ;;  %v4758_v19 = vadd.s32 56, %v4707_v1  ;;  %v4766_v22 = vrot.slane %v4745_v14, %v4710_v2  ;;  %s4468_s1 = smov [#allocation9]  }
  0x8e   : > { %8356 = vst [vmem:[#allocation21_spill] sm:$0xff] %v4737_v11  ;;  %8357 = vst [vmem:[#allocation22_spill] sm:$0xff] %v4740_v12  ;;  %v4770_v23 = vrot.slane %v4745_v14, %v4713_v3  ;;  %v4774_v24 = vrot.slane %v4745_v14, %v4716_v4  ;;  %v4778_v25 = vrot.slane %v4745_v14, %v4719_v5  ;;  %p4363_p4 = pnand %p4362_p2, %p8444_p6  ;;  %s4365_s5 = sshll.u32 %s4468_s1, 4  ;;  %s4366_s5 = int_to_ptr.vmem [resolvable:$false] %s4365_s5 }
  0x8f   : > { %8358 = vst [vmem:[#allocation23_spill] sm:$0xff] %v4743_v13  ;;  %8359 = vst [vmem:[#allocation24_spill] sm:$0xff] %v4752_v17  ;;  %v4782_v26 = vrot.slane %v4745_v14, %v4722_v6  ;;  %v4786_v27 = vrot.slane %v4745_v14, %v4725_v7  ;;  %v4790_v28 = vrot.slane %v4745_v14, %v4728_v8  ;;  %s4367_s17 = scalar_lea.vmem %s4366_s5, 2048  ;;  %p4368_p8 = scmp.lt.s32.totalorder %s8199_s21, %s4366_s5 }
  0x90   : > { %8360 = vst [vmem:[#allocation25_spill] sm:$0xff] %v4755_v18  ;;  %8361 = vst [vmem:[#allocation26_spill] sm:$0xff] %v4758_v19  ;;  %v4794_v29 = vrot.slane %v4745_v14, %v4731_v9  ;;  %v697_v30 = vrot.slane %v4747_v15, %v4710_v2  ;;  %v701_v31 = vrot.slane %v4747_v15, %v4722_v6  ;;  %p4364_p7 = pneg %p4363_p4  ;;  %p4369_p9 = scmp.lt.s32.totalorder %s4367_s17, %s4361_s16 }
  0x91   : > { %8362 = vst [vmem:[#allocation27_spill] sm:$0xff] %v4782_v26  ;;  %8363 = vst [vmem:[#allocation28_spill] sm:$0xff] %v4790_v28  ;;  %v705_v32 = vrot.slane %v4749_v16, %v4710_v2  ;;  %v709_v33 = vrot.slane %v4749_v16, %v4722_v6  ;;  %v713_v34 = vrot.slane %v4760_v20, %v4710_v2 }
  0x92   : > { %v717_v35 = vrot.slane %v4760_v20, %v4722_v6  ;;  %v721_v36 = vrot.slane %v4762_v21, %v4710_v2  ;;  %v725_v37 = vrot.slane %v4762_v21, %v4722_v6  ;;  %v4813_v38 = vrot.slane %v697_v30, %v4710_v2  ;;  %p4370_p11 = por %p4369_p9, %p4368_p8 }
  0x93   : > { %v4816_v39 = vrot.slane %v701_v31, %v4710_v2  ;;  %v4819_v40 = vrot.slane %v705_v32, %v4710_v2  ;;  %v4822_v41 = vrot.slane %v709_v33, %v4710_v2  ;;  %v4825_v42 = vrot.slane %v713_v34, %v4710_v2 }
  0x94   : > { %v4828_v43 = vrot.slane %v717_v35, %v4710_v2  ;;  %v4831_v44 = vrot.slane %v721_v36, %v4710_v2  ;;  %v4834_v45 = vrot.slane %v725_v37, %v4710_v2  ;;  %v1314_v47 = vrot.slane %v4747_v15, %v4713_v3  ;;  %p4371_p13 = pnand %p4370_p11, %p4364_p7 }
  0x95   : > { %8364 = vst [vmem:[#allocation29_spill] sm:$0xff] %v4825_v42  ;;  %v1318_v48 = vrot.slane %v4747_v15, %v4725_v7  ;;  %v1322_v49 = vrot.slane %v4749_v16, %v4713_v3  ;;  %v1326_v50 = vrot.slane %v4749_v16, %v4725_v7  ;;  %v1330_v51 = vrot.slane %v4760_v20, %v4713_v3 }
  0x96   : > { %8365 = vst [vmem:[#allocation30_spill] sm:$0xff] %v4831_v44  ;;  %v1334_v52 = vrot.slane %v4760_v20, %v4725_v7  ;;  %v1338_v53 = vrot.slane %v4762_v21, %v4713_v3  ;;  %v4852_v54 = vrot.slane %v1022_v46, %v4710_v2  ;;  %v4855_v55 = vrot.slane %v1022_v46, %v4713_v3 }
  0x97   : > { %v4858_v56 = vrot.slane %v1022_v46, %v4716_v4  ;;  %v4861_v57 = vrot.slane %v1022_v46, %v4719_v5  ;;  %v4864_v58 = vrot.slane %v1022_v46, %v4722_v6  ;;  %v4867_v59 = vrot.slane %v1022_v46, %v4725_v7 }
  0x98   : > { %v4870_v60 = vrot.slane %v1022_v46, %v4728_v8  ;;  %v4873_v61 = vrot.slane %v1022_v46, %v4731_v9  ;;  %v1342_v62 = vrot.slane %v4762_v21, %v4725_v7  ;;  %v4878_v63 = vrot.slane %v1314_v47, %v4713_v3 }
  0x99   : > { %8366 = vst [vmem:[#allocation31_spill] sm:$0xff] %v4864_v58  ;;  %v4881_v0 = vrot.slane %v1318_v48, %v4713_v3  ;;  %v4884_v30 = vrot.slane %v1322_v49, %v4713_v3  ;;  %v4887_v31 = vrot.slane %v1326_v50, %v4713_v3  ;;  %v4890_v32 = vrot.slane %v1330_v51, %v4713_v3 }
  0x9a   : > { %8367 = vst [vmem:[#allocation32_spill] sm:$0xff] %v4870_v60  ;;  %8368 = vst [vmem:[#allocation33_spill] sm:$0xff] %v4873_v61  ;;  %v4893_v33 = vrot.slane %v1334_v52, %v4713_v3  ;;  %v4896_v34 = vrot.slane %v1338_v53, %v4713_v3  ;;  %v4899_v35 = vrot.slane %v1342_v62, %v4713_v3  ;;  %v1895_v36 = vadd.s32 16, %v4745_v14 }
  0x9b   : > { %8369 = vst [vmem:[#allocation34_spill] sm:$0xff] %v4890_v32  ;;  %v2187_v37 = vrot.slane %v4747_v15, %v4716_v4  ;;  %v2191_v46 = vrot.slane %v4747_v15, %v4728_v8  ;;  %v2195_v47 = vrot.slane %v4749_v16, %v4716_v4  ;;  %v2199_v48 = vrot.slane %v4749_v16, %v4728_v8 }
  0x9c   : > { %8370 = vst [vmem:[#allocation35_spill] sm:$0xff] %v4896_v34  ;;  %8371 = vst [vmem:[#allocation36_spill] sm:$0xff] %v4899_v35  ;;  %v2203_v49 = vrot.slane %v4760_v20, %v4716_v4  ;;  %v2207_v50 = vrot.slane %v4760_v20, %v4728_v8  ;;  %v4915_v51 = vrot.slane %v1895_v36, %v4710_v2 }
  0x9d   : > { %v4918_v52 = vrot.slane %v1895_v36, %v4713_v3  ;;  %v4921_v53 = vrot.slane %v1895_v36, %v4716_v4  ;;  %v4924_v62 = vrot.slane %v1895_v36, %v4719_v5  ;;  %v4927_v34 = vrot.slane %v1895_v36, %v4722_v6 }
  0x9e   : > { %v4930_v60 = vrot.slane %v1895_v36, %v4725_v7  ;;  %v4933_v44 = vrot.slane %v1895_v36, %v4728_v8  ;;  %v4936_v28 = vrot.slane %v1895_v36, %v4731_v9  ;;  %v2211_v32 = vrot.slane %v4762_v21, %v4716_v4 }
  0x9f   : > { %8372 = vst [vmem:[#allocation37_spill] sm:$0xff] %v4927_v34  ;;  %v2215_v42 = vrot.slane %v4762_v21, %v4728_v8  ;;  %v4943_v58 = vrot.slane %v2187_v37, %v4716_v4  ;;  %v4946_v34 = vrot.slane %v2191_v46, %v4716_v4  ;;  %v4949_v26 = vrot.slane %v2195_v47, %v4716_v4 }
  0xa0   : > { %8373 = vst [vmem:[#allocation38_spill] sm:$0xff] %v4933_v44  ;;  %8374 = vst [vmem:[#allocation39_spill] sm:$0xff] %v4936_v28  ;;  %v4952_v44 = vrot.slane %v2199_v48, %v4716_v4  ;;  %v4955_v36 = vrot.slane %v2203_v49, %v4716_v4  ;;  %v4958_v28 = vrot.slane %v2207_v50, %v4716_v4  ;;  %v2768_v46 = vadd.s32 17, %v4745_v14 }
  0xa1   : > { %v4961_v35 = vrot.slane %v2211_v32, %v4716_v4  ;;  %v4964_v37 = vrot.slane %v2215_v42, %v4716_v4  ;;  %v3060_v47 = vrot.slane %v4747_v15, %v4719_v5  ;;  %v3064_v48 = vrot.slane %v4747_v15, %v4731_v9 }
  0xa2   : > { %8375 = vst [vmem:[#allocation40_spill] sm:$0xff] %v4955_v36  ;;  %v3068_v49 = vrot.slane %v4749_v16, %v4719_v5  ;;  %v3072_v50 = vrot.slane %v4749_v16, %v4731_v9  ;;  %v3076_v32 = vrot.slane %v4760_v20, %v4719_v5  ;;  %v4978_v42 = vrot.slane %v2768_v46, %v4710_v2 }
  0xa3   : > { %8376 = vst [vmem:[#allocation41_spill] sm:$0xff] %v4961_v35  ;;  %8377 = vst [vmem:[#allocation42_spill] sm:$0xff] %v4964_v37  ;;  %v4981_v14 = vrot.slane %v2768_v46, %v4713_v3  ;;  %v4984_v35 = vrot.slane %v2768_v46, %v4716_v4  ;;  %v4987_v15 = vrot.slane %v2768_v46, %v4719_v5 }
  0xa4   : > { %v4990_v36 = vrot.slane %v2768_v46, %v4722_v6  ;;  %v4993_v16 = vrot.slane %v2768_v46, %v4725_v7  ;;  %v4996_v37 = vrot.slane %v2768_v46, %v4728_v8  ;;  %v4999_v2 = vrot.slane %v2768_v46, %v4731_v9 }
  0xa5   : > { %v3080_v3 = vrot.slane %v4760_v20, %v4731_v9  ;;  %v3084_v4 = vrot.slane %v4762_v21, %v4719_v5  ;;  %v3088_v61 = vrot.slane %v4762_v21, %v4731_v9  ;;  %v5008_v6 = vrot.slane %v3060_v47, %v4719_v5 }
  0xa6   : > { %8378 = vst [vmem:[#allocation43_spill] sm:$0xff] %v4990_v36  ;;  %8379 = vst [vmem:[#allocation44_spill] sm:$0xff] %v4996_v37  ;;  %v5011_v7 = vrot.slane %v3064_v48, %v4719_v5  ;;  %v5014_v8 = vrot.slane %v3068_v49, %v4719_v5  ;;  %v5017_v46 = vrot.slane %v3072_v50, %v4719_v5 }
  0xa7   : > { %8380 = vst [vmem:[#allocation45_spill] sm:$0xff] %v4999_v2  ;;  %v5020_v20 = vrot.slane %v3076_v32, %v4719_v5  ;;  %v5023_v37 = vrot.slane %v3080_v3, %v4719_v5  ;;  %v5026_v9 = vrot.slane %v3084_v4, %v4719_v5  ;;  %v5029_v21 = vrot.slane %v3088_v61, %v4719_v5 }
  0xa8   : > { %vm435_vm0 = vcmp.eq.s32.totalorder %v4707_v1, %v4770_v23  ;;  %vm443_vm1 = vcmp.eq.s32.totalorder %v4734_v10, %v4770_v23  ;;  %vm1056_vm2 = vcmp.eq.s32.totalorder %v4707_v1, %v4855_v55  ;;  %vm1064_vm3 = vcmp.eq.s32.totalorder %v4734_v10, %v4855_v55 }
  0xa9   : > { %8381 = vst [vmem:[#allocation46_spill] sm:$0xff] %v5020_v20  ;;  %8382 = vst [vmem:[#allocation47_spill] sm:$0xff] %v5026_v9  ;;  %v767_v47 = vsel %vm435_vm0, %v4816_v39, 0.0  ;;  %v775_v48 = vsel %vm443_vm1, %v4816_v39, 0.0  ;;  %v1384_v49 = vsel %vm1056_vm2, %v4881_v0, 0.0  ;;  %v1392_v5 = vsel %vm1064_vm3, %v4881_v0, 0.0 }
  0xaa   : > { %8383 = vst [vmem:[#allocation48_spill] sm:$0xff] %v5029_v21  ;;  %vm1929_vm4 = vcmp.eq.s32.totalorder %v4707_v1, %v4918_v52  ;;  %v1640_v61 = vadd.f32 %v1384_v49, %v767_v47  ;;  %v1648_v50 = vadd.f32 %v1392_v5, %v775_v48  ;;  %vm1937_vm5 = vcmp.eq.s32.totalorder %v4734_v10, %v4918_v52 }
  0xab   : > { %v2257_v32 = vsel %vm1929_vm4, %v4946_v34, 0.0  ;;  %v2265_v3 = vsel %vm1937_vm5, %v4946_v34, 0.0  ;;  %vm2802_vm6 = vcmp.eq.s32.totalorder %v4707_v1, %v4981_v14  ;;  %vm2810_vm7 = vcmp.eq.s32.totalorder %v4734_v10, %v4981_v14 }
  0xac   : > { %vm437_vm8 = vcmp.eq.s32.totalorder %v4707_v1, %v4778_v25  ;;  %v2513_v4 = vadd.f32 %v2257_v32, %v1640_v61  ;;  %v2521_v9 = vadd.f32 %v2265_v3, %v1648_v50  ;;  %v3130_v47 = vsel %vm2802_vm6, %v5011_v7, 0.0 }
  0xad   : > { %v3138_v48 = vsel %vm2810_vm7, %v5011_v7, 0.0  ;;  %vm445_vm9 = vcmp.eq.s32.totalorder %v4734_v10, %v4778_v25  ;;  %v769_v49 = vsel %vm437_vm8, %v4822_v41, 0.0  ;;  %vm1058_vm10 = vcmp.eq.s32.totalorder %v4707_v1, %v4861_v57 }
  0xae   : > { %vm1066_vm11 = vcmp.eq.s32.totalorder %v4734_v10, %v4861_v57  ;;  %v3386_v5 = vadd.f32 %v3130_v47, %v2513_v4  ;;  %v3394_v20 = vadd.f32 %v3138_v48, %v2521_v9  ;;  %v777_v61 = vsel %vm445_vm9, %v4822_v41, 0.0 }
  0xaf   : > { %v1386_v50 = vsel %vm1058_vm10, %v4887_v31, 0.0  ;;  %v1394_v32 = vsel %vm1066_vm11, %v4887_v31, 0.0  ;;  %vm1931_vm12 = vcmp.eq.s32.totalorder %v4707_v1, %v4924_v62  ;;  %vm1939_vm13 = vcmp.eq.s32.totalorder %v4734_v10, %v4924_v62 }
  0xb0   : > { %v1642_v3 = vadd.f32 %v1386_v50, %v769_v49  ;;  %v3650_v36 = vpack.c.bf16 %v3394_v20, %v3386_v5  ;;  %v1650_v21 = vadd.f32 %v1394_v32, %v777_v61  ;;  %v2259_v2 = vsel %vm1931_vm12, %v4952_v44, 0.0 }
  0xb1   : > { %v2267_v4 = vsel %vm1939_vm13, %v4952_v44, 0.0  ;;  %vm2804_vm14 = vcmp.eq.s32.totalorder %v4707_v1, %v4987_v15  ;;  %vm2812_vm15 = vcmp.eq.s32.totalorder %v4734_v10, %v4987_v15  ;;  %vm434_vm0 = vcmp.eq.s32.totalorder %v4707_v1, %v4766_v22 }
  0xb2   : > { %v2515_v9 = vadd.f32 %v2259_v2, %v1642_v3  ;;  %3784 = vmatprep.subr.bf16.mxu0 %v3650_v36  ;;  %v2523_v47 = vadd.f32 %v2267_v4, %v1650_v21  ;;  %v3132_v48 = vsel %vm2804_vm14, %v5017_v46, 0.0  ;;  %v3140_v20 = vsel %vm2812_vm15, %v5017_v46, 0.0 }
  0xb3   : > { %vm442_vm1 = vcmp.eq.s32.totalorder %v4734_v10, %v4766_v22  ;;  %v766_v2 = vsel %vm434_vm0, %v4813_v38, 0.0  ;;  %vm1055_vm2 = vcmp.eq.s32.totalorder %v4707_v1, %v4852_v54  ;;  %vm1063_vm3 = vcmp.eq.s32.totalorder %v4734_v10, %v4852_v54 }
  0xb4   : > { %v3388_v49 = vadd.f32 %v3132_v48, %v2515_v9  ;;  %v774_v5 = vsel %vm442_vm1, %v4813_v38, 0.0  ;;  %v3396_v61 = vadd.f32 %v3140_v20, %v2523_v47  ;;  %v1383_v36 = vsel %vm1055_vm2, %v4878_v63, 0.0 }
  0xb5   : > { %vm1928_vm4 = vcmp.eq.s32.totalorder %v4707_v1, %v4915_v51  ;;  %v1391_v21 = vsel %vm1063_vm3, %v4878_v63, 0.0  ;;  %v1639_v50 = vadd.f32 %v1383_v36, %v766_v2  ;;  %vm1936_vm5 = vcmp.eq.s32.totalorder %v4734_v10, %v4915_v51 }
  0xb6   : > { %v2256_v32 = vsel %vm1928_vm4, %v4943_v58, 0.0  ;;  %v3652_v3 = vpack.c.bf16 %v3396_v61, %v3388_v49  ;;  %v1647_v4 = vadd.f32 %v1391_v21, %v774_v5  ;;  %v2264_v9 = vsel %vm1936_vm5, %v4943_v58, 0.0 }
  0xb7   : > { %vm2801_vm6 = vcmp.eq.s32.totalorder %v4707_v1, %v4978_v42  ;;  %v2512_v47 = vadd.f32 %v2256_v32, %v1639_v50  ;;  %vm2809_vm7 = vcmp.eq.s32.totalorder %v4734_v10, %v4978_v42  ;;  %vm436_vm8 = vcmp.eq.s32.totalorder %v4707_v1, %v4774_v24 }
  0xb8   : > { %v3129_v48 = vsel %vm2801_vm6, %v5008_v6, 0.0  ;;  %3825 = vmatprep.subr.bf16.mxu1 %v3652_v3  ;;  %v2520_v20 = vadd.f32 %v2264_v9, %v1647_v4  ;;  %v3137_v2 = vsel %vm2809_vm7, %v5008_v6, 0.0  ;;  %vm444_vm9 = vcmp.eq.s32.totalorder %v4734_v10, %v4774_v24 }
  0xb9   : > { %v768_v49 = vsel %vm436_vm8, %v4819_v40, 0.0  ;;  %v3385_v5 = vadd.f32 %v3129_v48, %v2512_v47  ;;  %v776_v61 = vsel %vm444_vm9, %v4819_v40, 0.0  ;;  %vm1057_vm10 = vcmp.eq.s32.totalorder %v4707_v1, %v4858_v56 }
  0xba   : > { %vm1065_vm11 = vcmp.eq.s32.totalorder %v4734_v10, %v4858_v56  ;;  %v3393_v36 = vadd.f32 %v3137_v2, %v2520_v20  ;;  %v1385_v21 = vsel %vm1057_vm10, %v4884_v30, 0.0  ;;  %vm1930_vm12 = vcmp.eq.s32.totalorder %v4707_v1, %v4921_v53 }
  0xbb   : > { %v1393_v50 = vsel %vm1065_vm11, %v4884_v30, 0.0  ;;  %v1641_v32 = vadd.f32 %v1385_v21, %v768_v49  ;;  %vm1938_vm13 = vcmp.eq.s32.totalorder %v4734_v10, %v4921_v53  ;;  %v2258_v4 = vsel %vm1930_vm12, %v4949_v26, 0.0 }
  0xbc   : > { %v1649_v3 = vadd.f32 %v1393_v50, %v776_v61  ;;  %v3649_v9 = vpack.c.bf16 %v3393_v36, %v3385_v5  ;;  %v2266_v47 = vsel %vm1938_vm13, %v4949_v26, 0.0  ;;  %vm2803_vm14 = vcmp.eq.s32.totalorder %v4707_v1, %v4984_v35 }
  0xbd   : > { %vm2811_vm15 = vcmp.eq.s32.totalorder %v4734_v10, %v4984_v35  ;;  %v2514_v48 = vadd.f32 %v2258_v4, %v1641_v32  ;;  %v3131_v2 = vsel %vm2803_vm14, %v5014_v8, 0.0  ;;  %vm451_vm0 = vcmp.eq.s32.totalorder %v4737_v11, %v4770_v23 }
  0xbe   : > { %v2522_v20 = vadd.f32 %v2266_v47, %v1649_v3  ;;  %v3139_v49 = vsel %vm2811_vm15, %v5014_v8, 0.0  ;;  %3785 = vmatpush1.bf16.msra.mxu0 %v3649_v9  ;;  %vm459_vm1 = vcmp.eq.s32.totalorder %v4740_v12, %v4770_v23  ;;  %vm1072_vm2 = vcmp.eq.s32.totalorder %v4737_v11, %v4855_v55 }
  0xbf   : > { %vm1080_vm3 = vcmp.eq.s32.totalorder %v4740_v12, %v4855_v55  ;;  %v3387_v5 = vadd.f32 %v3131_v2, %v2514_v48  ;;  %v783_v36 = vsel %vm451_vm0, %v4816_v39, 0.0  ;;  %v791_v21 = vsel %vm459_vm1, %v4816_v39, 0.0 }
  0xc0   : > { %v3395_v61 = vadd.f32 %v3139_v49, %v2522_v20  ;;  %v1400_v50 = vsel %vm1072_vm2, %v4881_v0, 0.0  ;;  %v1408_v32 = vsel %vm1080_vm3, %v4881_v0, 0.0  ;;  %vm1945_vm4 = vcmp.eq.s32.totalorder %v4737_v11, %v4918_v52 }
  0xc1   : > { %vm1953_vm5 = vcmp.eq.s32.totalorder %v4740_v12, %v4918_v52  ;;  %v1656_v4 = vadd.f32 %v1400_v50, %v783_v36  ;;  %v1664_v9 = vadd.f32 %v1408_v32, %v791_v21  ;;  %v2273_v47 = vsel %vm1945_vm4, %v4946_v34, 0.0 }
  0xc2   : > { %v3651_v3 = vpack.c.bf16 %v3395_v61, %v3387_v5  ;;  %v2281_v48 = vsel %vm1953_vm5, %v4946_v34, 0.0  ;;  %vm2818_vm6 = vcmp.eq.s32.totalorder %v4737_v11, %v4981_v14  ;;  %vm2826_vm7 = vcmp.eq.s32.totalorder %v4740_v12, %v4981_v14 }
  0xc3   : > { %vm453_vm8 = vcmp.eq.s32.totalorder %v4737_v11, %v4778_v25  ;;  %v2529_v20 = vadd.f32 %v2273_v47, %v1656_v4  ;;  %v2537_v2 = vadd.f32 %v2281_v48, %v1664_v9  ;;  %v3146_v49 = vsel %vm2818_vm6, %v5011_v7, 0.0 }
  0xc4   : > { %3826 = vmatpush1.bf16.msra.mxu1 %v3651_v3  ;;  %v3154_v5 = vsel %vm2826_vm7, %v5011_v7, 0.0  ;;  %vm461_vm9 = vcmp.eq.s32.totalorder %v4740_v12, %v4778_v25  ;;  %v785_v61 = vsel %vm453_vm8, %v4822_v41, 0.0  ;;  %vm1074_vm10 = vcmp.eq.s32.totalorder %v4737_v11, %v4861_v57 }
  0xc5   : > { %vm1082_vm11 = vcmp.eq.s32.totalorder %v4740_v12, %v4861_v57  ;;  %v3402_v36 = vadd.f32 %v3146_v49, %v2529_v20  ;;  %v3410_v21 = vadd.f32 %v3154_v5, %v2537_v2  ;;  %v793_v50 = vsel %vm461_vm9, %v4822_v41, 0.0 }
  0xc6   : > { %v1402_v32 = vsel %vm1074_vm10, %v4887_v31, 0.0  ;;  %v1410_v3 = vsel %vm1082_vm11, %v4887_v31, 0.0  ;;  %vm1947_vm12 = vcmp.eq.s32.totalorder %v4737_v11, %v4924_v62  ;;  %vm1955_vm13 = vcmp.eq.s32.totalorder %v4740_v12, %v4924_v62 }
  0xc7   : > { %v1658_v4 = vadd.f32 %v1402_v32, %v785_v61  ;;  %v3658_v9 = vpack.c.bf16 %v3410_v21, %v3402_v36  ;;  %v1666_v47 = vadd.f32 %v1410_v3, %v793_v50  ;;  %v2275_v48 = vsel %vm1947_vm12, %v4952_v44, 0.0 }
  0xc8   : > { %v2283_v20 = vsel %vm1955_vm13, %v4952_v44, 0.0  ;;  %vm2820_vm14 = vcmp.eq.s32.totalorder %v4737_v11, %v4987_v15  ;;  %vm2828_vm15 = vcmp.eq.s32.totalorder %v4740_v12, %v4987_v15  ;;  %vm450_vm0 = vcmp.eq.s32.totalorder %v4737_v11, %v4766_v22 }
  0xc9   : > { %v2531_v2 = vadd.f32 %v2275_v48, %v1658_v4  ;;  %3786 = vmatprep.subr.bf16.mxu0 %v3658_v9  ;;  %v2539_v49 = vadd.f32 %v2283_v20, %v1666_v47  ;;  %v3148_v5 = vsel %vm2820_vm14, %v5017_v46, 0.0  ;;  %v3156_v61 = vsel %vm2828_vm15, %v5017_v46, 0.0 }
  0xca   : > { %vm458_vm1 = vcmp.eq.s32.totalorder %v4740_v12, %v4766_v22  ;;  %v782_v21 = vsel %vm450_vm0, %v4813_v38, 0.0  ;;  %vm1071_vm2 = vcmp.eq.s32.totalorder %v4737_v11, %v4852_v54  ;;  %vm1079_vm3 = vcmp.eq.s32.totalorder %v4740_v12, %v4852_v54 }
  0xcb   : > { %v3404_v36 = vadd.f32 %v3148_v5, %v2531_v2  ;;  %v790_v50 = vsel %vm458_vm1, %v4813_v38, 0.0  ;;  %v3412_v32 = vadd.f32 %v3156_v61, %v2539_v49  ;;  %v1399_v3 = vsel %vm1071_vm2, %v4878_v63, 0.0 }
  0xcc   : > { %vm1944_vm4 = vcmp.eq.s32.totalorder %v4737_v11, %v4915_v51  ;;  %v1407_v4 = vsel %vm1079_vm3, %v4878_v63, 0.0  ;;  %v1655_v9 = vadd.f32 %v1399_v3, %v782_v21  ;;  %vm1952_vm5 = vcmp.eq.s32.totalorder %v4740_v12, %v4915_v51 }
  0xcd   : > { %v2272_v47 = vsel %vm1944_vm4, %v4943_v58, 0.0  ;;  %v3660_v48 = vpack.c.bf16 %v3412_v32, %v3404_v36  ;;  %v1663_v20 = vadd.f32 %v1407_v4, %v790_v50  ;;  %v2280_v2 = vsel %vm1952_vm5, %v4943_v58, 0.0 }
  0xce   : > { %vm2817_vm6 = vcmp.eq.s32.totalorder %v4737_v11, %v4978_v42  ;;  %v2528_v49 = vadd.f32 %v2272_v47, %v1655_v9  ;;  %vm2825_vm7 = vcmp.eq.s32.totalorder %v4740_v12, %v4978_v42  ;;  %vm452_vm8 = vcmp.eq.s32.totalorder %v4737_v11, %v4774_v24 }
  0xcf   : > { %v3145_v5 = vsel %vm2817_vm6, %v5008_v6, 0.0  ;;  %3827 = vmatprep.subr.bf16.mxu1 %v3660_v48  ;;  %v2536_v61 = vadd.f32 %v2280_v2, %v1663_v20  ;;  %v3153_v21 = vsel %vm2825_vm7, %v5008_v6, 0.0  ;;  %vm460_vm9 = vcmp.eq.s32.totalorder %v4740_v12, %v4774_v24 }
  0xd0   : > { %v784_v36 = vsel %vm452_vm8, %v4819_v40, 0.0  ;;  %v3401_v50 = vadd.f32 %v3145_v5, %v2528_v49  ;;  %v792_v32 = vsel %vm460_vm9, %v4819_v40, 0.0  ;;  %vm1073_vm10 = vcmp.eq.s32.totalorder %v4737_v11, %v4858_v56 }
  0xd1   : > { %vm1081_vm11 = vcmp.eq.s32.totalorder %v4740_v12, %v4858_v56  ;;  %v3409_v3 = vadd.f32 %v3153_v21, %v2536_v61  ;;  %v1401_v4 = vsel %vm1073_vm10, %v4884_v30, 0.0  ;;  %vm1946_vm12 = vcmp.eq.s32.totalorder %v4737_v11, %v4921_v53 }
  0xd2   : > { %v1409_v9 = vsel %vm1081_vm11, %v4884_v30, 0.0  ;;  %v1657_v47 = vadd.f32 %v1401_v4, %v784_v36  ;;  %vm1954_vm13 = vcmp.eq.s32.totalorder %v4740_v12, %v4921_v53  ;;  %v2274_v20 = vsel %vm1946_vm12, %v4949_v26, 0.0 }
  0xd3   : > { %v1665_v48 = vadd.f32 %v1409_v9, %v792_v32  ;;  %v3657_v2 = vpack.c.bf16 %v3409_v3, %v3401_v50  ;;  %v2282_v49 = vsel %vm1954_vm13, %v4949_v26, 0.0  ;;  %vm2819_vm14 = vcmp.eq.s32.totalorder %v4737_v11, %v4984_v35 }
  0xd4   : > { %vm2827_vm15 = vcmp.eq.s32.totalorder %v4740_v12, %v4984_v35  ;;  %v2530_v5 = vadd.f32 %v2274_v20, %v1657_v47  ;;  %v3147_v21 = vsel %vm2819_vm14, %v5014_v8, 0.0  ;;  %vm467_vm0 = vcmp.eq.s32.totalorder %v4743_v13, %v4770_v23 }
  0xd5   : > { %v2538_v61 = vadd.f32 %v2282_v49, %v1665_v48  ;;  %v3155_v36 = vsel %vm2827_vm15, %v5014_v8, 0.0  ;;  %3787 = vmatpush1.bf16.msra.mxu0 %v3657_v2  ;;  %vm475_vm1 = vcmp.eq.s32.totalorder %v4752_v17, %v4770_v23  ;;  %vm1088_vm2 = vcmp.eq.s32.totalorder %v4743_v13, %v4855_v55 }
  0xd6   : > { %vm1096_vm3 = vcmp.eq.s32.totalorder %v4752_v17, %v4855_v55  ;;  %v3403_v50 = vadd.f32 %v3147_v21, %v2530_v5  ;;  %v799_v3 = vsel %vm467_vm0, %v4816_v39, 0.0  ;;  %v807_v4 = vsel %vm475_vm1, %v4816_v39, 0.0 }
  0xd7   : > { %v3411_v32 = vadd.f32 %v3155_v36, %v2538_v61  ;;  %v1416_v9 = vsel %vm1088_vm2, %v4881_v0, 0.0  ;;  %v1424_v47 = vsel %vm1096_vm3, %v4881_v0, 0.0  ;;  %vm1961_vm4 = vcmp.eq.s32.totalorder %v4743_v13, %v4918_v52 }
  0xd8   : > { %vm1969_vm5 = vcmp.eq.s32.totalorder %v4752_v17, %v4918_v52  ;;  %v1672_v20 = vadd.f32 %v1416_v9, %v799_v3  ;;  %v1680_v2 = vadd.f32 %v1424_v47, %v807_v4  ;;  %v2289_v49 = vsel %vm1961_vm4, %v4946_v34, 0.0 }
  0xd9   : > { %v3659_v48 = vpack.c.bf16 %v3411_v32, %v3403_v50  ;;  %v2297_v5 = vsel %vm1969_vm5, %v4946_v34, 0.0  ;;  %vm2834_vm6 = vcmp.eq.s32.totalorder %v4743_v13, %v4981_v14  ;;  %vm2842_vm7 = vcmp.eq.s32.totalorder %v4752_v17, %v4981_v14 }
  0xda   : > { %vm469_vm8 = vcmp.eq.s32.totalorder %v4743_v13, %v4778_v25  ;;  %v2545_v61 = vadd.f32 %v2289_v49, %v1672_v20  ;;  %v2553_v21 = vadd.f32 %v2297_v5, %v1680_v2  ;;  %v3162_v36 = vsel %vm2834_vm6, %v5011_v7, 0.0 }
  0xdb   : > { %3828 = vmatpush1.bf16.msra.mxu1 %v3659_v48  ;;  %v3170_v50 = vsel %vm2842_vm7, %v5011_v7, 0.0  ;;  %vm477_vm9 = vcmp.eq.s32.totalorder %v4752_v17, %v4778_v25  ;;  %v801_v32 = vsel %vm469_vm8, %v4822_v41, 0.0  ;;  %vm1090_vm10 = vcmp.eq.s32.totalorder %v4743_v13, %v4861_v57 }
  0xdc   : > { %vm1098_vm11 = vcmp.eq.s32.totalorder %v4752_v17, %v4861_v57  ;;  %v3418_v3 = vadd.f32 %v3162_v36, %v2545_v61  ;;  %v3426_v4 = vadd.f32 %v3170_v50, %v2553_v21  ;;  %v809_v9 = vsel %vm477_vm9, %v4822_v41, 0.0 }
  0xdd   : > { %v1418_v47 = vsel %vm1090_vm10, %v4887_v31, 0.0  ;;  %v1426_v48 = vsel %vm1098_vm11, %v4887_v31, 0.0  ;;  %vm1963_vm12 = vcmp.eq.s32.totalorder %v4743_v13, %v4924_v62  ;;  %vm1971_vm13 = vcmp.eq.s32.totalorder %v4752_v17, %v4924_v62 }
  0xde   : > { %v1674_v20 = vadd.f32 %v1418_v47, %v801_v32  ;;  %v3666_v2 = vpack.c.bf16 %v3426_v4, %v3418_v3  ;;  %v1682_v49 = vadd.f32 %v1426_v48, %v809_v9  ;;  %v2291_v5 = vsel %vm1963_vm12, %v4952_v44, 0.0 }
  0xdf   : > { %v2299_v61 = vsel %vm1971_vm13, %v4952_v44, 0.0  ;;  %vm2836_vm14 = vcmp.eq.s32.totalorder %v4743_v13, %v4987_v15  ;;  %vm2844_vm15 = vcmp.eq.s32.totalorder %v4752_v17, %v4987_v15  ;;  %vm466_vm0 = vcmp.eq.s32.totalorder %v4743_v13, %v4766_v22 }
  0xe0   : > { %v2547_v21 = vadd.f32 %v2291_v5, %v1674_v20  ;;  %3788 = vmatprep.subr.bf16.mxu0 %v3666_v2  ;;  %v2555_v36 = vadd.f32 %v2299_v61, %v1682_v49  ;;  %v3164_v50 = vsel %vm2836_vm14, %v5017_v46, 0.0  ;;  %v3172_v32 = vsel %vm2844_vm15, %v5017_v46, 0.0 }
  0xe1   : > { %vm474_vm1 = vcmp.eq.s32.totalorder %v4752_v17, %v4766_v22  ;;  %v798_v4 = vsel %vm466_vm0, %v4813_v38, 0.0  ;;  %vm1087_vm2 = vcmp.eq.s32.totalorder %v4743_v13, %v4852_v54  ;;  %vm1095_vm3 = vcmp.eq.s32.totalorder %v4752_v17, %v4852_v54 }
  0xe2   : > { %v3420_v3 = vadd.f32 %v3164_v50, %v2547_v21  ;;  %v806_v9 = vsel %vm474_vm1, %v4813_v38, 0.0  ;;  %v3428_v47 = vadd.f32 %v3172_v32, %v2555_v36  ;;  %v1415_v48 = vsel %vm1087_vm2, %v4878_v63, 0.0 }
  0xe3   : > { %vm1960_vm4 = vcmp.eq.s32.totalorder %v4743_v13, %v4915_v51  ;;  %v1423_v20 = vsel %vm1095_vm3, %v4878_v63, 0.0  ;;  %v1671_v2 = vadd.f32 %v1415_v48, %v798_v4  ;;  %vm1968_vm5 = vcmp.eq.s32.totalorder %v4752_v17, %v4915_v51 }
  0xe4   : > { %v2288_v49 = vsel %vm1960_vm4, %v4943_v58, 0.0  ;;  %v3668_v5 = vpack.c.bf16 %v3428_v47, %v3420_v3  ;;  %v1679_v61 = vadd.f32 %v1423_v20, %v806_v9  ;;  %v2296_v21 = vsel %vm1968_vm5, %v4943_v58, 0.0 }
  0xe5   : > { %vm2833_vm6 = vcmp.eq.s32.totalorder %v4743_v13, %v4978_v42  ;;  %v2544_v36 = vadd.f32 %v2288_v49, %v1671_v2  ;;  %vm2841_vm7 = vcmp.eq.s32.totalorder %v4752_v17, %v4978_v42  ;;  %vm468_vm8 = vcmp.eq.s32.totalorder %v4743_v13, %v4774_v24 }
  0xe6   : > { %v3161_v50 = vsel %vm2833_vm6, %v5008_v6, 0.0  ;;  %3829 = vmatprep.subr.bf16.mxu1 %v3668_v5  ;;  %v2552_v32 = vadd.f32 %v2296_v21, %v1679_v61  ;;  %v3169_v4 = vsel %vm2841_vm7, %v5008_v6, 0.0  ;;  %vm476_vm9 = vcmp.eq.s32.totalorder %v4752_v17, %v4774_v24 }
  0xe7   : > { %v800_v3 = vsel %vm468_vm8, %v4819_v40, 0.0  ;;  %v3417_v9 = vadd.f32 %v3161_v50, %v2544_v36  ;;  %v808_v47 = vsel %vm476_vm9, %v4819_v40, 0.0  ;;  %vm1089_vm10 = vcmp.eq.s32.totalorder %v4743_v13, %v4858_v56 }
  0xe8   : > { %vm1097_vm11 = vcmp.eq.s32.totalorder %v4752_v17, %v4858_v56  ;;  %v3425_v48 = vadd.f32 %v3169_v4, %v2552_v32  ;;  %v1417_v20 = vsel %vm1089_vm10, %v4884_v30, 0.0  ;;  %vm1962_vm12 = vcmp.eq.s32.totalorder %v4743_v13, %v4921_v53 }
  0xe9   : > { %v1425_v2 = vsel %vm1097_vm11, %v4884_v30, 0.0  ;;  %v1673_v49 = vadd.f32 %v1417_v20, %v800_v3  ;;  %vm1970_vm13 = vcmp.eq.s32.totalorder %v4752_v17, %v4921_v53  ;;  %v2290_v61 = vsel %vm1962_vm12, %v4949_v26, 0.0 }
  0xea   : > { %v1681_v5 = vadd.f32 %v1425_v2, %v808_v47  ;;  %v3665_v21 = vpack.c.bf16 %v3425_v48, %v3417_v9  ;;  %v2298_v36 = vsel %vm1970_vm13, %v4949_v26, 0.0  ;;  %vm2835_vm14 = vcmp.eq.s32.totalorder %v4743_v13, %v4984_v35 }
  0xeb   : > { %vm2843_vm15 = vcmp.eq.s32.totalorder %v4752_v17, %v4984_v35  ;;  %v2546_v50 = vadd.f32 %v2290_v61, %v1673_v49  ;;  %v3163_v4 = vsel %vm2835_vm14, %v5014_v8, 0.0  ;;  %vm483_vm0 = vcmp.eq.s32.totalorder %v4755_v18, %v4770_v23 }
  0xec   : > { %v2554_v32 = vadd.f32 %v2298_v36, %v1681_v5  ;;  %v3171_v3 = vsel %vm2843_vm15, %v5014_v8, 0.0  ;;  %3789 = vmatpush1.bf16.msra.mxu0 %v3665_v21  ;;  %vm491_vm1 = vcmp.eq.s32.totalorder %v4758_v19, %v4770_v23  ;;  %vm1104_vm2 = vcmp.eq.s32.totalorder %v4755_v18, %v4855_v55 }
  0xed   : > { %vm1112_vm3 = vcmp.eq.s32.totalorder %v4758_v19, %v4855_v55  ;;  %v3419_v9 = vadd.f32 %v3163_v4, %v2546_v50  ;;  %v815_v48 = vsel %vm483_vm0, %v4816_v39, 0.0  ;;  %v823_v20 = vsel %vm491_vm1, %v4816_v39, 0.0 }
  0xee   : > { %v3427_v47 = vadd.f32 %v3171_v3, %v2554_v32  ;;  %v1432_v2 = vsel %vm1104_vm2, %v4881_v0, 0.0  ;;  %v1440_v49 = vsel %vm1112_vm3, %v4881_v0, 0.0  ;;  %vm1977_vm4 = vcmp.eq.s32.totalorder %v4755_v18, %v4918_v52 }
  0xef   : > { %vm1985_vm5 = vcmp.eq.s32.totalorder %v4758_v19, %v4918_v52  ;;  %v1688_v61 = vadd.f32 %v1432_v2, %v815_v48  ;;  %v1696_v21 = vadd.f32 %v1440_v49, %v823_v20  ;;  %v2305_v36 = vsel %vm1977_vm4, %v4946_v34, 0.0 }
  0xf0   : > { %v3667_v5 = vpack.c.bf16 %v3427_v47, %v3419_v9  ;;  %v2313_v50 = vsel %vm1985_vm5, %v4946_v34, 0.0  ;;  %vm2850_vm6 = vcmp.eq.s32.totalorder %v4755_v18, %v4981_v14  ;;  %vm2858_vm7 = vcmp.eq.s32.totalorder %v4758_v19, %v4981_v14 }
  0xf1   : > { %vm485_vm8 = vcmp.eq.s32.totalorder %v4755_v18, %v4778_v25  ;;  %v2561_v32 = vadd.f32 %v2305_v36, %v1688_v61  ;;  %v2569_v4 = vadd.f32 %v2313_v50, %v1696_v21  ;;  %v3178_v3 = vsel %vm2850_vm6, %v5011_v7, 0.0 }
  0xf2   : > { %3830 = vmatpush1.bf16.msra.mxu1 %v3667_v5  ;;  %v3186_v9 = vsel %vm2858_vm7, %v5011_v7, 0.0  ;;  %vm493_vm9 = vcmp.eq.s32.totalorder %v4758_v19, %v4778_v25  ;;  %v817_v47 = vsel %vm485_vm8, %v4822_v41, 0.0  ;;  %vm1106_vm10 = vcmp.eq.s32.totalorder %v4755_v18, %v4861_v57 }
  0xf3   : > { %vm1114_vm11 = vcmp.eq.s32.totalorder %v4758_v19, %v4861_v57  ;;  %v3434_v48 = vadd.f32 %v3178_v3, %v2561_v32  ;;  %v3442_v20 = vadd.f32 %v3186_v9, %v2569_v4  ;;  %v825_v2 = vsel %vm493_vm9, %v4822_v41, 0.0 }
  0xf4   : > { %v1434_v49 = vsel %vm1106_vm10, %v4887_v31, 0.0  ;;  %v1442_v5 = vsel %vm1114_vm11, %v4887_v31, 0.0  ;;  %vm1979_vm12 = vcmp.eq.s32.totalorder %v4755_v18, %v4924_v62  ;;  %vm1987_vm13 = vcmp.eq.s32.totalorder %v4758_v19, %v4924_v62 }
  0xf5   : > { %v1690_v61 = vadd.f32 %v1434_v49, %v817_v47  ;;  %v3674_v21 = vpack.c.bf16 %v3442_v20, %v3434_v48  ;;  %v1698_v36 = vadd.f32 %v1442_v5, %v825_v2  ;;  %v2307_v50 = vsel %vm1979_vm12, %v4952_v44, 0.0 }
  0xf6   : > { %v2315_v32 = vsel %vm1987_vm13, %v4952_v44, 0.0  ;;  %vm2852_vm14 = vcmp.eq.s32.totalorder %v4755_v18, %v4987_v15  ;;  %vm2860_vm15 = vcmp.eq.s32.totalorder %v4758_v19, %v4987_v15  ;;  %vm482_vm0 = vcmp.eq.s32.totalorder %v4755_v18, %v4766_v22 }
  0xf7   : > { %v2563_v4 = vadd.f32 %v2307_v50, %v1690_v61  ;;  %3790 = vmatprep.subr.bf16.mxu0 %v3674_v21  ;;  %v2571_v3 = vadd.f32 %v2315_v32, %v1698_v36  ;;  %v3180_v9 = vsel %vm2852_vm14, %v5017_v46, 0.0  ;;  %v3188_v47 = vsel %vm2860_vm15, %v5017_v46, 0.0 }
  0xf8   : > { %vm490_vm1 = vcmp.eq.s32.totalorder %v4758_v19, %v4766_v22  ;;  %v814_v20 = vsel %vm482_vm0, %v4813_v38, 0.0  ;;  %vm1103_vm2 = vcmp.eq.s32.totalorder %v4755_v18, %v4852_v54  ;;  %vm1111_vm3 = vcmp.eq.s32.totalorder %v4758_v19, %v4852_v54 }
  0xf9   : > { %v3436_v48 = vadd.f32 %v3180_v9, %v2563_v4  ;;  %v822_v2 = vsel %vm490_vm1, %v4813_v38, 0.0  ;;  %v3444_v49 = vadd.f32 %v3188_v47, %v2571_v3  ;;  %v1431_v5 = vsel %vm1103_vm2, %v4878_v63, 0.0 }
  0xfa   : > { %vm1976_vm4 = vcmp.eq.s32.totalorder %v4755_v18, %v4915_v51  ;;  %v1439_v61 = vsel %vm1111_vm3, %v4878_v63, 0.0  ;;  %v1687_v21 = vadd.f32 %v1431_v5, %v814_v20  ;;  %vm1984_vm5 = vcmp.eq.s32.totalorder %v4758_v19, %v4915_v51 }
  0xfb   : > { %v2304_v36 = vsel %vm1976_vm4, %v4943_v58, 0.0  ;;  %v3676_v50 = vpack.c.bf16 %v3444_v49, %v3436_v48  ;;  %v1695_v32 = vadd.f32 %v1439_v61, %v822_v2  ;;  %v2312_v4 = vsel %vm1984_vm5, %v4943_v58, 0.0 }
  0xfc   : > { %vm2849_vm6 = vcmp.eq.s32.totalorder %v4755_v18, %v4978_v42  ;;  %v2560_v3 = vadd.f32 %v2304_v36, %v1687_v21  ;;  %vm2857_vm7 = vcmp.eq.s32.totalorder %v4758_v19, %v4978_v42  ;;  %vm484_vm8 = vcmp.eq.s32.totalorder %v4755_v18, %v4774_v24 }
  0xfd   : > { %v3177_v9 = vsel %vm2849_vm6, %v5008_v6, 0.0  ;;  %3831 = vmatprep.subr.bf16.mxu1 %v3676_v50  ;;  %v2568_v47 = vadd.f32 %v2312_v4, %v1695_v32  ;;  %v3185_v20 = vsel %vm2857_vm7, %v5008_v6, 0.0  ;;  %vm492_vm9 = vcmp.eq.s32.totalorder %v4758_v19, %v4774_v24 }
  0xfe   : > { %v816_v48 = vsel %vm484_vm8, %v4819_v40, 0.0  ;;  %v3433_v2 = vadd.f32 %v3177_v9, %v2560_v3  ;;  %v824_v49 = vsel %vm492_vm9, %v4819_v40, 0.0  ;;  %vm1105_vm10 = vcmp.eq.s32.totalorder %v4755_v18, %v4858_v56 }
  0xff   : > { %vm1113_vm11 = vcmp.eq.s32.totalorder %v4758_v19, %v4858_v56  ;;  %v3441_v5 = vadd.f32 %v3185_v20, %v2568_v47  ;;  %v1433_v61 = vsel %vm1105_vm10, %v4884_v30, 0.0  ;;  %vm1978_vm12 = vcmp.eq.s32.totalorder %v4755_v18, %v4921_v53 }
 0x100   : > { %v1441_v21 = vsel %vm1113_vm11, %v4884_v30, 0.0  ;;  %v1689_v36 = vadd.f32 %v1433_v61, %v816_v48  ;;  %vm1986_vm13 = vcmp.eq.s32.totalorder %v4758_v19, %v4921_v53  ;;  %v2306_v32 = vsel %vm1978_vm12, %v4949_v26, 0.0 }
 0x101   : > { %v1697_v50 = vadd.f32 %v1441_v21, %v824_v49  ;;  %v3673_v4 = vpack.c.bf16 %v3441_v5, %v3433_v2  ;;  %v2314_v3 = vsel %vm1986_vm13, %v4949_v26, 0.0  ;;  %vm2851_vm14 = vcmp.eq.s32.totalorder %v4755_v18, %v4984_v35 }
 0x102   : > { %vm2859_vm15 = vcmp.eq.s32.totalorder %v4758_v19, %v4984_v35  ;;  %v2562_v9 = vadd.f32 %v2306_v32, %v1689_v36  ;;  %v3179_v20 = vsel %vm2851_vm14, %v5014_v8, 0.0  ;;  %v5416_v49 = vadd.s32 64, %v4707_v1 }
 0x103   : > { %v2570_v47 = vadd.f32 %v2314_v3, %v1697_v50  ;;  %v3187_v48 = vsel %vm2859_vm15, %v5014_v8, 0.0  ;;  %3791 = vmatpush1.bf16.msra.mxu0 %v3673_v4  ;;  %v5419_v2 = vadd.s32 72, %v4707_v1  ;;  %v5422_v5 = vadd.s32 80, %v4707_v1 }
 0x104   : > { %8384 = vst [vmem:[#allocation49_spill] sm:$0xff] %v5416_v49  ;;  %v5425_v61 = vadd.s32 88, %v4707_v1  ;;  %v3435_v21 = vadd.f32 %v3179_v20, %v2562_v9  ;;  %v5428_v50 = vadd.s32 96, %v4707_v1  ;;  %v5431_v32 = vadd.s32 104, %v4707_v1 }
 0x105   : > { %8385 = vst [vmem:[#allocation50_spill] sm:$0xff] %v5419_v2  ;;  %8386 = vst [vmem:[#allocation51_spill] sm:$0xff] %v5422_v5  ;;  %v3443_v36 = vadd.f32 %v3187_v48, %v2570_v47  ;;  %vm499_vm0 = vcmp.eq.s32.totalorder %v5416_v49, %v4770_v23  ;;  %vm507_vm1 = vcmp.eq.s32.totalorder %v5419_v2, %v4770_v23 }
 0x106   : > { %8387 = vst [vmem:[#allocation52_spill] sm:$0xff] %v5425_v61  ;;  %8388 = vst [vmem:[#allocation53_spill] sm:$0xff] %v5428_v50  ;;  %vm1120_vm2 = vcmp.eq.s32.totalorder %v5416_v49, %v4855_v55  ;;  %vm1128_vm3 = vcmp.eq.s32.totalorder %v5419_v2, %v4855_v55  ;;  %v831_v3 = vsel %vm499_vm0, %v4816_v39, 0.0  ;;  %v839_v9 = vsel %vm507_vm1, %v4816_v39, 0.0 }
 0x107   : > { %8389 = vst [vmem:[#allocation54_spill] sm:$0xff] %v5431_v32  ;;  %v3675_v4 = vpack.c.bf16 %v3443_v36, %v3435_v21  ;;  %v1448_v47 = vsel %vm1120_vm2, %v4881_v0, 0.0  ;;  %v1456_v20 = vsel %vm1128_vm3, %v4881_v0, 0.0  ;;  %vm1993_vm4 = vcmp.eq.s32.totalorder %v5416_v49, %v4918_v52 }
 0x108   : > { %v1704_v48 = vadd.f32 %v1448_v47, %v831_v3  ;;  %vm2001_vm5 = vcmp.eq.s32.totalorder %v5419_v2, %v4918_v52  ;;  %v1712_v19 = vadd.f32 %v1456_v20, %v839_v9  ;;  %v2321_v18 = vsel %vm1993_vm4, %v4946_v34, 0.0 }
 0x109   : > { %3832 = vmatpush1.bf16.msra.mxu1 %v3675_v4  ;;  %v2329_v21 = vsel %vm2001_vm5, %v4946_v34, 0.0  ;;  %vm2866_vm6 = vcmp.eq.s32.totalorder %v5416_v49, %v4981_v14  ;;  %vm2874_vm7 = vcmp.eq.s32.totalorder %v5419_v2, %v4981_v14  ;;  %vm501_vm8 = vcmp.eq.s32.totalorder %v5416_v49, %v4778_v25 }
 0x10a   : > { %v2577_v36 = vadd.f32 %v2321_v18, %v1704_v48  ;;  %v3194_v3 = vsel %vm2866_vm6, %v5011_v7, 0.0  ;;  %v2585_v47 = vadd.f32 %v2329_v21, %v1712_v19  ;;  %v3202_v4 = vsel %vm2874_vm7, %v5011_v7, 0.0 }
 0x10b   : > { %vm509_vm9 = vcmp.eq.s32.totalorder %v5419_v2, %v4778_v25  ;;  %v833_v9 = vsel %vm501_vm8, %v4822_v41, 0.0  ;;  %vm1122_vm10 = vcmp.eq.s32.totalorder %v5416_v49, %v4861_v57  ;;  %vm1130_vm11 = vcmp.eq.s32.totalorder %v5419_v2, %v4861_v57 }
 0x10c   : > { %v3450_v20 = vadd.f32 %v3194_v3, %v2577_v36  ;;  %v841_v17 = vsel %vm509_vm9, %v4822_v41, 0.0  ;;  %v3458_v18 = vadd.f32 %v3202_v4, %v2585_v47  ;;  %v1450_v48 = vsel %vm1122_vm10, %v4887_v31, 0.0 }
 0x10d   : > { %v1458_v19 = vsel %vm1130_vm11, %v4887_v31, 0.0  ;;  %vm1995_vm12 = vcmp.eq.s32.totalorder %v5416_v49, %v4924_v62  ;;  %v1706_v21 = vadd.f32 %v1450_v48, %v833_v9  ;;  %vm2003_vm13 = vcmp.eq.s32.totalorder %v5419_v2, %v4924_v62 }
 0x10e   : > { %v1714_v13 = vadd.f32 %v1458_v19, %v841_v17  ;;  %v2323_v36 = vsel %vm1995_vm12, %v4952_v44, 0.0  ;;  %v3682_v3 = vpack.c.bf16 %v3458_v18, %v3450_v20  ;;  %v2331_v12 = vsel %vm2003_vm13, %v4952_v44, 0.0 }
 0x10f   : > { %vm2868_vm14 = vcmp.eq.s32.totalorder %v5416_v49, %v4987_v15  ;;  %vm2876_vm15 = vcmp.eq.s32.totalorder %v5419_v2, %v4987_v15  ;;  %v2579_v47 = vadd.f32 %v2323_v36, %v1706_v21  ;;  %vm498_vm0 = vcmp.eq.s32.totalorder %v5416_v49, %v4766_v22 }
 0x110   : > { %v2587_v4 = vadd.f32 %v2331_v12, %v1714_v13  ;;  %v3196_v11 = vsel %vm2868_vm14, %v5017_v46, 0.0  ;;  %v3204_v17 = vsel %vm2876_vm15, %v5017_v46, 0.0  ;;  %3792 = vmatprep.subr.bf16.mxu0 %v3682_v3  ;;  %vm506_vm1 = vcmp.eq.s32.totalorder %v5419_v2, %v4766_v22 }
 0x111   : > { %vm1119_vm2 = vcmp.eq.s32.totalorder %v5416_v49, %v4852_v54  ;;  %vm1127_vm3 = vcmp.eq.s32.totalorder %v5419_v2, %v4852_v54  ;;  %v3452_v9 = vadd.f32 %v3196_v11, %v2579_v47  ;;  %v830_v12 = vsel %vm498_vm0, %v4813_v38, 0.0 }
 0x112   : > { %v3460_v20 = vadd.f32 %v3204_v17, %v2587_v4  ;;  %v838_v13 = vsel %vm506_vm1, %v4813_v38, 0.0  ;;  %v1447_v18 = vsel %vm1119_vm2, %v4878_v63, 0.0  ;;  %v1455_v48 = vsel %vm1127_vm3, %v4878_v63, 0.0 }
 0x113   : > { %vm1992_vm4 = vcmp.eq.s32.totalorder %v5416_v49, %v4915_v51  ;;  %vm2000_vm5 = vcmp.eq.s32.totalorder %v5419_v2, %v4915_v51  ;;  %v1703_v21 = vadd.f32 %v1447_v18, %v830_v12  ;;  %v1711_v36 = vadd.f32 %v1455_v48, %v838_v13 }
 0x114   : > { %v3684_v19 = vpack.c.bf16 %v3460_v20, %v3452_v9  ;;  %v2320_v11 = vsel %vm1992_vm4, %v4943_v58, 0.0  ;;  %v2328_v3 = vsel %vm2000_vm5, %v4943_v58, 0.0  ;;  %vm2865_vm6 = vcmp.eq.s32.totalorder %v5416_v49, %v4978_v42 }
 0x115   : > { %vm2873_vm7 = vcmp.eq.s32.totalorder %v5419_v2, %v4978_v42  ;;  %vm500_vm8 = vcmp.eq.s32.totalorder %v5416_v49, %v4774_v24  ;;  %v2576_v47 = vadd.f32 %v2320_v11, %v1703_v21  ;;  %v2584_v4 = vadd.f32 %v2328_v3, %v1711_v36 }
 0x116   : > { %3833 = vmatprep.subr.bf16.mxu1 %v3684_v19  ;;  %v3193_v17 = vsel %vm2865_vm6, %v5008_v6, 0.0  ;;  %v3201_v9 = vsel %vm2873_vm7, %v5008_v6, 0.0  ;;  %vm508_vm9 = vcmp.eq.s32.totalorder %v5419_v2, %v4774_v24  ;;  %v832_v20 = vsel %vm500_vm8, %v4819_v40, 0.0 }
 0x117   : > { %vm1121_vm10 = vcmp.eq.s32.totalorder %v5416_v49, %v4858_v56  ;;  %vm1129_vm11 = vcmp.eq.s32.totalorder %v5419_v2, %v4858_v56  ;;  %v3449_v12 = vadd.f32 %v3193_v17, %v2576_v47  ;;  %v3457_v13 = vadd.f32 %v3201_v9, %v2584_v4 }
 0x118   : > { %v840_v18 = vsel %vm508_vm9, %v4819_v40, 0.0  ;;  %v1449_v48 = vsel %vm1121_vm10, %v4884_v30, 0.0  ;;  %v1457_v19 = vsel %vm1129_vm11, %v4884_v30, 0.0  ;;  %vm1994_vm12 = vcmp.eq.s32.totalorder %v5416_v49, %v4921_v53 }
 0x119   : > { %v1705_v21 = vadd.f32 %v1449_v48, %v832_v20  ;;  %vm2002_vm13 = vcmp.eq.s32.totalorder %v5419_v2, %v4921_v53  ;;  %v3681_v36 = vpack.c.bf16 %v3457_v13, %v3449_v12  ;;  %v1713_v11 = vadd.f32 %v1457_v19, %v840_v18 }
 0x11a   : > { %v2322_v3 = vsel %vm1994_vm12, %v4949_v26, 0.0  ;;  %v2330_v47 = vsel %vm2002_vm13, %v4949_v26, 0.0  ;;  %vm2867_vm14 = vcmp.eq.s32.totalorder %v5416_v49, %v4984_v35  ;;  %vm2875_vm15 = vcmp.eq.s32.totalorder %v5419_v2, %v4984_v35 }
 0x11b   : > { %v2578_v4 = vadd.f32 %v2322_v3, %v1705_v21  ;;  %vm515_vm0 = vcmp.eq.s32.totalorder %v5422_v5, %v4770_v23  ;;  %3793 = vmatpush1.bf16.msra.mxu0 %v3681_v36  ;;  %v2586_v17 = vadd.f32 %v2330_v47, %v1713_v11  ;;  %v3195_v9 = vsel %vm2867_vm14, %v5014_v8, 0.0 }
 0x11c   : > { %v3203_v20 = vsel %vm2875_vm15, %v5014_v8, 0.0  ;;  %vm523_vm1 = vcmp.eq.s32.totalorder %v5425_v61, %v4770_v23  ;;  %v847_v13 = vsel %vm515_vm0, %v4816_v39, 0.0  ;;  %vm1136_vm2 = vcmp.eq.s32.totalorder %v5422_v5, %v4855_v55 }
 0x11d   : > { %v3451_v12 = vadd.f32 %v3195_v9, %v2578_v4  ;;  %v855_v18 = vsel %vm523_vm1, %v4816_v39, 0.0  ;;  %v3459_v48 = vadd.f32 %v3203_v20, %v2586_v17  ;;  %vm1144_vm3 = vcmp.eq.s32.totalorder %v5425_v61, %v4855_v55 }
 0x11e   : > { %v1464_v19 = vsel %vm1136_vm2, %v4881_v0, 0.0  ;;  %vm2009_vm4 = vcmp.eq.s32.totalorder %v5422_v5, %v4918_v52  ;;  %v1472_v21 = vsel %vm1144_vm3, %v4881_v0, 0.0  ;;  %vm2017_vm5 = vcmp.eq.s32.totalorder %v5425_v61, %v4918_v52 }
 0x11f   : > { %v1720_v36 = vadd.f32 %v1464_v19, %v847_v13  ;;  %v2337_v11 = vsel %vm2009_vm4, %v4946_v34, 0.0  ;;  %v3683_v3 = vpack.c.bf16 %v3459_v48, %v3451_v12  ;;  %v1728_v47 = vadd.f32 %v1472_v21, %v855_v18 }
 0x120   : > { %v2345_v4 = vsel %vm2017_vm5, %v4946_v34, 0.0  ;;  %vm2882_vm6 = vcmp.eq.s32.totalorder %v5422_v5, %v4981_v14  ;;  %vm2890_vm7 = vcmp.eq.s32.totalorder %v5425_v61, %v4981_v14  ;;  %vm517_vm8 = vcmp.eq.s32.totalorder %v5422_v5, %v4778_v25 }
 0x121   : > { %v2593_v17 = vadd.f32 %v2337_v11, %v1720_v36  ;;  %v3210_v9 = vsel %vm2882_vm6, %v5011_v7, 0.0  ;;  %3834 = vmatpush1.bf16.msra.mxu1 %v3683_v3  ;;  %v2601_v20 = vadd.f32 %v2345_v4, %v1728_v47  ;;  %v3218_v13 = vsel %vm2890_vm7, %v5011_v7, 0.0 }
 0x122   : > { %vm525_vm9 = vcmp.eq.s32.totalorder %v5425_v61, %v4778_v25  ;;  %v849_v12 = vsel %vm517_vm8, %v4822_v41, 0.0  ;;  %vm1138_vm10 = vcmp.eq.s32.totalorder %v5422_v5, %v4861_v57  ;;  %vm1146_vm11 = vcmp.eq.s32.totalorder %v5425_v61, %v4861_v57 }
 0x123   : > { %v3466_v18 = vadd.f32 %v3210_v9, %v2593_v17  ;;  %v857_v48 = vsel %vm525_vm9, %v4822_v41, 0.0  ;;  %v3474_v19 = vadd.f32 %v3218_v13, %v2601_v20  ;;  %v1466_v21 = vsel %vm1138_vm10, %v4887_v31, 0.0 }
 0x124   : > { %v1474_v36 = vsel %vm1146_vm11, %v4887_v31, 0.0  ;;  %vm2011_vm12 = vcmp.eq.s32.totalorder %v5422_v5, %v4924_v62  ;;  %v1722_v11 = vadd.f32 %v1466_v21, %v849_v12  ;;  %vm2019_vm13 = vcmp.eq.s32.totalorder %v5425_v61, %v4924_v62 }
 0x125   : > { %v1730_v3 = vadd.f32 %v1474_v36, %v857_v48  ;;  %v2339_v47 = vsel %vm2011_vm12, %v4952_v44, 0.0  ;;  %v3690_v4 = vpack.c.bf16 %v3474_v19, %v3466_v18  ;;  %v2347_v17 = vsel %vm2019_vm13, %v4952_v44, 0.0 }
 0x126   : > { %vm2884_vm14 = vcmp.eq.s32.totalorder %v5422_v5, %v4987_v15  ;;  %vm2892_vm15 = vcmp.eq.s32.totalorder %v5425_v61, %v4987_v15  ;;  %v2595_v9 = vadd.f32 %v2339_v47, %v1722_v11  ;;  %vm514_vm0 = vcmp.eq.s32.totalorder %v5422_v5, %v4766_v22 }
 0x127   : > { %v2603_v20 = vadd.f32 %v2347_v17, %v1730_v3  ;;  %v3212_v13 = vsel %vm2884_vm14, %v5017_v46, 0.0  ;;  %v3220_v12 = vsel %vm2892_vm15, %v5017_v46, 0.0  ;;  %3794 = vmatprep.subr.bf16.mxu0 %v3690_v4  ;;  %vm522_vm1 = vcmp.eq.s32.totalorder %v5425_v61, %v4766_v22 }
 0x128   : > { %vm1135_vm2 = vcmp.eq.s32.totalorder %v5422_v5, %v4852_v54  ;;  %vm1143_vm3 = vcmp.eq.s32.totalorder %v5425_v61, %v4852_v54  ;;  %v3468_v18 = vadd.f32 %v3212_v13, %v2595_v9  ;;  %v846_v19 = vsel %vm514_vm0, %v4813_v38, 0.0 }
 0x129   : > { %v3476_v48 = vadd.f32 %v3220_v12, %v2603_v20  ;;  %v854_v21 = vsel %vm522_vm1, %v4813_v38, 0.0  ;;  %v1463_v36 = vsel %vm1135_vm2, %v4878_v63, 0.0  ;;  %v1471_v11 = vsel %vm1143_vm3, %v4878_v63, 0.0 }
 0x12a   : > { %vm2008_vm4 = vcmp.eq.s32.totalorder %v5422_v5, %v4915_v51  ;;  %vm2016_vm5 = vcmp.eq.s32.totalorder %v5425_v61, %v4915_v51  ;;  %v1719_v47 = vadd.f32 %v1463_v36, %v846_v19  ;;  %v1727_v4 = vadd.f32 %v1471_v11, %v854_v21 }
 0x12b   : > { %v3692_v3 = vpack.c.bf16 %v3476_v48, %v3468_v18  ;;  %v2336_v17 = vsel %vm2008_vm4, %v4943_v58, 0.0  ;;  %v2344_v9 = vsel %vm2016_vm5, %v4943_v58, 0.0  ;;  %vm2881_vm6 = vcmp.eq.s32.totalorder %v5422_v5, %v4978_v42 }
 0x12c   : > { %vm2889_vm7 = vcmp.eq.s32.totalorder %v5425_v61, %v4978_v42  ;;  %vm516_vm8 = vcmp.eq.s32.totalorder %v5422_v5, %v4774_v24  ;;  %v2592_v20 = vadd.f32 %v2336_v17, %v1719_v47  ;;  %v2600_v13 = vadd.f32 %v2344_v9, %v1727_v4 }
 0x12d   : > { %3835 = vmatprep.subr.bf16.mxu1 %v3692_v3  ;;  %v3209_v12 = vsel %vm2881_vm6, %v5008_v6, 0.0  ;;  %v3217_v18 = vsel %vm2889_vm7, %v5008_v6, 0.0  ;;  %vm524_vm9 = vcmp.eq.s32.totalorder %v5425_v61, %v4774_v24  ;;  %v848_v48 = vsel %vm516_vm8, %v4819_v40, 0.0 }
 0x12e   : > { %vm1137_vm10 = vcmp.eq.s32.totalorder %v5422_v5, %v4858_v56  ;;  %vm1145_vm11 = vcmp.eq.s32.totalorder %v5425_v61, %v4858_v56  ;;  %v3465_v19 = vadd.f32 %v3209_v12, %v2592_v20  ;;  %v3473_v21 = vadd.f32 %v3217_v18, %v2600_v13 }
 0x12f   : > { %v856_v36 = vsel %vm524_vm9, %v4819_v40, 0.0  ;;  %v1465_v11 = vsel %vm1137_vm10, %v4884_v30, 0.0  ;;  %v1473_v3 = vsel %vm1145_vm11, %v4884_v30, 0.0  ;;  %vm2010_vm12 = vcmp.eq.s32.totalorder %v5422_v5, %v4921_v53 }
 0x130   : > { %v1721_v47 = vadd.f32 %v1465_v11, %v848_v48  ;;  %vm2018_vm13 = vcmp.eq.s32.totalorder %v5425_v61, %v4921_v53  ;;  %v3689_v4 = vpack.c.bf16 %v3473_v21, %v3465_v19  ;;  %v1729_v17 = vadd.f32 %v1473_v3, %v856_v36 }
 0x131   : > { %v2338_v9 = vsel %vm2010_vm12, %v4949_v26, 0.0  ;;  %v2346_v20 = vsel %vm2018_vm13, %v4949_v26, 0.0  ;;  %vm2883_vm14 = vcmp.eq.s32.totalorder %v5422_v5, %v4984_v35  ;;  %vm2891_vm15 = vcmp.eq.s32.totalorder %v5425_v61, %v4984_v35 }
 0x132   : > { %v2594_v13 = vadd.f32 %v2338_v9, %v1721_v47  ;;  %vm531_vm0 = vcmp.eq.s32.totalorder %v5428_v50, %v4770_v23  ;;  %3795 = vmatpush1.bf16.msra.mxu0 %v3689_v4  ;;  %v2602_v12 = vadd.f32 %v2346_v20, %v1729_v17  ;;  %v3211_v18 = vsel %vm2883_vm14, %v5014_v8, 0.0 }
 0x133   : > { %v3219_v48 = vsel %vm2891_vm15, %v5014_v8, 0.0  ;;  %vm539_vm1 = vcmp.eq.s32.totalorder %v5431_v32, %v4770_v23  ;;  %v863_v21 = vsel %vm531_vm0, %v4816_v39, 0.0  ;;  %vm1152_vm2 = vcmp.eq.s32.totalorder %v5428_v50, %v4855_v55 }
 0x134   : > { %v3467_v19 = vadd.f32 %v3211_v18, %v2594_v13  ;;  %v871_v36 = vsel %vm539_vm1, %v4816_v39, 0.0  ;;  %v3475_v11 = vadd.f32 %v3219_v48, %v2602_v12  ;;  %vm1160_vm3 = vcmp.eq.s32.totalorder %v5431_v32, %v4855_v55 }
 0x135   : > { %v1480_v3 = vsel %vm1152_vm2, %v4881_v0, 0.0  ;;  %vm2025_vm4 = vcmp.eq.s32.totalorder %v5428_v50, %v4918_v52  ;;  %v1488_v47 = vsel %vm1160_vm3, %v4881_v0, 0.0  ;;  %vm2033_vm5 = vcmp.eq.s32.totalorder %v5431_v32, %v4918_v52 }
 0x136   : > { %v1736_v4 = vadd.f32 %v1480_v3, %v863_v21  ;;  %v2353_v17 = vsel %vm2025_vm4, %v4946_v34, 0.0  ;;  %v3691_v9 = vpack.c.bf16 %v3475_v11, %v3467_v19  ;;  %v1744_v20 = vadd.f32 %v1488_v47, %v871_v36 }
 0x137   : > { %v2361_v13 = vsel %vm2033_vm5, %v4946_v34, 0.0  ;;  %vm2898_vm6 = vcmp.eq.s32.totalorder %v5428_v50, %v4981_v14  ;;  %vm2906_vm7 = vcmp.eq.s32.totalorder %v5431_v32, %v4981_v14  ;;  %vm533_vm8 = vcmp.eq.s32.totalorder %v5428_v50, %v4778_v25 }
 0x138   : > { %v2609_v12 = vadd.f32 %v2353_v17, %v1736_v4  ;;  %v3226_v18 = vsel %vm2898_vm6, %v5011_v7, 0.0  ;;  %3836 = vmatpush1.bf16.msra.mxu1 %v3691_v9  ;;  %v2617_v48 = vadd.f32 %v2361_v13, %v1744_v20  ;;  %v3234_v21 = vsel %vm2906_vm7, %v5011_v7, 0.0 }
 0x139   : > { %vm541_vm9 = vcmp.eq.s32.totalorder %v5431_v32, %v4778_v25  ;;  %v865_v19 = vsel %vm533_vm8, %v4822_v41, 0.0  ;;  %vm1154_vm10 = vcmp.eq.s32.totalorder %v5428_v50, %v4861_v57  ;;  %vm1162_vm11 = vcmp.eq.s32.totalorder %v5431_v32, %v4861_v57 }
 0x13a   : > { %v3482_v36 = vadd.f32 %v3226_v18, %v2609_v12  ;;  %v873_v11 = vsel %vm541_vm9, %v4822_v41, 0.0  ;;  %v3490_v3 = vadd.f32 %v3234_v21, %v2617_v48  ;;  %v1482_v47 = vsel %vm1154_vm10, %v4887_v31, 0.0 }
 0x13b   : > { %v1490_v4 = vsel %vm1162_vm11, %v4887_v31, 0.0  ;;  %vm2027_vm12 = vcmp.eq.s32.totalorder %v5428_v50, %v4924_v62  ;;  %v1738_v17 = vadd.f32 %v1482_v47, %v865_v19  ;;  %vm2035_vm13 = vcmp.eq.s32.totalorder %v5431_v32, %v4924_v62 }
 0x13c   : > { %v1746_v9 = vadd.f32 %v1490_v4, %v873_v11  ;;  %v2355_v20 = vsel %vm2027_vm12, %v4952_v44, 0.0  ;;  %v3698_v13 = vpack.c.bf16 %v3490_v3, %v3482_v36  ;;  %v2363_v12 = vsel %vm2035_vm13, %v4952_v44, 0.0 }
 0x13d   : > { %vm2900_vm14 = vcmp.eq.s32.totalorder %v5428_v50, %v4987_v15  ;;  %vm2908_vm15 = vcmp.eq.s32.totalorder %v5431_v32, %v4987_v15  ;;  %v2611_v18 = vadd.f32 %v2355_v20, %v1738_v17  ;;  %vm530_vm0 = vcmp.eq.s32.totalorder %v5428_v50, %v4766_v22 }
 0x13e   : > { %v2619_v48 = vadd.f32 %v2363_v12, %v1746_v9  ;;  %v3228_v21 = vsel %vm2900_vm14, %v5017_v46, 0.0  ;;  %v3236_v19 = vsel %vm2908_vm15, %v5017_v46, 0.0  ;;  %3796 = vmatprep.subr.bf16.mxu0 %v3698_v13  ;;  %vm538_vm1 = vcmp.eq.s32.totalorder %v5431_v32, %v4766_v22 }
 0x13f   : > { %vm1151_vm2 = vcmp.eq.s32.totalorder %v5428_v50, %v4852_v54  ;;  %vm1159_vm3 = vcmp.eq.s32.totalorder %v5431_v32, %v4852_v54  ;;  %v3484_v36 = vadd.f32 %v3228_v21, %v2611_v18  ;;  %v862_v3 = vsel %vm530_vm0, %v4813_v38, 0.0 }
 0x140   : > { %v3492_v11 = vadd.f32 %v3236_v19, %v2619_v48  ;;  %v870_v47 = vsel %vm538_vm1, %v4813_v38, 0.0  ;;  %v1479_v4 = vsel %vm1151_vm2, %v4878_v63, 0.0  ;;  %v1487_v17 = vsel %vm1159_vm3, %v4878_v63, 0.0 }
 0x141   : > { %vm2024_vm4 = vcmp.eq.s32.totalorder %v5428_v50, %v4915_v51  ;;  %vm2032_vm5 = vcmp.eq.s32.totalorder %v5431_v32, %v4915_v51  ;;  %v1735_v20 = vadd.f32 %v1479_v4, %v862_v3  ;;  %v1743_v13 = vadd.f32 %v1487_v17, %v870_v47 }
 0x142   : > { %v3700_v9 = vpack.c.bf16 %v3492_v11, %v3484_v36  ;;  %v2352_v12 = vsel %vm2024_vm4, %v4943_v58, 0.0  ;;  %v2360_v18 = vsel %vm2032_vm5, %v4943_v58, 0.0  ;;  %vm2897_vm6 = vcmp.eq.s32.totalorder %v5428_v50, %v4978_v42 }
 0x143   : > { %vm2905_vm7 = vcmp.eq.s32.totalorder %v5431_v32, %v4978_v42  ;;  %vm532_vm8 = vcmp.eq.s32.totalorder %v5428_v50, %v4774_v24  ;;  %v2608_v48 = vadd.f32 %v2352_v12, %v1735_v20  ;;  %v2616_v21 = vadd.f32 %v2360_v18, %v1743_v13 }
 0x144   : > { %3837 = vmatprep.subr.bf16.mxu1 %v3700_v9  ;;  %v3225_v19 = vsel %vm2897_vm6, %v5008_v6, 0.0  ;;  %v3233_v36 = vsel %vm2905_vm7, %v5008_v6, 0.0  ;;  %vm540_vm9 = vcmp.eq.s32.totalorder %v5431_v32, %v4774_v24  ;;  %v864_v11 = vsel %vm532_vm8, %v4819_v40, 0.0 }
 0x145   : > { %vm1153_vm10 = vcmp.eq.s32.totalorder %v5428_v50, %v4858_v56  ;;  %vm1161_vm11 = vcmp.eq.s32.totalorder %v5431_v32, %v4858_v56  ;;  %v3481_v3 = vadd.f32 %v3225_v19, %v2608_v48  ;;  %v3489_v47 = vadd.f32 %v3233_v36, %v2616_v21 }
 0x146   : > { %v872_v4 = vsel %vm540_vm9, %v4819_v40, 0.0  ;;  %v1481_v17 = vsel %vm1153_vm10, %v4884_v30, 0.0  ;;  %v1489_v9 = vsel %vm1161_vm11, %v4884_v30, 0.0  ;;  %vm2026_vm12 = vcmp.eq.s32.totalorder %v5428_v50, %v4921_v53 }
 0x147   : > { %v1737_v20 = vadd.f32 %v1481_v17, %v864_v11  ;;  %vm2034_vm13 = vcmp.eq.s32.totalorder %v5431_v32, %v4921_v53  ;;  %v3697_v13 = vpack.c.bf16 %v3489_v47, %v3481_v3  ;;  %v1745_v12 = vadd.f32 %v1489_v9, %v872_v4 }
 0x148   : > { %v2354_v18 = vsel %vm2026_vm12, %v4949_v26, 0.0  ;;  %v2362_v48 = vsel %vm2034_vm13, %v4949_v26, 0.0  ;;  %vm2899_vm14 = vcmp.eq.s32.totalorder %v5428_v50, %v4984_v35  ;;  %vm2907_vm15 = vcmp.eq.s32.totalorder %v5431_v32, %v4984_v35 }
 0x149   : > { %v2610_v21 = vadd.f32 %v2354_v18, %v1737_v20  ;;  %v5720_v19 = vadd.s32 112, %v4707_v1  ;;  %3797 = vmatpush1.bf16.msra.mxu0 %v3697_v13  ;;  %v2618_v36 = vadd.f32 %v2362_v48, %v1745_v12  ;;  %v3227_v11 = vsel %vm2899_vm14, %v5014_v8, 0.0 }
 0x14a   : > { %v3235_v3 = vsel %vm2907_vm15, %v5014_v8, 0.0  ;;  %v5725_v47 = vadd.s32 120, %v4707_v1 }
 0x14b   : > { %8390 = vst [vmem:[#allocation55_spill] sm:$0xff] %v5720_v19  ;;  %v3483_v4 = vadd.f32 %v3227_v11, %v2610_v21  ;;  %vm547_vm0 = vcmp.eq.s32.totalorder %v5720_v19, %v4770_v23  ;;  %vm1168_vm1 = vcmp.eq.s32.totalorder %v5720_v19, %v4855_v55  ;;  %vm2041_vm2 = vcmp.eq.s32.totalorder %v5720_v19, %v4918_v52 }
 0x14c   : > { %8391 = vst [vmem:[#allocation56_spill] sm:$0xff] %v5725_v47  ;;  %v3491_v17 = vadd.f32 %v3235_v3, %v2618_v36  ;;  %vm555_vm3 = vcmp.eq.s32.totalorder %v5725_v47, %v4770_v23  ;;  %v879_v9 = vsel %vm547_vm0, %v4816_v39, 0.0  ;;  %vm1176_vm4 = vcmp.eq.s32.totalorder %v5725_v47, %v4855_v55 }
 0x14d   : > { %v887_v20 = vsel %vm555_vm3, %v4816_v39, 0.0  ;;  %v1496_v13 = vsel %vm1168_vm1, %v4881_v0, 0.0  ;;  %v1504_v12 = vsel %vm1176_vm4, %v4881_v0, 0.0  ;;  %vm2049_vm5 = vcmp.eq.s32.totalorder %v5725_v47, %v4918_v52 }
 0x14e   : > { %v3699_v18 = vpack.c.bf16 %v3491_v17, %v3483_v4  ;;  %v1752_v48 = vadd.f32 %v1496_v13, %v879_v9  ;;  %v1760_v21 = vadd.f32 %v1504_v12, %v887_v20  ;;  %v2369_v36 = vsel %vm2041_vm2, %v4946_v34, 0.0 }
 0x14f   : > { %v2377_v11 = vsel %vm2049_vm5, %v4946_v34, 0.0  ;;  %vm2914_vm6 = vcmp.eq.s32.totalorder %v5720_v19, %v4981_v14  ;;  %vm2922_vm7 = vcmp.eq.s32.totalorder %v5725_v47, %v4981_v14  ;;  %vm549_vm8 = vcmp.eq.s32.totalorder %v5720_v19, %v4778_v25 }
 0x150   : > { %3838 = vmatpush1.bf16.msra.mxu1 %v3699_v18  ;;  %v2625_v3 = vadd.f32 %v2369_v36, %v1752_v48  ;;  %v2633_v32 = vadd.f32 %v2377_v11, %v1760_v21  ;;  %v3242_v4 = vsel %vm2914_vm6, %v5011_v7, 0.0  ;;  %v3250_v17 = vsel %vm2922_vm7, %v5011_v7, 0.0 }
 0x151   : > { %vm557_vm9 = vcmp.eq.s32.totalorder %v5725_v47, %v4778_v25  ;;  %v881_v9 = vsel %vm549_vm8, %v4822_v41, 0.0  ;;  %vm1170_vm10 = vcmp.eq.s32.totalorder %v5720_v19, %v4861_v57  ;;  %vm1178_vm11 = vcmp.eq.s32.totalorder %v5725_v47, %v4861_v57 }
 0x152   : > { %v3498_v20 = vadd.f32 %v3242_v4, %v2625_v3  ;;  %v3506_v13 = vadd.f32 %v3250_v17, %v2633_v32  ;;  %v889_v12 = vsel %vm557_vm9, %v4822_v41, 0.0  ;;  %v1498_v18 = vsel %vm1170_vm10, %v4887_v31, 0.0 }
 0x153   : > { %v1506_v48 = vsel %vm1178_vm11, %v4887_v31, 0.0  ;;  %v1754_v21 = vadd.f32 %v1498_v18, %v881_v9  ;;  %vm2043_vm12 = vcmp.eq.s32.totalorder %v5720_v19, %v4924_v62  ;;  %vm2051_vm13 = vcmp.eq.s32.totalorder %v5725_v47, %v4924_v62 }
 0x154   : > { %v3706_v36 = vpack.c.bf16 %v3506_v13, %v3498_v20  ;;  %v1762_v11 = vadd.f32 %v1506_v48, %v889_v12  ;;  %v2371_v50 = vsel %vm2043_vm12, %v4952_v44, 0.0  ;;  %v2379_v3 = vsel %vm2051_vm13, %v4952_v44, 0.0 }
 0x155   : > { %v2627_v32 = vadd.f32 %v2371_v50, %v1754_v21  ;;  %vm2916_vm14 = vcmp.eq.s32.totalorder %v5720_v19, %v4987_v15  ;;  %vm2924_vm15 = vcmp.eq.s32.totalorder %v5725_v47, %v4987_v15  ;;  %vm546_vm0 = vcmp.eq.s32.totalorder %v5720_v19, %v4766_v22 }
 0x156   : > { %3798 = vmatprep.subr.bf16.mxu0 %v3706_v36  ;;  %v2635_v4 = vadd.f32 %v2379_v3, %v1762_v11  ;;  %v3244_v17 = vsel %vm2916_vm14, %v5017_v46, 0.0  ;;  %v3252_v9 = vsel %vm2924_vm15, %v5017_v46, 0.0  ;;  %vm554_vm1 = vcmp.eq.s32.totalorder %v5725_v47, %v4766_v22 }
 0x157   : > { %v3500_v20 = vadd.f32 %v3244_v17, %v2627_v32  ;;  %v878_v50 = vsel %vm546_vm0, %v4813_v38, 0.0  ;;  %v886_v13 = vsel %vm554_vm1, %v4813_v38, 0.0  ;;  %vm1167_vm2 = vcmp.eq.s32.totalorder %v5720_v19, %v4852_v54 }
 0x158   : > { %v3508_v12 = vadd.f32 %v3252_v9, %v2635_v4  ;;  %vm1175_vm3 = vcmp.eq.s32.totalorder %v5725_v47, %v4852_v54  ;;  %v1495_v18 = vsel %vm1167_vm2, %v4878_v63, 0.0  ;;  %vm2040_vm4 = vcmp.eq.s32.totalorder %v5720_v19, %v4915_v51 }
 0x159   : > { %v1503_v48 = vsel %vm1175_vm3, %v4878_v63, 0.0  ;;  %v1751_v21 = vadd.f32 %v1495_v18, %v878_v50  ;;  %vm2048_vm5 = vcmp.eq.s32.totalorder %v5725_v47, %v4915_v51  ;;  %v2368_v36 = vsel %vm2040_vm4, %v4943_v58, 0.0 }
 0x15a   : > { %v3708_v11 = vpack.c.bf16 %v3508_v12, %v3500_v20  ;;  %v1759_v3 = vadd.f32 %v1503_v48, %v886_v13  ;;  %v2376_v32 = vsel %vm2048_vm5, %v4943_v58, 0.0  ;;  %vm2913_vm6 = vcmp.eq.s32.totalorder %v5720_v19, %v4978_v42 }
 0x15b   : > { %v2624_v4 = vadd.f32 %v2368_v36, %v1751_v21  ;;  %vm2921_vm7 = vcmp.eq.s32.totalorder %v5725_v47, %v4978_v42  ;;  %v3241_v17 = vsel %vm2913_vm6, %v5008_v6, 0.0  ;;  %vm548_vm8 = vcmp.eq.s32.totalorder %v5720_v19, %v4774_v24 }
 0x15c   : > { %3839 = vmatprep.subr.bf16.mxu1 %v3708_v11  ;;  %v2632_v9 = vadd.f32 %v2376_v32, %v1759_v3  ;;  %v3249_v50 = vsel %vm2921_vm7, %v5008_v6, 0.0  ;;  %vm556_vm9 = vcmp.eq.s32.totalorder %v5725_v47, %v4774_v24  ;;  %v880_v20 = vsel %vm548_vm8, %v4819_v40, 0.0 }
 0x15d   : > { %v3497_v13 = vadd.f32 %v3241_v17, %v2624_v4  ;;  %v888_v12 = vsel %vm556_vm9, %v4819_v40, 0.0  ;;  %vm1169_vm10 = vcmp.eq.s32.totalorder %v5720_v19, %v4858_v56  ;;  %vm1177_vm11 = vcmp.eq.s32.totalorder %v5725_v47, %v4858_v56 }
 0x15e   : > { %v3505_v18 = vadd.f32 %v3249_v50, %v2632_v9  ;;  %v1497_v48 = vsel %vm1169_vm10, %v4884_v30, 0.0  ;;  %v1505_v21 = vsel %vm1177_vm11, %v4884_v30, 0.0  ;;  %vm2042_vm12 = vcmp.eq.s32.totalorder %v5720_v19, %v4921_v53 }
 0x15f   : > { %v1753_v36 = vadd.f32 %v1497_v48, %v880_v20  ;;  %v1761_v11 = vadd.f32 %v1505_v21, %v888_v12  ;;  %vm2050_vm13 = vcmp.eq.s32.totalorder %v5725_v47, %v4921_v53  ;;  %v2370_v3 = vsel %vm2042_vm12, %v4949_v26, 0.0 }
 0x160   : > { %v3705_v32 = vpack.c.bf16 %v3505_v18, %v3497_v13  ;;  %v2378_v4 = vsel %vm2050_vm13, %v4949_v26, 0.0  ;;  %vm2915_vm14 = vcmp.eq.s32.totalorder %v5720_v19, %v4984_v35  ;;  %vm2923_vm15 = vcmp.eq.s32.totalorder %v5725_v47, %v4984_v35 }
 0x161   : > { %v2626_v17 = vadd.f32 %v2370_v3, %v1753_v36  ;;  %v2634_v9 = vadd.f32 %v2378_v4, %v1761_v11  ;;  %v3243_v50 = vsel %vm2915_vm14, %v5014_v8, 0.0  ;;  %v3251_v20 = vsel %vm2923_vm15, %v5014_v8, 0.0 }
 0x162   : > { %3799 = vmatpush1.bf16.msra.mxu0 %v3705_v32  ;;  %v5824_v12 = vadd.s32 128, %v4707_v1  ;;  %v5827_v13 = vadd.s32 136, %v4707_v1  ;;  %v5830_v18 = vadd.s32 144, %v4707_v1  ;;  %v5833_v48 = vadd.s32 152, %v4707_v1 }
 0x163   : > { %v3499_v21 = vadd.f32 %v3243_v50, %v2626_v17  ;;  %v3507_v36 = vadd.f32 %v3251_v20, %v2634_v9  ;;  %v5836_v11 = vadd.s32 160, %v4707_v1  ;;  %v5839_v3 = vadd.s32 168, %v4707_v1 }
 0x164   : > { %8392 = vst [vmem:[#allocation57_spill] sm:$0xff] %v5824_v12  ;;  %8393 = vst [vmem:[#allocation58_spill] sm:$0xff] %v5827_v13  ;;  %vm563_vm0 = vcmp.eq.s32.totalorder %v5824_v12, %v4770_v23  ;;  %vm571_vm1 = vcmp.eq.s32.totalorder %v5827_v13, %v4770_v23  ;;  %vm1184_vm2 = vcmp.eq.s32.totalorder %v5824_v12, %v4855_v55 }
 0x165   : > { %8394 = vst [vmem:[#allocation59_spill] sm:$0xff] %v5830_v18  ;;  %8395 = vst [vmem:[#allocation60_spill] sm:$0xff] %v5833_v48  ;;  %vm1192_vm3 = vcmp.eq.s32.totalorder %v5827_v13, %v4855_v55  ;;  %v3707_v32 = vpack.c.bf16 %v3507_v36, %v3499_v21  ;;  %v895_v4 = vsel %vm563_vm0, %v4816_v39, 0.0  ;;  %v903_v17 = vsel %vm571_vm1, %v4816_v39, 0.0 }
 0x166   : > { %8396 = vst [vmem:[#allocation61_spill] sm:$0xff] %v5836_v11  ;;  %8397 = vst [vmem:[#allocation62_spill] sm:$0xff] %v5839_v3  ;;  %v1512_v9 = vsel %vm1184_vm2, %v4881_v0, 0.0  ;;  %v1520_v50 = vsel %vm1192_vm3, %v4881_v0, 0.0  ;;  %vm2057_vm4 = vcmp.eq.s32.totalorder %v5824_v12, %v4918_v52  ;;  %vm2065_vm5 = vcmp.eq.s32.totalorder %v5827_v13, %v4918_v52 }
 0x167   : > { %v1768_v20 = vadd.f32 %v1512_v9, %v895_v4  ;;  %3840 = vmatpush1.bf16.msra.mxu1 %v3707_v32  ;;  %v1776_v47 = vadd.f32 %v1520_v50, %v903_v17  ;;  %v2385_v19 = vsel %vm2057_vm4, %v4946_v34, 0.0  ;;  %v2393_v21 = vsel %vm2065_vm5, %v4946_v34, 0.0 }
 0x168   : > { %vm2930_vm6 = vcmp.eq.s32.totalorder %v5824_v12, %v4981_v14  ;;  %vm2938_vm7 = vcmp.eq.s32.totalorder %v5827_v13, %v4981_v14  ;;  %vm565_vm8 = vcmp.eq.s32.totalorder %v5824_v12, %v4778_v25  ;;  %vm573_vm9 = vcmp.eq.s32.totalorder %v5827_v13, %v4778_v25 }
 0x169   : > { %v2641_v36 = vadd.f32 %v2385_v19, %v1768_v20  ;;  %v3258_v4 = vsel %vm2930_vm6, %v5011_v7, 0.0  ;;  %v2649_v9 = vadd.f32 %v2393_v21, %v1776_v47  ;;  %v3266_v32 = vsel %vm2938_vm7, %v5011_v7, 0.0 }
 0x16a   : > { %v897_v17 = vsel %vm565_vm8, %v4822_v41, 0.0  ;;  %v905_v61 = vsel %vm573_vm9, %v4822_v41, 0.0  ;;  %vm1186_vm10 = vcmp.eq.s32.totalorder %v5824_v12, %v4861_v57  ;;  %vm1194_vm11 = vcmp.eq.s32.totalorder %v5827_v13, %v4861_v57 }
 0x16b   : > { %v3514_v50 = vadd.f32 %v3258_v4, %v2641_v36  ;;  %v3522_v19 = vadd.f32 %v3266_v32, %v2649_v9  ;;  %v1514_v20 = vsel %vm1186_vm10, %v4887_v31, 0.0  ;;  %v1522_v47 = vsel %vm1194_vm11, %v4887_v31, 0.0 }
 0x16c   : > { %vm2059_vm12 = vcmp.eq.s32.totalorder %v5824_v12, %v4924_v62  ;;  %v1770_v21 = vadd.f32 %v1514_v20, %v897_v17  ;;  %v1778_v5 = vadd.f32 %v1522_v47, %v905_v61  ;;  %vm2067_vm13 = vcmp.eq.s32.totalorder %v5827_v13, %v4924_v62 }
 0x16d   : > { %v2387_v36 = vsel %vm2059_vm12, %v4952_v44, 0.0  ;;  %v3714_v4 = vpack.c.bf16 %v3522_v19, %v3514_v50  ;;  %v2395_v2 = vsel %vm2067_vm13, %v4952_v44, 0.0  ;;  %vm2932_vm14 = vcmp.eq.s32.totalorder %v5824_v12, %v4987_v15 }
 0x16e   : > { %vm2940_vm15 = vcmp.eq.s32.totalorder %v5827_v13, %v4987_v15  ;;  %v2643_v9 = vadd.f32 %v2387_v36, %v1770_v21  ;;  %v2651_v32 = vadd.f32 %v2395_v2, %v1778_v5  ;;  %v3260_v49 = vsel %vm2932_vm14, %v5017_v46, 0.0 }
 0x16f   : > { %v3268_v61 = vsel %vm2940_vm15, %v5017_v46, 0.0  ;;  %3800 = vmatprep.subr.bf16.mxu0 %v3714_v4  ;;  %vm562_vm0 = vcmp.eq.s32.totalorder %v5824_v12, %v4766_v22  ;;  %vm570_vm1 = vcmp.eq.s32.totalorder %v5827_v13, %v4766_v22  ;;  %vm1183_vm2 = vcmp.eq.s32.totalorder %v5824_v12, %v4852_v54 }
 0x170   : > { %vm1191_vm3 = vcmp.eq.s32.totalorder %v5827_v13, %v4852_v54  ;;  %v3516_v17 = vadd.f32 %v3260_v49, %v2643_v9  ;;  %v3524_v50 = vadd.f32 %v3268_v61, %v2651_v32  ;;  %v894_v2 = vsel %vm562_vm0, %v4813_v38, 0.0 }
 0x171   : > { %v902_v5 = vsel %vm570_vm1, %v4813_v38, 0.0  ;;  %v1511_v19 = vsel %vm1183_vm2, %v4878_v63, 0.0  ;;  %v1519_v20 = vsel %vm1191_vm3, %v4878_v63, 0.0  ;;  %vm2056_vm4 = vcmp.eq.s32.totalorder %v5824_v12, %v4915_v51 }
 0x172   : > { %vm2064_vm5 = vcmp.eq.s32.totalorder %v5827_v13, %v4915_v51  ;;  %v3716_v47 = vpack.c.bf16 %v3524_v50, %v3516_v17  ;;  %v1767_v21 = vadd.f32 %v1511_v19, %v894_v2  ;;  %v1775_v36 = vadd.f32 %v1519_v20, %v902_v5 }
 0x173   : > { %v2384_v49 = vsel %vm2056_vm4, %v4943_v58, 0.0  ;;  %v2392_v4 = vsel %vm2064_vm5, %v4943_v58, 0.0  ;;  %vm2929_vm6 = vcmp.eq.s32.totalorder %v5824_v12, %v4978_v42  ;;  %vm2937_vm7 = vcmp.eq.s32.totalorder %v5827_v13, %v4978_v42 }
 0x174   : > { %vm564_vm8 = vcmp.eq.s32.totalorder %v5824_v12, %v4774_v24  ;;  %3841 = vmatprep.subr.bf16.mxu1 %v3716_v47  ;;  %v2640_v9 = vadd.f32 %v2384_v49, %v1767_v21  ;;  %v2648_v32 = vadd.f32 %v2392_v4, %v1775_v36  ;;  %v3257_v61 = vsel %vm2929_vm6, %v5008_v6, 0.0 }
 0x175   : > { %v3265_v17 = vsel %vm2937_vm7, %v5008_v6, 0.0  ;;  %vm572_vm9 = vcmp.eq.s32.totalorder %v5827_v13, %v4774_v24  ;;  %v896_v50 = vsel %vm564_vm8, %v4819_v40, 0.0  ;;  %vm1185_vm10 = vcmp.eq.s32.totalorder %v5824_v12, %v4858_v56 }
 0x176   : > { %vm1193_vm11 = vcmp.eq.s32.totalorder %v5827_v13, %v4858_v56  ;;  %v3513_v2 = vadd.f32 %v3257_v61, %v2640_v9  ;;  %v3521_v5 = vadd.f32 %v3265_v17, %v2648_v32  ;;  %v904_v19 = vsel %vm572_vm9, %v4819_v40, 0.0 }
 0x177   : > { %v1513_v20 = vsel %vm1185_vm10, %v4884_v30, 0.0  ;;  %v1521_v47 = vsel %vm1193_vm11, %v4884_v30, 0.0  ;;  %vm2058_vm12 = vcmp.eq.s32.totalorder %v5824_v12, %v4921_v53  ;;  %vm2066_vm13 = vcmp.eq.s32.totalorder %v5827_v13, %v4921_v53 }
 0x178   : > { %v1769_v21 = vadd.f32 %v1513_v20, %v896_v50  ;;  %v3713_v36 = vpack.c.bf16 %v3521_v5, %v3513_v2  ;;  %v1777_v49 = vadd.f32 %v1521_v47, %v904_v19  ;;  %v2386_v4 = vsel %vm2058_vm12, %v4949_v26, 0.0 }
 0x179   : > { %v2394_v9 = vsel %vm2066_vm13, %v4949_v26, 0.0  ;;  %vm2931_vm14 = vcmp.eq.s32.totalorder %v5824_v12, %v4984_v35  ;;  %vm2939_vm15 = vcmp.eq.s32.totalorder %v5827_v13, %v4984_v35  ;;  %vm579_vm0 = vcmp.eq.s32.totalorder %v5830_v18, %v4770_v23 }
 0x17a   : > { %v2642_v32 = vadd.f32 %v2386_v4, %v1769_v21  ;;  %3801 = vmatpush1.bf16.msra.mxu0 %v3713_v36  ;;  %v2650_v61 = vadd.f32 %v2394_v9, %v1777_v49  ;;  %v3259_v17 = vsel %vm2931_vm14, %v5014_v8, 0.0  ;;  %v3267_v50 = vsel %vm2939_vm15, %v5014_v8, 0.0 }
 0x17b   : > { %vm587_vm1 = vcmp.eq.s32.totalorder %v5833_v48, %v4770_v23  ;;  %v911_v5 = vsel %vm579_vm0, %v4816_v39, 0.0  ;;  %vm1200_vm2 = vcmp.eq.s32.totalorder %v5830_v18, %v4855_v55  ;;  %vm1208_vm3 = vcmp.eq.s32.totalorder %v5833_v48, %v4855_v55 }
 0x17c   : > { %v3515_v2 = vadd.f32 %v3259_v17, %v2642_v32  ;;  %v919_v19 = vsel %vm587_vm1, %v4816_v39, 0.0  ;;  %v3523_v20 = vadd.f32 %v3267_v50, %v2650_v61  ;;  %v1528_v47 = vsel %vm1200_vm2, %v4881_v0, 0.0 }
 0x17d   : > { %vm2073_vm4 = vcmp.eq.s32.totalorder %v5830_v18, %v4918_v52  ;;  %v1536_v21 = vsel %vm1208_vm3, %v4881_v0, 0.0  ;;  %v1784_v36 = vadd.f32 %v1528_v47, %v911_v5  ;;  %vm2081_vm5 = vcmp.eq.s32.totalorder %v5833_v48, %v4918_v52 }
 0x17e   : > { %v2401_v49 = vsel %vm2073_vm4, %v4946_v34, 0.0  ;;  %v3715_v4 = vpack.c.bf16 %v3523_v20, %v3515_v2  ;;  %v1792_v9 = vadd.f32 %v1536_v21, %v919_v19  ;;  %v2409_v32 = vsel %vm2081_vm5, %v4946_v34, 0.0 }
 0x17f   : > { %vm2946_vm6 = vcmp.eq.s32.totalorder %v5830_v18, %v4981_v14  ;;  %v2657_v61 = vadd.f32 %v2401_v49, %v1784_v36  ;;  %vm2954_vm7 = vcmp.eq.s32.totalorder %v5833_v48, %v4981_v14  ;;  %vm581_vm8 = vcmp.eq.s32.totalorder %v5830_v18, %v4778_v25 }
 0x180   : > { %v3274_v17 = vsel %vm2946_vm6, %v5011_v7, 0.0  ;;  %3842 = vmatpush1.bf16.msra.mxu1 %v3715_v4  ;;  %v2665_v50 = vadd.f32 %v2409_v32, %v1792_v9  ;;  %v3282_v5 = vsel %vm2954_vm7, %v5011_v7, 0.0  ;;  %vm589_vm9 = vcmp.eq.s32.totalorder %v5833_v48, %v4778_v25 }
 0x181   : > { %v913_v2 = vsel %vm581_vm8, %v4822_v41, 0.0  ;;  %v3530_v19 = vadd.f32 %v3274_v17, %v2657_v61  ;;  %v921_v20 = vsel %vm589_vm9, %v4822_v41, 0.0  ;;  %vm1202_vm10 = vcmp.eq.s32.totalorder %v5830_v18, %v4861_v57 }
 0x182   : > { %vm1210_vm11 = vcmp.eq.s32.totalorder %v5833_v48, %v4861_v57  ;;  %v3538_v47 = vadd.f32 %v3282_v5, %v2665_v50  ;;  %v1530_v21 = vsel %vm1202_vm10, %v4887_v31, 0.0  ;;  %vm2075_vm12 = vcmp.eq.s32.totalorder %v5830_v18, %v4924_v62 }
 0x183   : > { %v1538_v36 = vsel %vm1210_vm11, %v4887_v31, 0.0  ;;  %v1786_v49 = vadd.f32 %v1530_v21, %v913_v2  ;;  %vm2083_vm13 = vcmp.eq.s32.totalorder %v5833_v48, %v4924_v62  ;;  %v2403_v9 = vsel %vm2075_vm12, %v4952_v44, 0.0 }
 0x184   : > { %v1794_v4 = vadd.f32 %v1538_v36, %v921_v20  ;;  %v3722_v32 = vpack.c.bf16 %v3538_v47, %v3530_v19  ;;  %v2411_v61 = vsel %vm2083_vm13, %v4952_v44, 0.0  ;;  %vm2948_vm14 = vcmp.eq.s32.totalorder %v5830_v18, %v4987_v15 }
 0x185   : > { %vm2956_vm15 = vcmp.eq.s32.totalorder %v5833_v48, %v4987_v15  ;;  %v2659_v17 = vadd.f32 %v2403_v9, %v1786_v49  ;;  %v3276_v5 = vsel %vm2948_vm14, %v5017_v46, 0.0  ;;  %vm578_vm0 = vcmp.eq.s32.totalorder %v5830_v18, %v4766_v22 }
 0x186   : > { %v2667_v50 = vadd.f32 %v2411_v61, %v1794_v4  ;;  %v3284_v2 = vsel %vm2956_vm15, %v5017_v46, 0.0  ;;  %3802 = vmatprep.subr.bf16.mxu0 %v3722_v32  ;;  %vm586_vm1 = vcmp.eq.s32.totalorder %v5833_v48, %v4766_v22  ;;  %vm1199_vm2 = vcmp.eq.s32.totalorder %v5830_v18, %v4852_v54 }
 0x187   : > { %vm1207_vm3 = vcmp.eq.s32.totalorder %v5833_v48, %v4852_v54  ;;  %v3532_v19 = vadd.f32 %v3276_v5, %v2659_v17  ;;  %v910_v47 = vsel %vm578_vm0, %v4813_v38, 0.0  ;;  %v918_v21 = vsel %vm586_vm1, %v4813_v38, 0.0 }
 0x188   : > { %v3540_v20 = vadd.f32 %v3284_v2, %v2667_v50  ;;  %v1527_v36 = vsel %vm1199_vm2, %v4878_v63, 0.0  ;;  %v1535_v49 = vsel %vm1207_vm3, %v4878_v63, 0.0  ;;  %vm2072_vm4 = vcmp.eq.s32.totalorder %v5830_v18, %v4915_v51 }
 0x189   : > { %vm2080_vm5 = vcmp.eq.s32.totalorder %v5833_v48, %v4915_v51  ;;  %v1783_v9 = vadd.f32 %v1527_v36, %v910_v47  ;;  %v1791_v32 = vadd.f32 %v1535_v49, %v918_v21  ;;  %v2400_v61 = vsel %vm2072_vm4, %v4943_v58, 0.0 }
 0x18a   : > { %v3724_v4 = vpack.c.bf16 %v3540_v20, %v3532_v19  ;;  %v2408_v17 = vsel %vm2080_vm5, %v4943_v58, 0.0  ;;  %vm2945_vm6 = vcmp.eq.s32.totalorder %v5830_v18, %v4978_v42  ;;  %vm2953_vm7 = vcmp.eq.s32.totalorder %v5833_v48, %v4978_v42 }
 0x18b   : > { %vm580_vm8 = vcmp.eq.s32.totalorder %v5830_v18, %v4774_v24  ;;  %v2656_v50 = vadd.f32 %v2400_v61, %v1783_v9  ;;  %v2664_v5 = vadd.f32 %v2408_v17, %v1791_v32  ;;  %v3273_v2 = vsel %vm2945_vm6, %v5008_v6, 0.0 }
 0x18c   : > { %3843 = vmatprep.subr.bf16.mxu1 %v3724_v4  ;;  %v3281_v19 = vsel %vm2953_vm7, %v5008_v6, 0.0  ;;  %vm588_vm9 = vcmp.eq.s32.totalorder %v5833_v48, %v4774_v24  ;;  %v912_v20 = vsel %vm580_vm8, %v4819_v40, 0.0  ;;  %vm1201_vm10 = vcmp.eq.s32.totalorder %v5830_v18, %v4858_v56 }
 0x18d   : > { %vm1209_vm11 = vcmp.eq.s32.totalorder %v5833_v48, %v4858_v56  ;;  %v3529_v47 = vadd.f32 %v3273_v2, %v2656_v50  ;;  %v3537_v21 = vadd.f32 %v3281_v19, %v2664_v5  ;;  %v920_v36 = vsel %vm588_vm9, %v4819_v40, 0.0 }
 0x18e   : > { %v1529_v49 = vsel %vm1201_vm10, %v4884_v30, 0.0  ;;  %v1537_v4 = vsel %vm1209_vm11, %v4884_v30, 0.0  ;;  %vm2074_vm12 = vcmp.eq.s32.totalorder %v5830_v18, %v4921_v53  ;;  %vm2082_vm13 = vcmp.eq.s32.totalorder %v5833_v48, %v4921_v53 }
 0x18f   : > { %v1785_v9 = vadd.f32 %v1529_v49, %v912_v20  ;;  %v3721_v32 = vpack.c.bf16 %v3537_v21, %v3529_v47  ;;  %v1793_v61 = vadd.f32 %v1537_v4, %v920_v36  ;;  %v2402_v17 = vsel %vm2074_vm12, %v4949_v26, 0.0 }
 0x190   : > { %v2410_v50 = vsel %vm2082_vm13, %v4949_v26, 0.0  ;;  %vm2947_vm14 = vcmp.eq.s32.totalorder %v5830_v18, %v4984_v35  ;;  %vm2955_vm15 = vcmp.eq.s32.totalorder %v5833_v48, %v4984_v35  ;;  %vm595_vm0 = vcmp.eq.s32.totalorder %v5836_v11, %v4770_v23 }
 0x191   : > { %v2658_v5 = vadd.f32 %v2402_v17, %v1785_v9  ;;  %3803 = vmatpush1.bf16.msra.mxu0 %v3721_v32  ;;  %v2666_v2 = vadd.f32 %v2410_v50, %v1793_v61  ;;  %v3275_v19 = vsel %vm2947_vm14, %v5014_v8, 0.0  ;;  %v3283_v20 = vsel %vm2955_vm15, %v5014_v8, 0.0 }
 0x192   : > { %vm603_vm1 = vcmp.eq.s32.totalorder %v5839_v3, %v4770_v23  ;;  %v927_v21 = vsel %vm595_vm0, %v4816_v39, 0.0  ;;  %vm1216_vm2 = vcmp.eq.s32.totalorder %v5836_v11, %v4855_v55  ;;  %vm1224_vm3 = vcmp.eq.s32.totalorder %v5839_v3, %v4855_v55 }
 0x193   : > { %v3531_v47 = vadd.f32 %v3275_v19, %v2658_v5  ;;  %v935_v36 = vsel %vm603_vm1, %v4816_v39, 0.0  ;;  %v3539_v49 = vadd.f32 %v3283_v20, %v2666_v2  ;;  %v1544_v4 = vsel %vm1216_vm2, %v4881_v0, 0.0 }
 0x194   : > { %vm2089_vm4 = vcmp.eq.s32.totalorder %v5836_v11, %v4918_v52  ;;  %v1552_v9 = vsel %vm1224_vm3, %v4881_v0, 0.0  ;;  %v1800_v32 = vadd.f32 %v1544_v4, %v927_v21  ;;  %vm2097_vm5 = vcmp.eq.s32.totalorder %v5839_v3, %v4918_v52 }
 0x195   : > { %v2417_v61 = vsel %vm2089_vm4, %v4946_v34, 0.0  ;;  %v3723_v17 = vpack.c.bf16 %v3539_v49, %v3531_v47  ;;  %v1808_v50 = vadd.f32 %v1552_v9, %v935_v36  ;;  %v2425_v5 = vsel %vm2097_vm5, %v4946_v34, 0.0 }
 0x196   : > { %vm2962_vm6 = vcmp.eq.s32.totalorder %v5836_v11, %v4981_v14  ;;  %v2673_v2 = vadd.f32 %v2417_v61, %v1800_v32  ;;  %vm2970_vm7 = vcmp.eq.s32.totalorder %v5839_v3, %v4981_v14  ;;  %vm597_vm8 = vcmp.eq.s32.totalorder %v5836_v11, %v4778_v25 }
 0x197   : > { %v3290_v19 = vsel %vm2962_vm6, %v5011_v7, 0.0  ;;  %3844 = vmatpush1.bf16.msra.mxu1 %v3723_v17  ;;  %v2681_v20 = vadd.f32 %v2425_v5, %v1808_v50  ;;  %v3298_v21 = vsel %vm2970_vm7, %v5011_v7, 0.0  ;;  %vm605_vm9 = vcmp.eq.s32.totalorder %v5839_v3, %v4778_v25 }
 0x198   : > { %v929_v47 = vsel %vm597_vm8, %v4822_v41, 0.0  ;;  %v3546_v36 = vadd.f32 %v3290_v19, %v2673_v2  ;;  %v937_v49 = vsel %vm605_vm9, %v4822_v41, 0.0  ;;  %vm1218_vm10 = vcmp.eq.s32.totalorder %v5836_v11, %v4861_v57 }
 0x199   : > { %vm1226_vm11 = vcmp.eq.s32.totalorder %v5839_v3, %v4861_v57  ;;  %v3554_v4 = vadd.f32 %v3298_v21, %v2681_v20  ;;  %v1546_v9 = vsel %vm1218_vm10, %v4887_v31, 0.0  ;;  %vm2091_vm12 = vcmp.eq.s32.totalorder %v5836_v11, %v4924_v62 }
 0x19a   : > { %v1554_v32 = vsel %vm1226_vm11, %v4887_v31, 0.0  ;;  %v1802_v61 = vadd.f32 %v1546_v9, %v929_v47  ;;  %vm2099_vm13 = vcmp.eq.s32.totalorder %v5839_v3, %v4924_v62  ;;  %v2419_v50 = vsel %vm2091_vm12, %v4952_v44, 0.0 }
 0x19b   : > { %v1810_v17 = vadd.f32 %v1554_v32, %v937_v49  ;;  %v3730_v5 = vpack.c.bf16 %v3554_v4, %v3546_v36  ;;  %v2427_v2 = vsel %vm2099_vm13, %v4952_v44, 0.0  ;;  %vm2964_vm14 = vcmp.eq.s32.totalorder %v5836_v11, %v4987_v15 }
 0x19c   : > { %vm2972_vm15 = vcmp.eq.s32.totalorder %v5839_v3, %v4987_v15  ;;  %v2675_v19 = vadd.f32 %v2419_v50, %v1802_v61  ;;  %v3292_v21 = vsel %vm2964_vm14, %v5017_v46, 0.0  ;;  %vm594_vm0 = vcmp.eq.s32.totalorder %v5836_v11, %v4766_v22 }
 0x19d   : > { %v2683_v20 = vadd.f32 %v2427_v2, %v1810_v17  ;;  %v3300_v47 = vsel %vm2972_vm15, %v5017_v46, 0.0  ;;  %3804 = vmatprep.subr.bf16.mxu0 %v3730_v5  ;;  %vm602_vm1 = vcmp.eq.s32.totalorder %v5839_v3, %v4766_v22  ;;  %vm1215_vm2 = vcmp.eq.s32.totalorder %v5836_v11, %v4852_v54 }
 0x19e   : > { %vm1223_vm3 = vcmp.eq.s32.totalorder %v5839_v3, %v4852_v54  ;;  %v3548_v36 = vadd.f32 %v3292_v21, %v2675_v19  ;;  %v926_v4 = vsel %vm594_vm0, %v4813_v38, 0.0  ;;  %v934_v9 = vsel %vm602_vm1, %v4813_v38, 0.0 }
 0x19f   : > { %v3556_v49 = vadd.f32 %v3300_v47, %v2683_v20  ;;  %v1543_v32 = vsel %vm1215_vm2, %v4878_v63, 0.0  ;;  %v1551_v61 = vsel %vm1223_vm3, %v4878_v63, 0.0  ;;  %vm2088_vm4 = vcmp.eq.s32.totalorder %v5836_v11, %v4915_v51 }
 0x1a0   : > { %vm2096_vm5 = vcmp.eq.s32.totalorder %v5839_v3, %v4915_v51  ;;  %v1799_v50 = vadd.f32 %v1543_v32, %v926_v4  ;;  %v1807_v5 = vadd.f32 %v1551_v61, %v934_v9  ;;  %v2416_v2 = vsel %vm2088_vm4, %v4943_v58, 0.0 }
 0x1a1   : > { %v3732_v17 = vpack.c.bf16 %v3556_v49, %v3548_v36  ;;  %v2424_v19 = vsel %vm2096_vm5, %v4943_v58, 0.0  ;;  %vm2961_vm6 = vcmp.eq.s32.totalorder %v5836_v11, %v4978_v42  ;;  %vm2969_vm7 = vcmp.eq.s32.totalorder %v5839_v3, %v4978_v42 }
 0x1a2   : > { %vm596_vm8 = vcmp.eq.s32.totalorder %v5836_v11, %v4774_v24  ;;  %v2672_v20 = vadd.f32 %v2416_v2, %v1799_v50  ;;  %v2680_v21 = vadd.f32 %v2424_v19, %v1807_v5  ;;  %v3289_v47 = vsel %vm2961_vm6, %v5008_v6, 0.0 }
 0x1a3   : > { %3845 = vmatprep.subr.bf16.mxu1 %v3732_v17  ;;  %v3297_v36 = vsel %vm2969_vm7, %v5008_v6, 0.0  ;;  %vm604_vm9 = vcmp.eq.s32.totalorder %v5839_v3, %v4774_v24  ;;  %v928_v49 = vsel %vm596_vm8, %v4819_v40, 0.0  ;;  %vm1217_vm10 = vcmp.eq.s32.totalorder %v5836_v11, %v4858_v56 }
 0x1a4   : > { %vm1225_vm11 = vcmp.eq.s32.totalorder %v5839_v3, %v4858_v56  ;;  %v3545_v4 = vadd.f32 %v3289_v47, %v2672_v20  ;;  %v3553_v9 = vadd.f32 %v3297_v36, %v2680_v21  ;;  %v936_v32 = vsel %vm604_vm9, %v4819_v40, 0.0 }
 0x1a5   : > { %v1545_v61 = vsel %vm1217_vm10, %v4884_v30, 0.0  ;;  %v1553_v17 = vsel %vm1225_vm11, %v4884_v30, 0.0  ;;  %vm2090_vm12 = vcmp.eq.s32.totalorder %v5836_v11, %v4921_v53  ;;  %vm2098_vm13 = vcmp.eq.s32.totalorder %v5839_v3, %v4921_v53 }
 0x1a6   : > { %v1801_v50 = vadd.f32 %v1545_v61, %v928_v49  ;;  %v3729_v5 = vpack.c.bf16 %v3553_v9, %v3545_v4  ;;  %v1809_v2 = vadd.f32 %v1553_v17, %v936_v32  ;;  %v2418_v19 = vsel %vm2090_vm12, %v4949_v26, 0.0 }
 0x1a7   : > { %v2426_v20 = vsel %vm2098_vm13, %v4949_v26, 0.0  ;;  %vm2963_vm14 = vcmp.eq.s32.totalorder %v5836_v11, %v4984_v35  ;;  %vm2971_vm15 = vcmp.eq.s32.totalorder %v5839_v3, %v4984_v35  ;;  %v6128_v47 = vadd.s32 176, %v4707_v1 }
 0x1a8   : > { %v2674_v21 = vadd.f32 %v2418_v19, %v1801_v50  ;;  %3805 = vmatpush1.bf16.msra.mxu0 %v3729_v5  ;;  %v2682_v36 = vadd.f32 %v2426_v20, %v1809_v2  ;;  %v3291_v49 = vsel %vm2963_vm14, %v5014_v8, 0.0  ;;  %v3299_v4 = vsel %vm2971_vm15, %v5014_v8, 0.0 }
 0x1a9   : > { %8398 = vst [vmem:[#allocation63_spill] sm:$0xff] %v6128_v47  ;;  %v6133_v9 = vadd.s32 184, %v4707_v1  ;;  %vm611_vm0 = vcmp.eq.s32.totalorder %v6128_v47, %v4770_v23  ;;  %vm1232_vm1 = vcmp.eq.s32.totalorder %v6128_v47, %v4855_v55  ;;  %vm2105_vm2 = vcmp.eq.s32.totalorder %v6128_v47, %v4918_v52 }
 0x1aa   : > { %v3547_v32 = vadd.f32 %v3291_v49, %v2674_v21  ;;  %v3555_v61 = vadd.f32 %v3299_v4, %v2682_v36  ;;  %v943_v17 = vsel %vm611_vm0, %v4816_v39, 0.0  ;;  %v1560_v5 = vsel %vm1232_vm1, %v4881_v0, 0.0 }
 0x1ab   : > { %8399 = vst [vmem:[#allocation64_spill] sm:$0xff] %v6133_v9  ;;  %vm619_vm3 = vcmp.eq.s32.totalorder %v6133_v9, %v4770_v23  ;;  %vm1240_vm4 = vcmp.eq.s32.totalorder %v6133_v9, %v4855_v55  ;;  %vm2113_vm5 = vcmp.eq.s32.totalorder %v6133_v9, %v4918_v52  ;;  %v1816_v20 = vadd.f32 %v1560_v5, %v943_v17 }
 0x1ac   : > { %v951_v50 = vsel %vm619_vm3, %v4816_v39, 0.0  ;;  %v1568_v2 = vsel %vm1240_vm4, %v4881_v0, 0.0  ;;  %v3731_v19 = vpack.c.bf16 %v3555_v61, %v3547_v32  ;;  %v2433_v36 = vsel %vm2105_vm2, %v4946_v34, 0.0 }
 0x1ad   : > { %v1824_v21 = vadd.f32 %v1568_v2, %v951_v50  ;;  %v2441_v49 = vsel %vm2113_vm5, %v4946_v34, 0.0  ;;  %vm2978_vm6 = vcmp.eq.s32.totalorder %v6128_v47, %v4981_v14  ;;  %vm2986_vm7 = vcmp.eq.s32.totalorder %v6133_v9, %v4981_v14 }
 0x1ae   : > { %vm613_vm8 = vcmp.eq.s32.totalorder %v6128_v47, %v4778_v25  ;;  %3846 = vmatpush1.bf16.msra.mxu1 %v3731_v19  ;;  %v2689_v4 = vadd.f32 %v2433_v36, %v1816_v20  ;;  %v3306_v32 = vsel %vm2978_vm6, %v5011_v7, 0.0  ;;  %v3314_v61 = vsel %vm2986_vm7, %v5011_v7, 0.0 }
 0x1af   : > { %v2697_v3 = vadd.f32 %v2441_v49, %v1824_v21  ;;  %vm621_vm9 = vcmp.eq.s32.totalorder %v6133_v9, %v4778_v25  ;;  %v945_v17 = vsel %vm613_vm8, %v4822_v41, 0.0  ;;  %vm1234_vm10 = vcmp.eq.s32.totalorder %v6128_v47, %v4861_v57 }
 0x1b0   : > { %vm1242_vm11 = vcmp.eq.s32.totalorder %v6133_v9, %v4861_v57  ;;  %v3562_v50 = vadd.f32 %v3306_v32, %v2689_v4  ;;  %v953_v2 = vsel %vm621_vm9, %v4822_v41, 0.0  ;;  %v1562_v19 = vsel %vm1234_vm10, %v4887_v31, 0.0 }
 0x1b1   : > { %v3570_v5 = vadd.f32 %v3314_v61, %v2697_v3  ;;  %v1570_v20 = vsel %vm1242_vm11, %v4887_v31, 0.0  ;;  %v1818_v21 = vadd.f32 %v1562_v19, %v945_v17  ;;  %vm2107_vm12 = vcmp.eq.s32.totalorder %v6128_v47, %v4924_v62 }
 0x1b2   : > { %vm2115_vm13 = vcmp.eq.s32.totalorder %v6133_v9, %v4924_v62  ;;  %v1826_v49 = vadd.f32 %v1570_v20, %v953_v2  ;;  %v2435_v11 = vsel %vm2107_vm12, %v4952_v44, 0.0  ;;  %vm2980_vm14 = vcmp.eq.s32.totalorder %v6128_v47, %v4987_v15 }
 0x1b3   : > { %v3738_v36 = vpack.c.bf16 %v3570_v5, %v3562_v50  ;;  %v2443_v4 = vsel %vm2115_vm13, %v4952_v44, 0.0  ;;  %v2691_v3 = vadd.f32 %v2435_v11, %v1818_v21  ;;  %vm2988_vm15 = vcmp.eq.s32.totalorder %v6133_v9, %v4987_v15 }
 0x1b4   : > { %vm610_vm0 = vcmp.eq.s32.totalorder %v6128_v47, %v4766_v22  ;;  %v2699_v32 = vadd.f32 %v2443_v4, %v1826_v49  ;;  %v3308_v61 = vsel %vm2980_vm14, %v5017_v46, 0.0  ;;  %v3316_v17 = vsel %vm2988_vm15, %v5017_v46, 0.0 }
 0x1b5   : > { %3806 = vmatprep.subr.bf16.mxu0 %v3738_v36  ;;  %vm618_vm1 = vcmp.eq.s32.totalorder %v6133_v9, %v4766_v22  ;;  %v3564_v50 = vadd.f32 %v3308_v61, %v2691_v3  ;;  %v942_v11 = vsel %vm610_vm0, %v4813_v38, 0.0  ;;  %vm1231_vm2 = vcmp.eq.s32.totalorder %v6128_v47, %v4852_v54 }
 0x1b6   : > { %v950_v5 = vsel %vm618_vm1, %v4813_v38, 0.0  ;;  %v3572_v2 = vadd.f32 %v3316_v17, %v2699_v32  ;;  %vm1239_vm3 = vcmp.eq.s32.totalorder %v6133_v9, %v4852_v54  ;;  %v1559_v19 = vsel %vm1231_vm2, %v4878_v63, 0.0 }
 0x1b7   : > { %vm2104_vm4 = vcmp.eq.s32.totalorder %v6128_v47, %v4915_v51  ;;  %v1567_v20 = vsel %vm1239_vm3, %v4878_v63, 0.0  ;;  %v1815_v21 = vadd.f32 %v1559_v19, %v942_v11  ;;  %vm2112_vm5 = vcmp.eq.s32.totalorder %v6133_v9, %v4915_v51 }
 0x1b8   : > { %v2432_v36 = vsel %vm2104_vm4, %v4943_v58, 0.0  ;;  %v3740_v49 = vpack.c.bf16 %v3572_v2, %v3564_v50  ;;  %v1823_v4 = vadd.f32 %v1567_v20, %v950_v5  ;;  %v2440_v3 = vsel %vm2112_vm5, %v4943_v58, 0.0 }
 0x1b9   : > { %vm2977_vm6 = vcmp.eq.s32.totalorder %v6128_v47, %v4978_v42  ;;  %v2688_v32 = vadd.f32 %v2432_v36, %v1815_v21  ;;  %vm2985_vm7 = vcmp.eq.s32.totalorder %v6133_v9, %v4978_v42  ;;  %vm612_vm8 = vcmp.eq.s32.totalorder %v6128_v47, %v4774_v24 }
 0x1ba   : > { %v3305_v61 = vsel %vm2977_vm6, %v5008_v6, 0.0  ;;  %3847 = vmatprep.subr.bf16.mxu1 %v3740_v49  ;;  %v2696_v17 = vadd.f32 %v2440_v3, %v1823_v4  ;;  %v3313_v11 = vsel %vm2985_vm7, %v5008_v6, 0.0  ;;  %vm620_vm9 = vcmp.eq.s32.totalorder %v6133_v9, %v4774_v24 }
 0x1bb   : > { %v944_v50 = vsel %vm612_vm8, %v4819_v40, 0.0  ;;  %v3561_v5 = vadd.f32 %v3305_v61, %v2688_v32  ;;  %v952_v2 = vsel %vm620_vm9, %v4819_v40, 0.0  ;;  %vm1233_vm10 = vcmp.eq.s32.totalorder %v6128_v47, %v4858_v56 }
 0x1bc   : > { %vm1241_vm11 = vcmp.eq.s32.totalorder %v6133_v9, %v4858_v56  ;;  %v3569_v19 = vadd.f32 %v3313_v11, %v2696_v17  ;;  %v1561_v20 = vsel %vm1233_vm10, %v4884_v30, 0.0  ;;  %vm2106_vm12 = vcmp.eq.s32.totalorder %v6128_v47, %v4921_v53 }
 0x1bd   : > { %v1569_v21 = vsel %vm1241_vm11, %v4884_v30, 0.0  ;;  %v1817_v36 = vadd.f32 %v1561_v20, %v944_v50  ;;  %vm2114_vm13 = vcmp.eq.s32.totalorder %v6133_v9, %v4921_v53  ;;  %v2434_v4 = vsel %vm2106_vm12, %v4949_v26, 0.0 }
 0x1be   : > { %v1825_v49 = vadd.f32 %v1569_v21, %v952_v2  ;;  %v3737_v3 = vpack.c.bf16 %v3569_v19, %v3561_v5  ;;  %v2442_v32 = vsel %vm2114_vm13, %v4949_v26, 0.0  ;;  %vm2979_vm14 = vcmp.eq.s32.totalorder %v6128_v47, %v4984_v35 }
 0x1bf   : > { %vm2987_vm15 = vcmp.eq.s32.totalorder %v6133_v9, %v4984_v35  ;;  %v2690_v61 = vadd.f32 %v2434_v4, %v1817_v36  ;;  %v3307_v11 = vsel %vm2979_vm14, %v5014_v8, 0.0  ;;  %v6232_v2 = vadd.s32 192, %v4707_v1 }
 0x1c0   : > { %v2698_v17 = vadd.f32 %v2442_v32, %v1825_v49  ;;  %v3315_v50 = vsel %vm2987_vm15, %v5014_v8, 0.0  ;;  %3807 = vmatpush1.bf16.msra.mxu0 %v3737_v3  ;;  %v6235_v5 = vadd.s32 200, %v4707_v1  ;;  %v6238_v19 = vadd.s32 208, %v4707_v1 }
 0x1c1   : > { %v6241_v20 = vadd.s32 216, %v4707_v1  ;;  %v3563_v21 = vadd.f32 %v3307_v11, %v2690_v61  ;;  %v6244_v49 = vadd.s32 224, %v4707_v1  ;;  %v6247_v4 = vadd.s32 232, %v4707_v1 }
 0x1c2   : > { %v3571_v36 = vadd.f32 %v3315_v50, %v2698_v17  ;;  %vm627_vm0 = vcmp.eq.s32.totalorder %v6232_v2, %v4770_v23  ;;  %vm635_vm1 = vcmp.eq.s32.totalorder %v6235_v5, %v4770_v23  ;;  %vm1248_vm2 = vcmp.eq.s32.totalorder %v6232_v2, %v4855_v55 }
 0x1c3   : > { %vm1256_vm3 = vcmp.eq.s32.totalorder %v6235_v5, %v4855_v55  ;;  %v959_v32 = vsel %vm627_vm0, %v4816_v39, 0.0  ;;  %v967_v61 = vsel %vm635_vm1, %v4816_v39, 0.0  ;;  %v1576_v17 = vsel %vm1248_vm2, %v4881_v0, 0.0 }
 0x1c4   : > { %v3739_v3 = vpack.c.bf16 %v3571_v36, %v3563_v21  ;;  %v1584_v11 = vsel %vm1256_vm3, %v4881_v0, 0.0  ;;  %v1832_v50 = vadd.f32 %v1576_v17, %v959_v32  ;;  %vm2121_vm4 = vcmp.eq.s32.totalorder %v6232_v2, %v4918_v52 }
 0x1c5   : > { %vm2129_vm5 = vcmp.eq.s32.totalorder %v6235_v5, %v4918_v52  ;;  %v1840_v9 = vadd.f32 %v1584_v11, %v967_v61  ;;  %v2449_v47 = vsel %vm2121_vm4, %v4946_v34, 0.0  ;;  %vm2994_vm6 = vcmp.eq.s32.totalorder %v6232_v2, %v4981_v14 }
 0x1c6   : > { %3848 = vmatpush1.bf16.msra.mxu1 %v3739_v3  ;;  %v2457_v21 = vsel %vm2129_vm5, %v4946_v34, 0.0  ;;  %v2705_v36 = vadd.f32 %v2449_v47, %v1832_v50  ;;  %vm3002_vm7 = vcmp.eq.s32.totalorder %v6235_v5, %v4981_v14  ;;  %v3322_v32 = vsel %vm2994_vm6, %v5011_v7, 0.0 }
 0x1c7   : > { %vm629_vm8 = vcmp.eq.s32.totalorder %v6232_v2, %v4778_v25  ;;  %v2713_v17 = vadd.f32 %v2457_v21, %v1840_v9  ;;  %v3330_v3 = vsel %vm3002_vm7, %v5011_v7, 0.0  ;;  %vm637_vm9 = vcmp.eq.s32.totalorder %v6235_v5, %v4778_v25 }
 0x1c8   : > { %v961_v61 = vsel %vm629_vm8, %v4822_v41, 0.0  ;;  %v3578_v11 = vadd.f32 %v3322_v32, %v2705_v36  ;;  %v969_v48 = vsel %vm637_vm9, %v4822_v41, 0.0  ;;  %vm1250_vm10 = vcmp.eq.s32.totalorder %v6232_v2, %v4861_v57 }
 0x1c9   : > { %vm1258_vm11 = vcmp.eq.s32.totalorder %v6235_v5, %v4861_v57  ;;  %v3586_v47 = vadd.f32 %v3330_v3, %v2713_v17  ;;  %v1578_v50 = vsel %vm1250_vm10, %v4887_v31, 0.0  ;;  %vm2123_vm12 = vcmp.eq.s32.totalorder %v6232_v2, %v4924_v62 }
 0x1ca   : > { %v1586_v9 = vsel %vm1258_vm11, %v4887_v31, 0.0  ;;  %v1834_v21 = vadd.f32 %v1578_v50, %v961_v61  ;;  %vm2131_vm13 = vcmp.eq.s32.totalorder %v6235_v5, %v4924_v62  ;;  %v2451_v36 = vsel %vm2123_vm12, %v4952_v44, 0.0 }
 0x1cb   : > { %v1842_v18 = vadd.f32 %v1586_v9, %v969_v48  ;;  %v3746_v32 = vpack.c.bf16 %v3586_v47, %v3578_v11  ;;  %v2459_v13 = vsel %vm2131_vm13, %v4952_v44, 0.0  ;;  %vm2996_vm14 = vcmp.eq.s32.totalorder %v6232_v2, %v4987_v15 }
 0x1cc   : > { %vm3004_vm15 = vcmp.eq.s32.totalorder %v6235_v5, %v4987_v15  ;;  %v2707_v17 = vadd.f32 %v2451_v36, %v1834_v21  ;;  %v3324_v12 = vsel %vm2996_vm14, %v5017_v46, 0.0  ;;  %vm626_vm0 = vcmp.eq.s32.totalorder %v6232_v2, %v4766_v22 }
 0x1cd   : > { %v2715_v3 = vadd.f32 %v2459_v13, %v1842_v18  ;;  %v3332_v48 = vsel %vm3004_vm15, %v5017_v46, 0.0  ;;  %3808 = vmatprep.subr.bf16.mxu0 %v3746_v32  ;;  %vm634_vm1 = vcmp.eq.s32.totalorder %v6235_v5, %v4766_v22  ;;  %vm1247_vm2 = vcmp.eq.s32.totalorder %v6232_v2, %v4852_v54 }
 0x1ce   : > { %vm1255_vm3 = vcmp.eq.s32.totalorder %v6235_v5, %v4852_v54  ;;  %v3580_v61 = vadd.f32 %v3324_v12, %v2707_v17  ;;  %v958_v13 = vsel %vm626_vm0, %v4813_v38, 0.0  ;;  %v966_v18 = vsel %vm634_vm1, %v4813_v38, 0.0 }
 0x1cf   : > { %v3588_v11 = vadd.f32 %v3332_v48, %v2715_v3  ;;  %v1575_v47 = vsel %vm1247_vm2, %v4878_v63, 0.0  ;;  %v1583_v50 = vsel %vm1255_vm3, %v4878_v63, 0.0  ;;  %vm2120_vm4 = vcmp.eq.s32.totalorder %v6232_v2, %v4915_v51 }
 0x1d0   : > { %vm2128_vm5 = vcmp.eq.s32.totalorder %v6235_v5, %v4915_v51  ;;  %v1831_v21 = vadd.f32 %v1575_v47, %v958_v13  ;;  %v1839_v36 = vadd.f32 %v1583_v50, %v966_v18  ;;  %v2448_v12 = vsel %vm2120_vm4, %v4943_v58, 0.0 }
 0x1d1   : > { %v3748_v9 = vpack.c.bf16 %v3588_v11, %v3580_v61  ;;  %v2456_v32 = vsel %vm2128_vm5, %v4943_v58, 0.0  ;;  %vm2993_vm6 = vcmp.eq.s32.totalorder %v6232_v2, %v4978_v42  ;;  %vm3001_vm7 = vcmp.eq.s32.totalorder %v6235_v5, %v4978_v42 }
 0x1d2   : > { %vm628_vm8 = vcmp.eq.s32.totalorder %v6232_v2, %v4774_v24  ;;  %v2704_v17 = vadd.f32 %v2448_v12, %v1831_v21  ;;  %v2712_v3 = vadd.f32 %v2456_v32, %v1839_v36  ;;  %v3321_v48 = vsel %vm2993_vm6, %v5008_v6, 0.0 }
 0x1d3   : > { %3849 = vmatprep.subr.bf16.mxu1 %v3748_v9  ;;  %v3329_v61 = vsel %vm3001_vm7, %v5008_v6, 0.0  ;;  %vm636_vm9 = vcmp.eq.s32.totalorder %v6235_v5, %v4774_v24  ;;  %v960_v11 = vsel %vm628_vm8, %v4819_v40, 0.0  ;;  %vm1249_vm10 = vcmp.eq.s32.totalorder %v6232_v2, %v4858_v56 }
 0x1d4   : > { %vm1257_vm11 = vcmp.eq.s32.totalorder %v6235_v5, %v4858_v56  ;;  %v3577_v13 = vadd.f32 %v3321_v48, %v2704_v17  ;;  %v3585_v18 = vadd.f32 %v3329_v61, %v2712_v3  ;;  %v968_v47 = vsel %vm636_vm9, %v4819_v40, 0.0 }
 0x1d5   : > { %v1577_v50 = vsel %vm1249_vm10, %v4884_v30, 0.0  ;;  %v1585_v9 = vsel %vm1257_vm11, %v4884_v30, 0.0  ;;  %vm2122_vm12 = vcmp.eq.s32.totalorder %v6232_v2, %v4921_v53  ;;  %vm2130_vm13 = vcmp.eq.s32.totalorder %v6235_v5, %v4921_v53 }
 0x1d6   : > { %v1833_v21 = vadd.f32 %v1577_v50, %v960_v11  ;;  %v3745_v36 = vpack.c.bf16 %v3585_v18, %v3577_v13  ;;  %v1841_v12 = vadd.f32 %v1585_v9, %v968_v47  ;;  %v2450_v32 = vsel %vm2122_vm12, %v4949_v26, 0.0 }
 0x1d7   : > { %v2458_v17 = vsel %vm2130_vm13, %v4949_v26, 0.0  ;;  %vm2995_vm14 = vcmp.eq.s32.totalorder %v6232_v2, %v4984_v35  ;;  %vm3003_vm15 = vcmp.eq.s32.totalorder %v6235_v5, %v4984_v35  ;;  %vm643_vm0 = vcmp.eq.s32.totalorder %v6238_v19, %v4770_v23 }
 0x1d8   : > { %v2706_v3 = vadd.f32 %v2450_v32, %v1833_v21  ;;  %3809 = vmatpush1.bf16.msra.mxu0 %v3745_v36  ;;  %v2714_v48 = vadd.f32 %v2458_v17, %v1841_v12  ;;  %v3323_v61 = vsel %vm2995_vm14, %v5014_v8, 0.0  ;;  %v3331_v11 = vsel %vm3003_vm15, %v5014_v8, 0.0 }
 0x1d9   : > { %vm651_vm1 = vcmp.eq.s32.totalorder %v6241_v20, %v4770_v23  ;;  %v975_v18 = vsel %vm643_vm0, %v4816_v39, 0.0  ;;  %vm1264_vm2 = vcmp.eq.s32.totalorder %v6238_v19, %v4855_v55  ;;  %vm1272_vm3 = vcmp.eq.s32.totalorder %v6241_v20, %v4855_v55 }
 0x1da   : > { %v3579_v13 = vadd.f32 %v3323_v61, %v2706_v3  ;;  %v983_v47 = vsel %vm651_vm1, %v4816_v39, 0.0  ;;  %v3587_v50 = vadd.f32 %v3331_v11, %v2714_v48  ;;  %v1592_v9 = vsel %vm1264_vm2, %v4881_v0, 0.0 }
 0x1db   : > { %vm2137_vm4 = vcmp.eq.s32.totalorder %v6238_v19, %v4918_v52  ;;  %v1600_v21 = vsel %vm1272_vm3, %v4881_v0, 0.0  ;;  %v1848_v36 = vadd.f32 %v1592_v9, %v975_v18  ;;  %vm2145_vm5 = vcmp.eq.s32.totalorder %v6241_v20, %v4918_v52 }
 0x1dc   : > { %v2465_v12 = vsel %vm2137_vm4, %v4946_v34, 0.0  ;;  %v3747_v32 = vpack.c.bf16 %v3587_v50, %v3579_v13  ;;  %v1856_v17 = vadd.f32 %v1600_v21, %v983_v47  ;;  %v2473_v3 = vsel %vm2145_vm5, %v4946_v34, 0.0 }
 0x1dd   : > { %vm3010_vm6 = vcmp.eq.s32.totalorder %v6238_v19, %v4981_v14  ;;  %v2721_v48 = vadd.f32 %v2465_v12, %v1848_v36  ;;  %vm3018_vm7 = vcmp.eq.s32.totalorder %v6241_v20, %v4981_v14  ;;  %vm645_vm8 = vcmp.eq.s32.totalorder %v6238_v19, %v4778_v25 }
 0x1de   : > { %v3338_v61 = vsel %vm3010_vm6, %v5011_v7, 0.0  ;;  %3850 = vmatpush1.bf16.msra.mxu1 %v3747_v32  ;;  %v2729_v11 = vadd.f32 %v2473_v3, %v1856_v17  ;;  %v3346_v18 = vsel %vm3018_vm7, %v5011_v7, 0.0  ;;  %vm653_vm9 = vcmp.eq.s32.totalorder %v6241_v20, %v4778_v25 }
 0x1df   : > { %v977_v13 = vsel %vm645_vm8, %v4822_v41, 0.0  ;;  %v3594_v47 = vadd.f32 %v3338_v61, %v2721_v48  ;;  %v985_v50 = vsel %vm653_vm9, %v4822_v41, 0.0  ;;  %vm1266_vm10 = vcmp.eq.s32.totalorder %v6238_v19, %v4861_v57 }
 0x1e0   : > { %vm1274_vm11 = vcmp.eq.s32.totalorder %v6241_v20, %v4861_v57  ;;  %v3602_v9 = vadd.f32 %v3346_v18, %v2729_v11  ;;  %v1594_v21 = vsel %vm1266_vm10, %v4887_v31, 0.0  ;;  %vm2139_vm12 = vcmp.eq.s32.totalorder %v6238_v19, %v4924_v62 }
 0x1e1   : > { %v1602_v36 = vsel %vm1274_vm11, %v4887_v31, 0.0  ;;  %v1850_v12 = vadd.f32 %v1594_v21, %v977_v13  ;;  %vm2147_vm13 = vcmp.eq.s32.totalorder %v6241_v20, %v4924_v62  ;;  %v2467_v17 = vsel %vm2139_vm12, %v4952_v44, 0.0 }
 0x1e2   : > { %v1858_v32 = vadd.f32 %v1602_v36, %v985_v50  ;;  %v3754_v3 = vpack.c.bf16 %v3602_v9, %v3594_v47  ;;  %v2475_v48 = vsel %vm2147_vm13, %v4952_v44, 0.0  ;;  %vm3012_vm14 = vcmp.eq.s32.totalorder %v6238_v19, %v4987_v15 }
 0x1e3   : > { %vm3020_vm15 = vcmp.eq.s32.totalorder %v6241_v20, %v4987_v15  ;;  %v2723_v61 = vadd.f32 %v2467_v17, %v1850_v12  ;;  %v3340_v18 = vsel %vm3012_vm14, %v5017_v46, 0.0  ;;  %vm642_vm0 = vcmp.eq.s32.totalorder %v6238_v19, %v4766_v22 }
 0x1e4   : > { %v2731_v11 = vadd.f32 %v2475_v48, %v1858_v32  ;;  %v3348_v13 = vsel %vm3020_vm15, %v5017_v46, 0.0  ;;  %3810 = vmatprep.subr.bf16.mxu0 %v3754_v3  ;;  %vm650_vm1 = vcmp.eq.s32.totalorder %v6241_v20, %v4766_v22  ;;  %vm1263_vm2 = vcmp.eq.s32.totalorder %v6238_v19, %v4852_v54 }
 0x1e5   : > { %vm1271_vm3 = vcmp.eq.s32.totalorder %v6241_v20, %v4852_v54  ;;  %v3596_v47 = vadd.f32 %v3340_v18, %v2723_v61  ;;  %v974_v9 = vsel %vm642_vm0, %v4813_v38, 0.0  ;;  %v982_v21 = vsel %vm650_vm1, %v4813_v38, 0.0 }
 0x1e6   : > { %v3604_v50 = vadd.f32 %v3348_v13, %v2731_v11  ;;  %v1591_v36 = vsel %vm1263_vm2, %v4878_v63, 0.0  ;;  %v1599_v12 = vsel %vm1271_vm3, %v4878_v63, 0.0  ;;  %vm2136_vm4 = vcmp.eq.s32.totalorder %v6238_v19, %v4915_v51 }
 0x1e7   : > { %vm2144_vm5 = vcmp.eq.s32.totalorder %v6241_v20, %v4915_v51  ;;  %v1847_v17 = vadd.f32 %v1591_v36, %v974_v9  ;;  %v1855_v3 = vadd.f32 %v1599_v12, %v982_v21  ;;  %v2464_v48 = vsel %vm2136_vm4, %v4943_v58, 0.0 }
 0x1e8   : > { %v3756_v32 = vpack.c.bf16 %v3604_v50, %v3596_v47  ;;  %v2472_v61 = vsel %vm2144_vm5, %v4943_v58, 0.0  ;;  %vm3009_vm6 = vcmp.eq.s32.totalorder %v6238_v19, %v4978_v42  ;;  %vm3017_vm7 = vcmp.eq.s32.totalorder %v6241_v20, %v4978_v42 }
 0x1e9   : > { %vm644_vm8 = vcmp.eq.s32.totalorder %v6238_v19, %v4774_v24  ;;  %v2720_v11 = vadd.f32 %v2464_v48, %v1847_v17  ;;  %v2728_v18 = vadd.f32 %v2472_v61, %v1855_v3  ;;  %v3337_v13 = vsel %vm3009_vm6, %v5008_v6, 0.0 }
 0x1ea   : > { %3851 = vmatprep.subr.bf16.mxu1 %v3756_v32  ;;  %v3345_v47 = vsel %vm3017_vm7, %v5008_v6, 0.0  ;;  %vm652_vm9 = vcmp.eq.s32.totalorder %v6241_v20, %v4774_v24  ;;  %v976_v50 = vsel %vm644_vm8, %v4819_v40, 0.0  ;;  %vm1265_vm10 = vcmp.eq.s32.totalorder %v6238_v19, %v4858_v56 }
 0x1eb   : > { %vm1273_vm11 = vcmp.eq.s32.totalorder %v6241_v20, %v4858_v56  ;;  %v3593_v9 = vadd.f32 %v3337_v13, %v2720_v11  ;;  %v3601_v21 = vadd.f32 %v3345_v47, %v2728_v18  ;;  %v984_v36 = vsel %vm652_vm9, %v4819_v40, 0.0 }
 0x1ec   : > { %v1593_v12 = vsel %vm1265_vm10, %v4884_v30, 0.0  ;;  %v1601_v32 = vsel %vm1273_vm11, %v4884_v30, 0.0  ;;  %vm2138_vm12 = vcmp.eq.s32.totalorder %v6238_v19, %v4921_v53  ;;  %vm2146_vm13 = vcmp.eq.s32.totalorder %v6241_v20, %v4921_v53 }
 0x1ed   : > { %v1849_v17 = vadd.f32 %v1593_v12, %v976_v50  ;;  %v3753_v3 = vpack.c.bf16 %v3601_v21, %v3593_v9  ;;  %v1857_v48 = vadd.f32 %v1601_v32, %v984_v36  ;;  %v2466_v61 = vsel %vm2138_vm12, %v4949_v26, 0.0 }
 0x1ee   : > { %v2474_v11 = vsel %vm2146_vm13, %v4949_v26, 0.0  ;;  %vm3011_vm14 = vcmp.eq.s32.totalorder %v6238_v19, %v4984_v35  ;;  %vm3019_vm15 = vcmp.eq.s32.totalorder %v6241_v20, %v4984_v35  ;;  %vm659_vm0 = vcmp.eq.s32.totalorder %v6244_v49, %v4770_v23 }
 0x1ef   : > { %v2722_v18 = vadd.f32 %v2466_v61, %v1849_v17  ;;  %3811 = vmatpush1.bf16.msra.mxu0 %v3753_v3  ;;  %v2730_v13 = vadd.f32 %v2474_v11, %v1857_v48  ;;  %v3339_v47 = vsel %vm3011_vm14, %v5014_v8, 0.0  ;;  %v3347_v50 = vsel %vm3019_vm15, %v5014_v8, 0.0 }
 0x1f0   : > { %vm667_vm1 = vcmp.eq.s32.totalorder %v6247_v4, %v4770_v23  ;;  %v991_v21 = vsel %vm659_vm0, %v4816_v39, 0.0  ;;  %vm1280_vm2 = vcmp.eq.s32.totalorder %v6244_v49, %v4855_v55  ;;  %vm1288_vm3 = vcmp.eq.s32.totalorder %v6247_v4, %v4855_v55 }
 0x1f1   : > { %v3595_v9 = vadd.f32 %v3339_v47, %v2722_v18  ;;  %v999_v36 = vsel %vm667_vm1, %v4816_v39, 0.0  ;;  %v3603_v12 = vadd.f32 %v3347_v50, %v2730_v13  ;;  %v1608_v32 = vsel %vm1280_vm2, %v4881_v0, 0.0 }
 0x1f2   : > { %vm2153_vm4 = vcmp.eq.s32.totalorder %v6244_v49, %v4918_v52  ;;  %v1616_v17 = vsel %vm1288_vm3, %v4881_v0, 0.0  ;;  %v1864_v3 = vadd.f32 %v1608_v32, %v991_v21  ;;  %vm2161_vm5 = vcmp.eq.s32.totalorder %v6247_v4, %v4918_v52 }
 0x1f3   : > { %v2481_v48 = vsel %vm2153_vm4, %v4946_v34, 0.0  ;;  %v3755_v61 = vpack.c.bf16 %v3603_v12, %v3595_v9  ;;  %v1872_v11 = vadd.f32 %v1616_v17, %v999_v36  ;;  %v2489_v18 = vsel %vm2161_vm5, %v4946_v34, 0.0 }
 0x1f4   : > { %vm3026_vm6 = vcmp.eq.s32.totalorder %v6244_v49, %v4981_v14  ;;  %v2737_v13 = vadd.f32 %v2481_v48, %v1864_v3  ;;  %vm3034_vm7 = vcmp.eq.s32.totalorder %v6247_v4, %v4981_v14  ;;  %vm661_vm8 = vcmp.eq.s32.totalorder %v6244_v49, %v4778_v25 }
 0x1f5   : > { %v3354_v47 = vsel %vm3026_vm6, %v5011_v7, 0.0  ;;  %3852 = vmatpush1.bf16.msra.mxu1 %v3755_v61  ;;  %v2745_v50 = vadd.f32 %v2489_v18, %v1872_v11  ;;  %v3362_v21 = vsel %vm3034_vm7, %v5011_v7, 0.0  ;;  %vm669_vm9 = vcmp.eq.s32.totalorder %v6247_v4, %v4778_v25 }
 0x1f6   : > { %v993_v9 = vsel %vm661_vm8, %v4822_v41, 0.0  ;;  %v3610_v36 = vadd.f32 %v3354_v47, %v2737_v13  ;;  %v1001_v12 = vsel %vm669_vm9, %v4822_v41, 0.0  ;;  %vm1282_vm10 = vcmp.eq.s32.totalorder %v6244_v49, %v4861_v57 }
 0x1f7   : > { %vm1290_vm11 = vcmp.eq.s32.totalorder %v6247_v4, %v4861_v57  ;;  %v3618_v32 = vadd.f32 %v3362_v21, %v2745_v50  ;;  %v1610_v17 = vsel %vm1282_vm10, %v4887_v31, 0.0  ;;  %vm2155_vm12 = vcmp.eq.s32.totalorder %v6244_v49, %v4924_v62 }
 0x1f8   : > { %v1618_v3 = vsel %vm1290_vm11, %v4887_v31, 0.0  ;;  %v1866_v48 = vadd.f32 %v1610_v17, %v993_v9  ;;  %vm2163_vm13 = vcmp.eq.s32.totalorder %v6247_v4, %v4924_v62  ;;  %v2483_v11 = vsel %vm2155_vm12, %v4952_v44, 0.0 }
 0x1f9   : > { %v1874_v61 = vadd.f32 %v1618_v3, %v1001_v12  ;;  %v3762_v18 = vpack.c.bf16 %v3618_v32, %v3610_v36  ;;  %v2491_v13 = vsel %vm2163_vm13, %v4952_v44, 0.0  ;;  %vm3028_vm14 = vcmp.eq.s32.totalorder %v6244_v49, %v4987_v15 }
 0x1fa   : > { %vm3036_vm15 = vcmp.eq.s32.totalorder %v6247_v4, %v4987_v15  ;;  %v2739_v47 = vadd.f32 %v2483_v11, %v1866_v48  ;;  %v3356_v21 = vsel %vm3028_vm14, %v5017_v46, 0.0  ;;  %vm658_vm0 = vcmp.eq.s32.totalorder %v6244_v49, %v4766_v22 }
 0x1fb   : > { %v2747_v50 = vadd.f32 %v2491_v13, %v1874_v61  ;;  %v3364_v9 = vsel %vm3036_vm15, %v5017_v46, 0.0  ;;  %3812 = vmatprep.subr.bf16.mxu0 %v3762_v18  ;;  %vm666_vm1 = vcmp.eq.s32.totalorder %v6247_v4, %v4766_v22  ;;  %vm1279_vm2 = vcmp.eq.s32.totalorder %v6244_v49, %v4852_v54 }
 0x1fc   : > { %vm1287_vm3 = vcmp.eq.s32.totalorder %v6247_v4, %v4852_v54  ;;  %v3612_v36 = vadd.f32 %v3356_v21, %v2739_v47  ;;  %v990_v32 = vsel %vm658_vm0, %v4813_v38, 0.0  ;;  %v998_v17 = vsel %vm666_vm1, %v4813_v38, 0.0 }
 0x1fd   : > { %v3620_v12 = vadd.f32 %v3364_v9, %v2747_v50  ;;  %v1607_v3 = vsel %vm1279_vm2, %v4878_v63, 0.0  ;;  %v1615_v48 = vsel %vm1287_vm3, %v4878_v63, 0.0  ;;  %vm2152_vm4 = vcmp.eq.s32.totalorder %v6244_v49, %v4915_v51 }
 0x1fe   : > { %vm2160_vm5 = vcmp.eq.s32.totalorder %v6247_v4, %v4915_v51  ;;  %v1863_v11 = vadd.f32 %v1607_v3, %v990_v32  ;;  %v1871_v18 = vadd.f32 %v1615_v48, %v998_v17  ;;  %v2480_v13 = vsel %vm2152_vm4, %v4943_v58, 0.0 }
 0x1ff   : > { %v3764_v61 = vpack.c.bf16 %v3620_v12, %v3612_v36  ;;  %v2488_v47 = vsel %vm2160_vm5, %v4943_v58, 0.0  ;;  %vm3025_vm6 = vcmp.eq.s32.totalorder %v6244_v49, %v4978_v42  ;;  %vm3033_vm7 = vcmp.eq.s32.totalorder %v6247_v4, %v4978_v42 }
 0x200   : > { %vm660_vm8 = vcmp.eq.s32.totalorder %v6244_v49, %v4774_v24  ;;  %v2736_v50 = vadd.f32 %v2480_v13, %v1863_v11  ;;  %v2744_v21 = vadd.f32 %v2488_v47, %v1871_v18  ;;  %v3353_v9 = vsel %vm3025_vm6, %v5008_v6, 0.0 }
 0x201   : > { %3853 = vmatprep.subr.bf16.mxu1 %v3764_v61  ;;  %v3361_v36 = vsel %vm3033_vm7, %v5008_v6, 0.0  ;;  %vm668_vm9 = vcmp.eq.s32.totalorder %v6247_v4, %v4774_v24  ;;  %v992_v12 = vsel %vm660_vm8, %v4819_v40, 0.0  ;;  %vm1281_vm10 = vcmp.eq.s32.totalorder %v6244_v49, %v4858_v56 }
 0x202   : > { %vm1289_vm11 = vcmp.eq.s32.totalorder %v6247_v4, %v4858_v56  ;;  %v3609_v32 = vadd.f32 %v3353_v9, %v2736_v50  ;;  %v3617_v17 = vadd.f32 %v3361_v36, %v2744_v21  ;;  %v1000_v3 = vsel %vm668_vm9, %v4819_v40, 0.0 }
 0x203   : > { %v1609_v48 = vsel %vm1281_vm10, %v4884_v30, 0.0  ;;  %v1617_v61 = vsel %vm1289_vm11, %v4884_v30, 0.0  ;;  %vm2154_vm12 = vcmp.eq.s32.totalorder %v6244_v49, %v4921_v53  ;;  %vm2162_vm13 = vcmp.eq.s32.totalorder %v6247_v4, %v4921_v53 }
 0x204   : > { %v1865_v11 = vadd.f32 %v1609_v48, %v992_v12  ;;  %v3761_v18 = vpack.c.bf16 %v3617_v17, %v3609_v32  ;;  %v1873_v13 = vadd.f32 %v1617_v61, %v1000_v3  ;;  %v2482_v47 = vsel %vm2154_vm12, %v4949_v26, 0.0 }
 0x205   : > { %v2490_v50 = vsel %vm2162_vm13, %v4949_v26, 0.0  ;;  %vm3027_vm14 = vcmp.eq.s32.totalorder %v6244_v49, %v4984_v35  ;;  %vm3035_vm15 = vcmp.eq.s32.totalorder %v6247_v4, %v4984_v35  ;;  %v6536_v9 = vadd.s32 240, %v4707_v1 }
 0x206   : > { %v2738_v21 = vadd.f32 %v2482_v47, %v1865_v11  ;;  %3813 = vmatpush1.bf16.msra.mxu0 %v3761_v18  ;;  %v2746_v36 = vadd.f32 %v2490_v50, %v1873_v13  ;;  %v3355_v12 = vsel %vm3027_vm14, %v5014_v8, 0.0  ;;  %v3363_v32 = vsel %vm3035_vm15, %v5014_v8, 0.0 }
 0x207   : > { %v6541_v17 = vadd.s32 248, %v4707_v1  ;;  %vm675_vm0 = vcmp.eq.s32.totalorder %v6536_v9, %v4770_v23  ;;  %vm1296_vm1 = vcmp.eq.s32.totalorder %v6536_v9, %v4855_v55  ;;  %vm2169_vm2 = vcmp.eq.s32.totalorder %v6536_v9, %v4918_v52 }
 0x208   : > { %v3611_v3 = vadd.f32 %v3355_v12, %v2738_v21  ;;  %v3619_v48 = vadd.f32 %v3363_v32, %v2746_v36  ;;  %v1007_v61 = vsel %vm675_vm0, %v4816_v39, 0.0  ;;  %v1624_v18 = vsel %vm1296_vm1, %v4881_v0, 0.0 }
 0x209   : > { %vm683_vm3 = vcmp.eq.s32.totalorder %v6541_v17, %v4770_v23  ;;  %vm1304_vm4 = vcmp.eq.s32.totalorder %v6541_v17, %v4855_v55  ;;  %vm2177_vm5 = vcmp.eq.s32.totalorder %v6541_v17, %v4918_v52  ;;  %v1880_v50 = vadd.f32 %v1624_v18, %v1007_v61 }
 0x20a   : > { %v1015_v11 = vsel %vm683_vm3, %v4816_v39, 0.0  ;;  %v1632_v13 = vsel %vm1304_vm4, %v4881_v0, 0.0  ;;  %v3763_v47 = vpack.c.bf16 %v3619_v48, %v3611_v3  ;;  %v2497_v36 = vsel %vm2169_vm2, %v4946_v34, 0.0 }
 0x20b   : > { %v1888_v21 = vadd.f32 %v1632_v13, %v1015_v11  ;;  %v2505_v23 = vsel %vm2177_vm5, %v4946_v34, 0.0  ;;  %vm3042_vm6 = vcmp.eq.s32.totalorder %v6536_v9, %v4981_v14  ;;  %vm3050_vm7 = vcmp.eq.s32.totalorder %v6541_v17, %v4981_v14 }
 0x20c   : > { %vm677_vm8 = vcmp.eq.s32.totalorder %v6536_v9, %v4778_v25  ;;  %3854 = vmatpush1.bf16.msra.mxu1 %v3763_v47  ;;  %v2753_v39 = vadd.f32 %v2497_v36, %v1880_v50  ;;  %v3370_v0 = vsel %vm3042_vm6, %v5011_v7, 0.0  ;;  %v3378_v52 = vsel %vm3050_vm7, %v5011_v7, 0.0 }
 0x20d   : > { %v2761_v55 = vadd.f32 %v2505_v23, %v1888_v21  ;;  %vm685_vm9 = vcmp.eq.s32.totalorder %v6541_v17, %v4778_v25  ;;  %v1009_v34 = vsel %vm677_vm8, %v4822_v41, 0.0  ;;  %vm1298_vm10 = vcmp.eq.s32.totalorder %v6536_v9, %v4861_v57 }
 0x20e   : > { %vm1306_vm11 = vcmp.eq.s32.totalorder %v6541_v17, %v4861_v57  ;;  %v3626_v14 = vadd.f32 %v3370_v0, %v2753_v39  ;;  %v1017_v32 = vsel %vm685_vm9, %v4822_v41, 0.0  ;;  %v1626_v3 = vsel %vm1298_vm10, %v4887_v31, 0.0 }
 0x20f   : > { %v3634_v12 = vadd.f32 %v3378_v52, %v2761_v55  ;;  %v1634_v48 = vsel %vm1306_vm11, %v4887_v31, 0.0  ;;  %v1882_v7 = vadd.f32 %v1626_v3, %v1009_v34  ;;  %vm2171_vm12 = vcmp.eq.s32.totalorder %v6536_v9, %v4924_v62 }
 0x210   : > { %vm2179_vm13 = vcmp.eq.s32.totalorder %v6541_v17, %v4924_v62  ;;  %v1890_v61 = vadd.f32 %v1634_v48, %v1017_v32  ;;  %v2499_v11 = vsel %vm2171_vm12, %v4952_v44, 0.0  ;;  %vm3044_vm14 = vcmp.eq.s32.totalorder %v6536_v9, %v4987_v15 }
 0x211   : > { %v3770_v25 = vpack.c.bf16 %v3634_v12, %v3626_v14  ;;  %v2507_v57 = vsel %vm2179_vm13, %v4952_v44, 0.0  ;;  %v2755_v18 = vadd.f32 %v2499_v11, %v1882_v7  ;;  %vm3052_vm15 = vcmp.eq.s32.totalorder %v6541_v17, %v4987_v15  ;;  %v329_v14 = vld [vmem:[%s4695_s4] sm:$0xff] }
 0x212   : > { %vm674_vm0 = vcmp.eq.s32.totalorder %v6536_v9, %v4766_v22  ;;  %v2763_v41 = vadd.f32 %v2507_v57, %v1890_v61  ;;  %v3372_v31 = vsel %vm3044_vm14, %v5017_v46, 0.0  ;;  %v3380_v62 = vsel %vm3052_vm15, %v5017_v46, 0.0 }
 0x213   : > { %3814 = vmatprep.subr.bf16.mxu0 %v3770_v25  ;;  %vm682_vm1 = vcmp.eq.s32.totalorder %v6541_v17, %v4766_v22  ;;  %v3628_v44 = vadd.f32 %v3372_v31, %v2755_v18  ;;  %v1006_v13 = vsel %vm674_vm0, %v4813_v38, 0.0  ;;  %vm1295_vm2 = vcmp.eq.s32.totalorder %v6536_v9, %v4852_v54 }
 0x214   : > { %v1014_v47 = vsel %vm682_vm1, %v4813_v38, 0.0  ;;  %v3636_v15 = vadd.f32 %v3380_v62, %v2763_v41  ;;  %vm1303_vm3 = vcmp.eq.s32.totalorder %v6541_v17, %v4852_v54  ;;  %v1623_v50 = vsel %vm1295_vm2, %v4878_v63, 0.0 }
 0x215   : > { %vm2168_vm4 = vcmp.eq.s32.totalorder %v6536_v9, %v4915_v51  ;;  %v1631_v46 = vsel %vm1303_vm3, %v4878_v63, 0.0  ;;  %v1879_v22 = vadd.f32 %v1623_v50, %v1006_v13  ;;  %vm2176_vm5 = vcmp.eq.s32.totalorder %v6541_v17, %v4915_v51 }
 0x216   : > { %v2496_v38 = vsel %vm2168_vm4, %v4943_v58, 0.0  ;;  %v3772_v21 = vpack.c.bf16 %v3636_v15, %v3628_v44  ;;  %v1887_v36 = vadd.f32 %v1631_v46, %v1014_v47  ;;  %v2504_v23 = vsel %vm2176_vm5, %v4943_v58, 0.0 }
 0x217   : > { %vm3041_vm6 = vcmp.eq.s32.totalorder %v6536_v9, %v4978_v42  ;;  %v2752_v54 = vadd.f32 %v2496_v38, %v1879_v22  ;;  %vm3049_vm7 = vcmp.eq.s32.totalorder %v6541_v17, %v4978_v42  ;;  %vm676_vm8 = vcmp.eq.s32.totalorder %v6536_v9, %v4774_v24  ;;  %v8400_v22 = vld [vmem:[#allocation33_spill] sm:$0xff] }
 0x218   : > { %v3369_v39 = vsel %vm3041_vm6, %v5008_v6, 0.0  ;;  %3855 = vmatprep.subr.bf16.mxu1 %v3772_v21  ;;  %v2760_v63 = vadd.f32 %v2504_v23, %v1887_v36  ;;  %v3377_v51 = vsel %vm3049_vm7, %v5008_v6, 0.0  ;;  %vm684_vm9 = vcmp.eq.s32.totalorder %v6541_v17, %v4774_v24  ;;  %v8401_v36 = vld [vmem:[#allocation36_spill] sm:$0xff] }
 0x219   : > { %v1008_v58 = vsel %vm676_vm8, %v4819_v40, 0.0  ;;  %v3625_v55 = vadd.f32 %v3369_v39, %v2752_v54  ;;  %v1016_v0 = vsel %vm684_vm9, %v4819_v40, 0.0  ;;  %vm1297_vm10 = vcmp.eq.s32.totalorder %v6536_v9, %v4858_v56 }
 0x21a   : > { %vm1305_vm11 = vcmp.eq.s32.totalorder %v6541_v17, %v4858_v56  ;;  %v3633_v42 = vadd.f32 %v3377_v51, %v2760_v63  ;;  %v1625_v52 = vsel %vm1297_vm10, %v4884_v30, 0.0  ;;  %vm2170_vm12 = vcmp.eq.s32.totalorder %v6536_v9, %v4921_v53  ;;  %v8402_v51 = vld [vmem:[#allocation39_spill] sm:$0xff] }
 0x21b   : > { %v1633_v34 = vsel %vm1305_vm11, %v4884_v30, 0.0  ;;  %v1881_v24 = vadd.f32 %v1625_v52, %v1008_v58  ;;  %vm2178_vm13 = vcmp.eq.s32.totalorder %v6541_v17, %v4921_v53  ;;  %v2498_v40 = vsel %vm2170_vm12, %v4949_v26, 0.0  ;;  %v8404_v52 = vld [vmem:[#allocation45_spill] sm:$0xff] }
 0x21c   : > { %v1889_v6 = vadd.f32 %v1633_v34, %v1016_v0  ;;  %v3769_v12 = vpack.c.bf16 %v3633_v42, %v3625_v55  ;;  %v2506_v32 = vsel %vm2178_vm13, %v4949_v26, 0.0  ;;  %vm3043_vm14 = vcmp.eq.s32.totalorder %v6536_v9, %v4984_v35  ;;  %v8403_v55 = vld [vmem:[#allocation42_spill] sm:$0xff] }
 0x21d   : > { %vm3051_vm15 = vcmp.eq.s32.totalorder %v6541_v17, %v4984_v35  ;;  %v2754_v56 = vadd.f32 %v2498_v40, %v1881_v24  ;;  %v3371_v3 = vsel %vm3043_vm14, %v5014_v8, 0.0  ;;  %v4174_v53 = vcombine.high %v329_v14, %v329_v14 }
 0x21e   : > { %v2762_v30 = vadd.f32 %v2506_v32, %v1889_v6  ;;  %v3379_v48 = vsel %vm3051_vm15, %v5014_v8, 0.0  ;;  %3815 = vmatpush1.bf16.msra.mxu0 %v3769_v12  ;;  %v6640_v7 = vcombine.low %v329_v14, %v329_v14  ;;  %vm439_vm0 = vcmp.eq.s32.totalorder %v4707_v1, %v4786_v27  ;;  %v8405_v6 = vld [vmem:[#allocation48_spill] sm:$0xff]  ;;  %v8406_v12 = vld [vmem:[#allocation27_spill] sm:$0xff] }
 0x21f   : > { %vm447_vm1 = vcmp.eq.s32.totalorder %v4734_v10, %v4786_v27  ;;  %v3627_v26 = vadd.f32 %v3371_v3, %v2754_v56  ;;  %v771_v35 = vsel %vm439_vm0, %v4828_v43, 0.0  ;;  %3816 = vmatprep.mubr.bf16.mxu0 %v4174_v53  ;;  %3857 = vmatprep.mubr.bf16.mxu1 %v4174_v53  ;;  %vm1060_vm2 = vcmp.eq.s32.totalorder %v4707_v1, %v4867_v59  ;;  %v8407_v32 = vld [vmem:[#allocation31_spill] sm:$0xff]  ;;  %v8408_v3 = vld [vmem:[#allocation29_spill] sm:$0xff] }
 0x220   : > { %v3635_v25 = vadd.f32 %v3379_v48, %v2762_v30  ;;  %v779_v61 = vsel %vm447_vm1, %v4828_v43, 0.0  ;;  %vm1068_vm3 = vcmp.eq.s32.totalorder %v4734_v10, %v4867_v59  ;;  %vm1933_vm4 = vcmp.eq.s32.totalorder %v4707_v1, %v4930_v60 }
 0x221   : > { %3817 = vmatmul.mubr.bf16.vlgmr.msra.gmra.mrb[0].mxu0 %v6640_v7  ;;  %v1388_v11 = vsel %vm1060_vm2, %v4893_v33, 0.0  ;;  %v1396_v57 = vsel %vm1068_vm3, %v4893_v33, 0.0  ;;  %vm1941_vm5 = vcmp.eq.s32.totalorder %v4734_v10, %v4930_v60  ;;  %v2261_v31 = vsel %vm1933_vm4, %v4958_v28, 0.0 }
 0x222   : > { %v3771_v8 = vpack.c.bf16 %v3635_v25, %v3627_v26  ;;  %v1644_v18 = vadd.f32 %v1388_v11, %v771_v35  ;;  %v1652_v41 = vadd.f32 %v1396_v57, %v779_v61  ;;  %v2269_v62 = vsel %vm1941_vm5, %v4958_v28, 0.0  ;;  %3898 = vmatprep.mubr.bf16.mxu0 %v4174_v53  ;;  %v8409_v26 = vld [vmem:[#allocation34_spill] sm:$0xff]  ;;  %v8410_v35 = vld [vmem:[#allocation37_spill] sm:$0xff]  ;;  %v8411_v57 = vld [vmem:[#allocation40_spill] sm:$0xff] }
 0x223   : > { %vm2806_vm6 = vcmp.eq.s32.totalorder %v4707_v1, %v4993_v16  ;;  %vm2814_vm7 = vcmp.eq.s32.totalorder %v4734_v10, %v4993_v16  ;;  %vm441_vm8 = vcmp.eq.s32.totalorder %v4707_v1, %v4794_v29  ;;  %vm449_vm9 = vcmp.eq.s32.totalorder %v4734_v10, %v4794_v29 }
 0x224   : > { %3856 = vmatpush1.bf16.msra.mxu1 %v3771_v8  ;;  %v2517_v44 = vadd.f32 %v2261_v31, %v1644_v18  ;;  %v2525_v13 = vadd.f32 %v2269_v62, %v1652_v41  ;;  %v3134_v47 = vsel %vm2806_vm6, %v5023_v37, 0.0  ;;  %v3142_v15 = vsel %vm2814_vm7, %v5023_v37, 0.0  ;;  %v8412_v62 = vld [vmem:[#allocation43_spill] sm:$0xff] }
 0x225   : > { %v773_v50 = vsel %vm441_vm8, %v4834_v45, 0.0  ;;  %v781_v46 = vsel %vm449_vm9, %v4834_v45, 0.0  ;;  %vm1062_vm10 = vcmp.eq.s32.totalorder %v4707_v1, %v8400_v22  ;;  %vm1070_vm11 = vcmp.eq.s32.totalorder %v4734_v10, %v8400_v22 }
 0x226   : > { %v3390_v38 = vadd.f32 %v3134_v47, %v2517_v44  ;;  %v3398_v21 = vadd.f32 %v3142_v15, %v2525_v13  ;;  %v1390_v23 = vsel %vm1062_vm10, %v8401_v36, 0.0  ;;  %v1398_v54 = vsel %vm1070_vm11, %v8401_v36, 0.0  ;;  %v8413_v13 = vld [vmem:[#allocation46_spill] sm:$0xff] }
 0x227   : > { %3858 = vmatmul.mubr.bf16.vlgmr.msra.gmra.mrb[0].mxu1 %v6640_v7  ;;  %v1646_v39 = vadd.f32 %v1390_v23, %v773_v50  ;;  %v1654_v63 = vadd.f32 %v1398_v54, %v781_v46  ;;  %vm1935_vm12 = vcmp.eq.s32.totalorder %v4707_v1, %v8402_v51  ;;  %vm1943_vm13 = vcmp.eq.s32.totalorder %v4734_v10, %v8402_v51  ;;  %v8414_v50 = vld [vmem:[#allocation28_spill] sm:$0xff] }
 0x228   : > { %3939 = vmatprep.mubr.bf16.mxu1 %v4174_v53  ;;  %v3654_v58 = vpack.c.bf16 %v3398_v21, %v3390_v38  ;;  %v2263_v0 = vsel %vm1935_vm12, %v8403_v55, 0.0  ;;  %v2271_v42 = vsel %vm1943_vm13, %v8403_v55, 0.0  ;;  %vm2808_vm14 = vcmp.eq.s32.totalorder %v4707_v1, %v8404_v52  ;;  %v8415_v38 = vld [vmem:[#allocation30_spill] sm:$0xff]  ;;  %v8416_v23 = vld [vmem:[#allocation32_spill] sm:$0xff] }
 0x229   : > { %v2519_v34 = vadd.f32 %v2263_v0, %v1646_v39  ;;  %v2527_v24 = vadd.f32 %v2271_v42, %v1654_v63  ;;  %vm2816_vm15 = vcmp.eq.s32.totalorder %v4734_v10, %v8404_v52  ;;  %v3136_v40 = vsel %vm2808_vm14, %v8405_v6, 0.0  ;;  %v8417_v63 = vld [vmem:[#allocation35_spill] sm:$0xff] }
 0x22a   : > { %3866 = vmatprep.subr.bf16.mxu0 %v3654_v58  ;;  %v3144_v14 = vsel %vm2816_vm15, %v8405_v6, 0.0  ;;  %vm438_vm0 = vcmp.eq.s32.totalorder %v4707_v1, %v8406_v12  ;;  %vm446_vm1 = vcmp.eq.s32.totalorder %v4734_v10, %v8406_v12  ;;  %vm1059_vm2 = vcmp.eq.s32.totalorder %v4707_v1, %v8407_v32 }
 0x22b   : > { %v3392_v56 = vadd.f32 %v3136_v40, %v2519_v34  ;;  %v3400_v30 = vadd.f32 %v3144_v14, %v2527_v24  ;;  %v770_v48 = vsel %vm438_vm0, %v8408_v3, 0.0  ;;  %v778_v53 = vsel %vm446_vm1, %v8408_v3, 0.0  ;;  %v8418_v24 = vld [vmem:[#allocation38_spill] sm:$0xff]  ;;  %v8419_v14 = vld [vmem:[#allocation41_spill] sm:$0xff] }
 0x22c   : > { %vm1067_vm3 = vcmp.eq.s32.totalorder %v4734_v10, %v8407_v32  ;;  %v1387_v25 = vsel %vm1059_vm2, %v8409_v26, 0.0  ;;  %vm1932_vm4 = vcmp.eq.s32.totalorder %v4707_v1, %v8410_v35  ;;  %vm1940_vm5 = vcmp.eq.s32.totalorder %v4734_v10, %v8410_v35 }
 0x22d   : > { %v3656_v61 = vpack.c.bf16 %v3400_v30, %v3392_v56  ;;  %v1395_v8 = vsel %vm1067_vm3, %v8409_v26, 0.0  ;;  %v1643_v11 = vadd.f32 %v1387_v25, %v770_v48  ;;  %v2260_v18 = vsel %vm1932_vm4, %v8411_v57, 0.0  ;;  %v8420_v30 = vld [vmem:[#allocation44_spill] sm:$0xff] }
 0x22e   : > { %v1651_v41 = vadd.f32 %v1395_v8, %v778_v53  ;;  %v2268_v31 = vsel %vm1940_vm5, %v8411_v57, 0.0  ;;  %vm2805_vm6 = vcmp.eq.s32.totalorder %v4707_v1, %v8412_v62  ;;  %vm2813_vm7 = vcmp.eq.s32.totalorder %v4734_v10, %v8412_v62  ;;  %v8421_v8 = vld [vmem:[#allocation47_spill] sm:$0xff] }
 0x22f   : > { %3907 = vmatprep.subr.bf16.mxu1 %v3656_v61  ;;  %v2516_v44 = vadd.f32 %v2260_v18, %v1643_v11  ;;  %v3133_v47 = vsel %vm2805_vm6, %v8413_v13, 0.0  ;;  %v3141_v15 = vsel %vm2813_vm7, %v8413_v13, 0.0  ;;  %vm440_vm8 = vcmp.eq.s32.totalorder %v4707_v1, %v8414_v50 }
 0x230   : > { %v2524_v46 = vadd.f32 %v2268_v31, %v1651_v41  ;;  %vm448_vm9 = vcmp.eq.s32.totalorder %v4734_v10, %v8414_v50  ;;  %v772_v21 = vsel %vm440_vm8, %v8415_v38, 0.0  ;;  %vm1061_vm10 = vcmp.eq.s32.totalorder %v4707_v1, %v8416_v23  ;;  %v8422_v41 = vld [vmem:[#allocation21_spill] sm:$0xff] }
 0x231   : > { %v3389_v54 = vadd.f32 %v3133_v47, %v2516_v44  ;;  %v780_v39 = vsel %vm448_vm9, %v8415_v38, 0.0  ;;  %vm1069_vm11 = vcmp.eq.s32.totalorder %v4734_v10, %v8416_v23  ;;  %v1389_v58 = vsel %vm1061_vm10, %v8417_v63, 0.0  ;;  %v8423_v44 = vld [vmem:[#allocation22_spill] sm:$0xff] }
 0x232   : > { %v3397_v0 = vadd.f32 %v3141_v15, %v2524_v46  ;;  %v1397_v42 = vsel %vm1069_vm11, %v8417_v63, 0.0  ;;  %v1645_v34 = vadd.f32 %v1389_v58, %v772_v21  ;;  %vm1934_vm12 = vcmp.eq.s32.totalorder %v4707_v1, %v8418_v24 }
 0x233   : > { %v1653_v40 = vadd.f32 %v1397_v42, %v780_v39  ;;  %vm1942_vm13 = vcmp.eq.s32.totalorder %v4734_v10, %v8418_v24  ;;  %v2262_v56 = vsel %vm1934_vm12, %v8419_v14, 0.0  ;;  %vm2807_vm14 = vcmp.eq.s32.totalorder %v4707_v1, %v8420_v30 }
 0x234   : > { %v3653_v48 = vpack.c.bf16 %v3397_v0, %v3389_v54  ;;  %v2270_v53 = vsel %vm1942_vm13, %v8419_v14, 0.0  ;;  %v2518_v25 = vadd.f32 %v2262_v56, %v1645_v34  ;;  %vm2815_vm15 = vcmp.eq.s32.totalorder %v4734_v10, %v8420_v30 }
 0x235   : > { %v2526_v61 = vadd.f32 %v2270_v53, %v1653_v40  ;;  %v3135_v11 = vsel %vm2807_vm14, %v8421_v8, 0.0  ;;  %v3143_v18 = vsel %vm2815_vm15, %v8421_v8, 0.0  ;;  %vm455_vm0 = vcmp.eq.s32.totalorder %v8422_v41, %v4786_v27 }
 0x236   : > { %3867 = vmatpush1.bf16.msra.mxu0 %v3653_v48  ;;  %v3391_v31 = vadd.f32 %v3135_v11, %v2518_v25  ;;  %vm463_vm1 = vcmp.eq.s32.totalorder %v8423_v44, %v4786_v27  ;;  %v787_v1 = vsel %vm455_vm0, %v4828_v43, 0.0  ;;  %vm1076_vm2 = vcmp.eq.s32.totalorder %v8422_v41, %v4867_v59 }
 0x237   : > { %v3399_v47 = vadd.f32 %v3143_v18, %v2526_v61  ;;  %v795_v10 = vsel %vm463_vm1, %v4828_v43, 0.0  ;;  %vm1084_vm3 = vcmp.eq.s32.totalorder %v8423_v44, %v4867_v59  ;;  %v1404_v15 = vsel %vm1076_vm2, %v4893_v33, 0.0 }
 0x238   : > { %v1412_v46 = vsel %vm1084_vm3, %v4893_v33, 0.0  ;;  %v1660_v21 = vadd.f32 %v1404_v15, %v787_v1  ;;  %vm1949_vm4 = vcmp.eq.s32.totalorder %v8422_v41, %v4930_v60  ;;  %vm1957_vm5 = vcmp.eq.s32.totalorder %v8423_v44, %v4930_v60 }
 0x239   : > { %v3655_v54 = vpack.c.bf16 %v3399_v47, %v3391_v31  ;;  %v1668_v39 = vadd.f32 %v1412_v46, %v795_v10  ;;  %v2277_v58 = vsel %vm1949_vm4, %v4958_v28, 0.0  ;;  %v2285_v0 = vsel %vm1957_vm5, %v4958_v28, 0.0 }
 0x23a   : > { %v2533_v42 = vadd.f32 %v2277_v58, %v1660_v21  ;;  %vm2822_vm6 = vcmp.eq.s32.totalorder %v8422_v41, %v4993_v16  ;;  %vm2830_vm7 = vcmp.eq.s32.totalorder %v8423_v44, %v4993_v16  ;;  %vm457_vm8 = vcmp.eq.s32.totalorder %v8422_v41, %v4794_v29 }
 0x23b   : > { %3908 = vmatpush1.bf16.msra.mxu1 %v3655_v54  ;;  %v2541_v34 = vadd.f32 %v2285_v0, %v1668_v39  ;;  %v3150_v40 = vsel %vm2822_vm6, %v5023_v37, 0.0  ;;  %v3158_v56 = vsel %vm2830_vm7, %v5023_v37, 0.0  ;;  %vm465_vm9 = vcmp.eq.s32.totalorder %v8423_v44, %v4794_v29 }
 0x23c   : > { %v3406_v48 = vadd.f32 %v3150_v40, %v2533_v42  ;;  %v789_v53 = vsel %vm457_vm8, %v4834_v45, 0.0  ;;  %v797_v25 = vsel %vm465_vm9, %v4834_v45, 0.0  ;;  %vm1078_vm10 = vcmp.eq.s32.totalorder %v8422_v41, %v8400_v22 }
 0x23d   : > { %v3414_v61 = vadd.f32 %v3158_v56, %v2541_v34  ;;  %vm1086_vm11 = vcmp.eq.s32.totalorder %v8423_v44, %v8400_v22  ;;  %v1406_v11 = vsel %vm1078_vm10, %v8401_v36, 0.0  ;;  %vm1951_vm12 = vcmp.eq.s32.totalorder %v8422_v41, %v8402_v51 }
 0x23e   : > { %v1414_v18 = vsel %vm1086_vm11, %v8401_v36, 0.0  ;;  %v1662_v31 = vadd.f32 %v1406_v11, %v789_v53  ;;  %vm1959_vm13 = vcmp.eq.s32.totalorder %v8423_v44, %v8402_v51  ;;  %v2279_v1 = vsel %vm1951_vm12, %v8403_v55, 0.0 }
 0x23f   : > { %v3662_v47 = vpack.c.bf16 %v3414_v61, %v3406_v48  ;;  %v1670_v10 = vadd.f32 %v1414_v18, %v797_v25  ;;  %v2287_v15 = vsel %vm1959_vm13, %v8403_v55, 0.0  ;;  %vm2824_vm14 = vcmp.eq.s32.totalorder %v8422_v41, %v8404_v52 }
 0x240   : > { %v2535_v46 = vadd.f32 %v2279_v1, %v1662_v31  ;;  %vm2832_vm15 = vcmp.eq.s32.totalorder %v8423_v44, %v8404_v52  ;;  %v3152_v21 = vsel %vm2824_vm14, %v8405_v6, 0.0  ;;  %vm454_vm0 = vcmp.eq.s32.totalorder %v8422_v41, %v8406_v12 }
 0x241   : > { %3868 = vmatprep.subr.bf16.mxu0 %v3662_v47  ;;  %v2543_v54 = vadd.f32 %v2287_v15, %v1670_v10  ;;  %v3160_v39 = vsel %vm2832_vm15, %v8405_v6, 0.0  ;;  %vm462_vm1 = vcmp.eq.s32.totalorder %v8423_v44, %v8406_v12  ;;  %v786_v58 = vsel %vm454_vm0, %v8408_v3, 0.0 }
 0x242   : > { %v3408_v0 = vadd.f32 %v3152_v21, %v2535_v46  ;;  %v794_v42 = vsel %vm462_vm1, %v8408_v3, 0.0  ;;  %vm1075_vm2 = vcmp.eq.s32.totalorder %v8422_v41, %v8407_v32  ;;  %vm1083_vm3 = vcmp.eq.s32.totalorder %v8423_v44, %v8407_v32 }
 0x243   : > { %v3416_v34 = vadd.f32 %v3160_v39, %v2543_v54  ;;  %v1403_v40 = vsel %vm1075_vm2, %v8409_v26, 0.0  ;;  %v1411_v56 = vsel %vm1083_vm3, %v8409_v26, 0.0  ;;  %vm1948_vm4 = vcmp.eq.s32.totalorder %v8422_v41, %v8410_v35 }
 0x244   : > { %v1659_v48 = vadd.f32 %v1403_v40, %v786_v58  ;;  %v1667_v53 = vadd.f32 %v1411_v56, %v794_v42  ;;  %vm1956_vm5 = vcmp.eq.s32.totalorder %v8423_v44, %v8410_v35  ;;  %v2276_v25 = vsel %vm1948_vm4, %v8411_v57, 0.0  ;;  %v8424_v56 = vld [vmem:[#allocation23_spill] sm:$0xff] }
 0x245   : > { %v3664_v61 = vpack.c.bf16 %v3416_v34, %v3408_v0  ;;  %v2284_v11 = vsel %vm1956_vm5, %v8411_v57, 0.0  ;;  %vm2821_vm6 = vcmp.eq.s32.totalorder %v8422_v41, %v8412_v62  ;;  %vm2829_vm7 = vcmp.eq.s32.totalorder %v8423_v44, %v8412_v62 }
 0x246   : > { %v2532_v18 = vadd.f32 %v2276_v25, %v1659_v48  ;;  %v2540_v31 = vadd.f32 %v2284_v11, %v1667_v53  ;;  %v3149_v1 = vsel %vm2821_vm6, %v8413_v13, 0.0  ;;  %v3157_v47 = vsel %vm2829_vm7, %v8413_v13, 0.0  ;;  %v8425_v11 = vld [vmem:[#allocation24_spill] sm:$0xff] }
 0x247   : > { %3909 = vmatprep.subr.bf16.mxu1 %v3664_v61  ;;  %vm456_vm8 = vcmp.eq.s32.totalorder %v8422_v41, %v8414_v50  ;;  %vm464_vm9 = vcmp.eq.s32.totalorder %v8423_v44, %v8414_v50  ;;  %vm1077_vm10 = vcmp.eq.s32.totalorder %v8422_v41, %v8416_v23  ;;  %vm1085_vm11 = vcmp.eq.s32.totalorder %v8423_v44, %v8416_v23 }
 0x248   : > { %v3405_v10 = vadd.f32 %v3149_v1, %v2532_v18  ;;  %v3413_v15 = vadd.f32 %v3157_v47, %v2540_v31  ;;  %v788_v46 = vsel %vm456_vm8, %v8415_v38, 0.0  ;;  %v796_v21 = vsel %vm464_vm9, %v8415_v38, 0.0 }
 0x249   : > { %v1405_v54 = vsel %vm1077_vm10, %v8417_v63, 0.0  ;;  %v1413_v39 = vsel %vm1085_vm11, %v8417_v63, 0.0  ;;  %vm1950_vm12 = vcmp.eq.s32.totalorder %v8422_v41, %v8418_v24  ;;  %vm1958_vm13 = vcmp.eq.s32.totalorder %v8423_v44, %v8418_v24 }
 0x24a   : > { %v3661_v58 = vpack.c.bf16 %v3413_v15, %v3405_v10  ;;  %v1661_v0 = vadd.f32 %v1405_v54, %v788_v46  ;;  %v1669_v42 = vadd.f32 %v1413_v39, %v796_v21  ;;  %v2278_v34 = vsel %vm1950_vm12, %v8419_v14, 0.0 }
 0x24b   : > { %v2286_v40 = vsel %vm1958_vm13, %v8419_v14, 0.0  ;;  %vm2823_vm14 = vcmp.eq.s32.totalorder %v8422_v41, %v8420_v30  ;;  %vm2831_vm15 = vcmp.eq.s32.totalorder %v8423_v44, %v8420_v30  ;;  %vm471_vm0 = vcmp.eq.s32.totalorder %v8424_v56, %v4786_v27 }
 0x24c   : > { %3869 = vmatpush1.bf16.msra.mxu0 %v3661_v58  ;;  %v2534_v48 = vadd.f32 %v2278_v34, %v1661_v0  ;;  %v2542_v53 = vadd.f32 %v2286_v40, %v1669_v42  ;;  %v3151_v25 = vsel %vm2823_vm14, %v8421_v8, 0.0  ;;  %v3159_v61 = vsel %vm2831_vm15, %v8421_v8, 0.0 }
 0x24d   : > { %vm479_vm1 = vcmp.eq.s32.totalorder %v8425_v11, %v4786_v27  ;;  %v803_v18 = vsel %vm471_vm0, %v4828_v43, 0.0  ;;  %vm1092_vm2 = vcmp.eq.s32.totalorder %v8424_v56, %v4867_v59  ;;  %vm1100_vm3 = vcmp.eq.s32.totalorder %v8425_v11, %v4867_v59 }
 0x24e   : > { %v3407_v41 = vadd.f32 %v3151_v25, %v2534_v48  ;;  %v3415_v44 = vadd.f32 %v3159_v61, %v2542_v53  ;;  %v811_v31 = vsel %vm479_vm1, %v4828_v43, 0.0  ;;  %v1420_v1 = vsel %vm1092_vm2, %v4893_v33, 0.0 }
 0x24f   : > { %v1428_v47 = vsel %vm1100_vm3, %v4893_v33, 0.0  ;;  %v1676_v10 = vadd.f32 %v1420_v1, %v803_v18  ;;  %vm1965_vm4 = vcmp.eq.s32.totalorder %v8424_v56, %v4930_v60  ;;  %vm1973_vm5 = vcmp.eq.s32.totalorder %v8425_v11, %v4930_v60 }
 0x250   : > { %v3663_v15 = vpack.c.bf16 %v3415_v44, %v3407_v41  ;;  %v1684_v46 = vadd.f32 %v1428_v47, %v811_v31  ;;  %v2293_v21 = vsel %vm1965_vm4, %v4958_v28, 0.0  ;;  %v2301_v54 = vsel %vm1973_vm5, %v4958_v28, 0.0 }
 0x251   : > { %v2549_v39 = vadd.f32 %v2293_v21, %v1676_v10  ;;  %vm2838_vm6 = vcmp.eq.s32.totalorder %v8424_v56, %v4993_v16  ;;  %vm2846_vm7 = vcmp.eq.s32.totalorder %v8425_v11, %v4993_v16  ;;  %vm473_vm8 = vcmp.eq.s32.totalorder %v8424_v56, %v4794_v29 }
 0x252   : > { %3910 = vmatpush1.bf16.msra.mxu1 %v3663_v15  ;;  %v2557_v58 = vadd.f32 %v2301_v54, %v1684_v46  ;;  %v3166_v0 = vsel %vm2838_vm6, %v5023_v37, 0.0  ;;  %v3174_v42 = vsel %vm2846_vm7, %v5023_v37, 0.0  ;;  %vm481_vm9 = vcmp.eq.s32.totalorder %v8425_v11, %v4794_v29 }
 0x253   : > { %v3422_v34 = vadd.f32 %v3166_v0, %v2549_v39  ;;  %v805_v40 = vsel %vm473_vm8, %v4834_v45, 0.0  ;;  %v813_v48 = vsel %vm481_vm9, %v4834_v45, 0.0  ;;  %vm1094_vm10 = vcmp.eq.s32.totalorder %v8424_v56, %v8400_v22 }
 0x254   : > { %v3430_v53 = vadd.f32 %v3174_v42, %v2557_v58  ;;  %vm1102_vm11 = vcmp.eq.s32.totalorder %v8425_v11, %v8400_v22  ;;  %v1422_v25 = vsel %vm1094_vm10, %v8401_v36, 0.0  ;;  %vm1967_vm12 = vcmp.eq.s32.totalorder %v8424_v56, %v8402_v51 }
 0x255   : > { %v1430_v61 = vsel %vm1102_vm11, %v8401_v36, 0.0  ;;  %v1678_v18 = vadd.f32 %v1422_v25, %v805_v40  ;;  %vm1975_vm13 = vcmp.eq.s32.totalorder %v8425_v11, %v8402_v51  ;;  %v2295_v41 = vsel %vm1967_vm12, %v8403_v55, 0.0 }
 0x256   : > { %v3670_v44 = vpack.c.bf16 %v3430_v53, %v3422_v34  ;;  %v1686_v31 = vadd.f32 %v1430_v61, %v813_v48  ;;  %v2303_v1 = vsel %vm1975_vm13, %v8403_v55, 0.0  ;;  %vm2840_vm14 = vcmp.eq.s32.totalorder %v8424_v56, %v8404_v52 }
 0x257   : > { %v2551_v47 = vadd.f32 %v2295_v41, %v1678_v18  ;;  %vm2848_vm15 = vcmp.eq.s32.totalorder %v8425_v11, %v8404_v52  ;;  %v3168_v10 = vsel %vm2840_vm14, %v8405_v6, 0.0  ;;  %vm470_vm0 = vcmp.eq.s32.totalorder %v8424_v56, %v8406_v12 }
 0x258   : > { %3870 = vmatprep.subr.bf16.mxu0 %v3670_v44  ;;  %v2559_v15 = vadd.f32 %v2303_v1, %v1686_v31  ;;  %v3176_v46 = vsel %vm2848_vm15, %v8405_v6, 0.0  ;;  %vm478_vm1 = vcmp.eq.s32.totalorder %v8425_v11, %v8406_v12  ;;  %v802_v21 = vsel %vm470_vm0, %v8408_v3, 0.0 }
 0x259   : > { %v3424_v54 = vadd.f32 %v3168_v10, %v2551_v47  ;;  %v810_v39 = vsel %vm478_vm1, %v8408_v3, 0.0  ;;  %vm1091_vm2 = vcmp.eq.s32.totalorder %v8424_v56, %v8407_v32  ;;  %vm1099_vm3 = vcmp.eq.s32.totalorder %v8425_v11, %v8407_v32 }
 0x25a   : > { %v3432_v58 = vadd.f32 %v3176_v46, %v2559_v15  ;;  %v1419_v0 = vsel %vm1091_vm2, %v8409_v26, 0.0  ;;  %v1427_v42 = vsel %vm1099_vm3, %v8409_v26, 0.0  ;;  %vm1964_vm4 = vcmp.eq.s32.totalorder %v8424_v56, %v8410_v35 }
 0x25b   : > { %v1675_v34 = vadd.f32 %v1419_v0, %v802_v21  ;;  %v1683_v40 = vadd.f32 %v1427_v42, %v810_v39  ;;  %vm1972_vm5 = vcmp.eq.s32.totalorder %v8425_v11, %v8410_v35  ;;  %v2292_v48 = vsel %vm1964_vm4, %v8411_v57, 0.0  ;;  %v8426_v42 = vld [vmem:[#allocation25_spill] sm:$0xff] }
 0x25c   : > { %v3672_v53 = vpack.c.bf16 %v3432_v58, %v3424_v54  ;;  %v2300_v25 = vsel %vm1972_vm5, %v8411_v57, 0.0  ;;  %vm2837_vm6 = vcmp.eq.s32.totalorder %v8424_v56, %v8412_v62  ;;  %vm2845_vm7 = vcmp.eq.s32.totalorder %v8425_v11, %v8412_v62 }
 0x25d   : > { %v2548_v61 = vadd.f32 %v2292_v48, %v1675_v34  ;;  %v2556_v18 = vadd.f32 %v2300_v25, %v1683_v40  ;;  %v3165_v41 = vsel %vm2837_vm6, %v8413_v13, 0.0  ;;  %v3173_v44 = vsel %vm2845_vm7, %v8413_v13, 0.0  ;;  %v8427_v25 = vld [vmem:[#allocation26_spill] sm:$0xff] }
 0x25e   : > { %3911 = vmatprep.subr.bf16.mxu1 %v3672_v53  ;;  %vm472_vm8 = vcmp.eq.s32.totalorder %v8424_v56, %v8414_v50  ;;  %vm480_vm9 = vcmp.eq.s32.totalorder %v8425_v11, %v8414_v50  ;;  %vm1093_vm10 = vcmp.eq.s32.totalorder %v8424_v56, %v8416_v23  ;;  %vm1101_vm11 = vcmp.eq.s32.totalorder %v8425_v11, %v8416_v23 }
 0x25f   : > { %v3421_v31 = vadd.f32 %v3165_v41, %v2548_v61  ;;  %v3429_v1 = vadd.f32 %v3173_v44, %v2556_v18  ;;  %v804_v47 = vsel %vm472_vm8, %v8415_v38, 0.0  ;;  %v812_v10 = vsel %vm480_vm9, %v8415_v38, 0.0 }
 0x260   : > { %v1421_v15 = vsel %vm1093_vm10, %v8417_v63, 0.0  ;;  %v1429_v46 = vsel %vm1101_vm11, %v8417_v63, 0.0  ;;  %vm1966_vm12 = vcmp.eq.s32.totalorder %v8424_v56, %v8418_v24  ;;  %vm1974_vm13 = vcmp.eq.s32.totalorder %v8425_v11, %v8418_v24 }
 0x261   : > { %v3669_v21 = vpack.c.bf16 %v3429_v1, %v3421_v31  ;;  %v1677_v54 = vadd.f32 %v1421_v15, %v804_v47  ;;  %v1685_v39 = vadd.f32 %v1429_v46, %v812_v10  ;;  %v2294_v58 = vsel %vm1966_vm12, %v8419_v14, 0.0 }
 0x262   : > { %v2302_v0 = vsel %vm1974_vm13, %v8419_v14, 0.0  ;;  %vm2839_vm14 = vcmp.eq.s32.totalorder %v8424_v56, %v8420_v30  ;;  %vm2847_vm15 = vcmp.eq.s32.totalorder %v8425_v11, %v8420_v30  ;;  %vm487_vm0 = vcmp.eq.s32.totalorder %v8426_v42, %v4786_v27 }
 0x263   : > { %3871 = vmatpush1.bf16.msra.mxu0 %v3669_v21  ;;  %v2550_v34 = vadd.f32 %v2294_v58, %v1677_v54  ;;  %v2558_v40 = vadd.f32 %v2302_v0, %v1685_v39  ;;  %v3167_v48 = vsel %vm2839_vm14, %v8421_v8, 0.0  ;;  %v3175_v53 = vsel %vm2847_vm15, %v8421_v8, 0.0 }
 0x264   : > { %vm495_vm1 = vcmp.eq.s32.totalorder %v8427_v25, %v4786_v27  ;;  %v819_v61 = vsel %vm487_vm0, %v4828_v43, 0.0  ;;  %vm1108_vm2 = vcmp.eq.s32.totalorder %v8426_v42, %v4867_v59  ;;  %vm1116_vm3 = vcmp.eq.s32.totalorder %v8427_v25, %v4867_v59 }
 0x265   : > { %v3423_v56 = vadd.f32 %v3167_v48, %v2550_v34  ;;  %v3431_v11 = vadd.f32 %v3175_v53, %v2558_v40  ;;  %v827_v18 = vsel %vm495_vm1, %v4828_v43, 0.0  ;;  %v1436_v41 = vsel %vm1108_vm2, %v4893_v33, 0.0 }
 0x266   : > { %v1444_v44 = vsel %vm1116_vm3, %v4893_v33, 0.0  ;;  %v1692_v31 = vadd.f32 %v1436_v41, %v819_v61  ;;  %vm1981_vm4 = vcmp.eq.s32.totalorder %v8426_v42, %v4930_v60  ;;  %vm1989_vm5 = vcmp.eq.s32.totalorder %v8427_v25, %v4930_v60 }
 0x267   : > { %v3671_v1 = vpack.c.bf16 %v3431_v11, %v3423_v56  ;;  %v1700_v47 = vadd.f32 %v1444_v44, %v827_v18  ;;  %v2309_v10 = vsel %vm1981_vm4, %v4958_v28, 0.0  ;;  %v2317_v15 = vsel %vm1989_vm5, %v4958_v28, 0.0 }
 0x268   : > { %v2565_v46 = vadd.f32 %v2309_v10, %v1692_v31  ;;  %vm2854_vm6 = vcmp.eq.s32.totalorder %v8426_v42, %v4993_v16  ;;  %vm2862_vm7 = vcmp.eq.s32.totalorder %v8427_v25, %v4993_v16  ;;  %vm489_vm8 = vcmp.eq.s32.totalorder %v8426_v42, %v4794_v29 }
 0x269   : > { %3912 = vmatpush1.bf16.msra.mxu1 %v3671_v1  ;;  %v2573_v21 = vadd.f32 %v2317_v15, %v1700_v47  ;;  %v3182_v54 = vsel %vm2854_vm6, %v5023_v37, 0.0  ;;  %v3190_v39 = vsel %vm2862_vm7, %v5023_v37, 0.0  ;;  %vm497_vm9 = vcmp.eq.s32.totalorder %v8427_v25, %v4794_v29 }
 0x26a   : > { %v3438_v58 = vadd.f32 %v3182_v54, %v2565_v46  ;;  %v821_v0 = vsel %vm489_vm8, %v4834_v45, 0.0  ;;  %v829_v34 = vsel %vm497_vm9, %v4834_v45, 0.0  ;;  %vm1110_vm10 = vcmp.eq.s32.totalorder %v8426_v42, %v8400_v22 }
 0x26b   : > { %v3446_v40 = vadd.f32 %v3190_v39, %v2573_v21  ;;  %vm1118_vm11 = vcmp.eq.s32.totalorder %v8427_v25, %v8400_v22  ;;  %v1438_v48 = vsel %vm1110_vm10, %v8401_v36, 0.0  ;;  %vm1983_vm12 = vcmp.eq.s32.totalorder %v8426_v42, %v8402_v51 }
 0x26c   : > { %v1446_v53 = vsel %vm1118_vm11, %v8401_v36, 0.0  ;;  %v1694_v61 = vadd.f32 %v1438_v48, %v821_v0  ;;  %vm1991_vm13 = vcmp.eq.s32.totalorder %v8427_v25, %v8402_v51  ;;  %v2311_v56 = vsel %vm1983_vm12, %v8403_v55, 0.0 }
 0x26d   : > { %v3678_v11 = vpack.c.bf16 %v3446_v40, %v3438_v58  ;;  %v1702_v18 = vadd.f32 %v1446_v53, %v829_v34  ;;  %v2319_v41 = vsel %vm1991_vm13, %v8403_v55, 0.0  ;;  %vm2856_vm14 = vcmp.eq.s32.totalorder %v8426_v42, %v8404_v52 }
 0x26e   : > { %v2567_v44 = vadd.f32 %v2311_v56, %v1694_v61  ;;  %vm2864_vm15 = vcmp.eq.s32.totalorder %v8427_v25, %v8404_v52  ;;  %v3184_v31 = vsel %vm2856_vm14, %v8405_v6, 0.0  ;;  %vm486_vm0 = vcmp.eq.s32.totalorder %v8426_v42, %v8406_v12 }
 0x26f   : > { %3872 = vmatprep.subr.bf16.mxu0 %v3678_v11  ;;  %v2575_v1 = vadd.f32 %v2319_v41, %v1702_v18  ;;  %v3192_v47 = vsel %vm2864_vm15, %v8405_v6, 0.0  ;;  %vm494_vm1 = vcmp.eq.s32.totalorder %v8427_v25, %v8406_v12  ;;  %v818_v10 = vsel %vm486_vm0, %v8408_v3, 0.0 }
 0x270   : > { %v3440_v15 = vadd.f32 %v3184_v31, %v2567_v44  ;;  %v826_v46 = vsel %vm494_vm1, %v8408_v3, 0.0  ;;  %vm1107_vm2 = vcmp.eq.s32.totalorder %v8426_v42, %v8407_v32  ;;  %vm1115_vm3 = vcmp.eq.s32.totalorder %v8427_v25, %v8407_v32 }
 0x271   : > { %v3448_v21 = vadd.f32 %v3192_v47, %v2575_v1  ;;  %v1435_v54 = vsel %vm1107_vm2, %v8409_v26, 0.0  ;;  %v1443_v39 = vsel %vm1115_vm3, %v8409_v26, 0.0  ;;  %vm1980_vm4 = vcmp.eq.s32.totalorder %v8426_v42, %v8410_v35 }
 0x272   : > { %v1691_v58 = vadd.f32 %v1435_v54, %v818_v10  ;;  %v1699_v0 = vadd.f32 %v1443_v39, %v826_v46  ;;  %vm1988_vm5 = vcmp.eq.s32.totalorder %v8427_v25, %v8410_v35  ;;  %v2308_v34 = vsel %vm1980_vm4, %v8411_v57, 0.0  ;;  %v8428_v39 = vld [vmem:[#allocation49_spill] sm:$0xff] }
 0x273   : > { %v3680_v40 = vpack.c.bf16 %v3448_v21, %v3440_v15  ;;  %v2316_v48 = vsel %vm1988_vm5, %v8411_v57, 0.0  ;;  %vm2853_vm6 = vcmp.eq.s32.totalorder %v8426_v42, %v8412_v62  ;;  %vm2861_vm7 = vcmp.eq.s32.totalorder %v8427_v25, %v8412_v62 }
 0x274   : > { %v2564_v53 = vadd.f32 %v2308_v34, %v1691_v58  ;;  %v2572_v61 = vadd.f32 %v2316_v48, %v1699_v0  ;;  %v3181_v56 = vsel %vm2853_vm6, %v8413_v13, 0.0  ;;  %v3189_v11 = vsel %vm2861_vm7, %v8413_v13, 0.0  ;;  %v8429_v48 = vld [vmem:[#allocation50_spill] sm:$0xff] }
 0x275   : > { %3913 = vmatprep.subr.bf16.mxu1 %v3680_v40  ;;  %vm488_vm8 = vcmp.eq.s32.totalorder %v8426_v42, %v8414_v50  ;;  %vm496_vm9 = vcmp.eq.s32.totalorder %v8427_v25, %v8414_v50  ;;  %vm1109_vm10 = vcmp.eq.s32.totalorder %v8426_v42, %v8416_v23  ;;  %vm1117_vm11 = vcmp.eq.s32.totalorder %v8427_v25, %v8416_v23 }
 0x276   : > { %v3437_v18 = vadd.f32 %v3181_v56, %v2564_v53  ;;  %v3445_v41 = vadd.f32 %v3189_v11, %v2572_v61  ;;  %v820_v44 = vsel %vm488_vm8, %v8415_v38, 0.0  ;;  %v828_v31 = vsel %vm496_vm9, %v8415_v38, 0.0 }
 0x277   : > { %v1437_v1 = vsel %vm1109_vm10, %v8417_v63, 0.0  ;;  %v1445_v47 = vsel %vm1117_vm11, %v8417_v63, 0.0  ;;  %vm1982_vm12 = vcmp.eq.s32.totalorder %v8426_v42, %v8418_v24  ;;  %vm1990_vm13 = vcmp.eq.s32.totalorder %v8427_v25, %v8418_v24 }
 0x278   : > { %v3677_v10 = vpack.c.bf16 %v3445_v41, %v3437_v18  ;;  %v1693_v15 = vadd.f32 %v1437_v1, %v820_v44  ;;  %v1701_v46 = vadd.f32 %v1445_v47, %v828_v31  ;;  %v2310_v21 = vsel %vm1982_vm12, %v8419_v14, 0.0 }
 0x279   : > { %v2318_v54 = vsel %vm1990_vm13, %v8419_v14, 0.0  ;;  %vm2855_vm14 = vcmp.eq.s32.totalorder %v8426_v42, %v8420_v30  ;;  %vm2863_vm15 = vcmp.eq.s32.totalorder %v8427_v25, %v8420_v30  ;;  %vm503_vm0 = vcmp.eq.s32.totalorder %v8428_v39, %v4786_v27 }
 0x27a   : > { %3873 = vmatpush1.bf16.msra.mxu0 %v3677_v10  ;;  %v2566_v58 = vadd.f32 %v2310_v21, %v1693_v15  ;;  %v2574_v0 = vadd.f32 %v2318_v54, %v1701_v46  ;;  %v3183_v34 = vsel %vm2855_vm14, %v8421_v8, 0.0  ;;  %v3191_v40 = vsel %vm2863_vm15, %v8421_v8, 0.0 }
 0x27b   : > { %vm511_vm1 = vcmp.eq.s32.totalorder %v8429_v48, %v4786_v27  ;;  %v835_v53 = vsel %vm503_vm0, %v4828_v43, 0.0  ;;  %vm1124_vm2 = vcmp.eq.s32.totalorder %v8428_v39, %v4867_v59  ;;  %vm1132_vm3 = vcmp.eq.s32.totalorder %v8429_v48, %v4867_v59 }
 0x27c   : > { %v3439_v42 = vadd.f32 %v3183_v34, %v2566_v58  ;;  %v3447_v25 = vadd.f32 %v3191_v40, %v2574_v0  ;;  %v843_v61 = vsel %vm511_vm1, %v4828_v43, 0.0  ;;  %v1452_v56 = vsel %vm1124_vm2, %v4893_v33, 0.0 }
 0x27d   : > { %v1460_v11 = vsel %vm1132_vm3, %v4893_v33, 0.0  ;;  %v1708_v18 = vadd.f32 %v1452_v56, %v835_v53  ;;  %vm1997_vm4 = vcmp.eq.s32.totalorder %v8428_v39, %v4930_v60  ;;  %vm2005_vm5 = vcmp.eq.s32.totalorder %v8429_v48, %v4930_v60 }
 0x27e   : > { %v3679_v41 = vpack.c.bf16 %v3447_v25, %v3439_v42  ;;  %v1716_v44 = vadd.f32 %v1460_v11, %v843_v61  ;;  %v2325_v31 = vsel %vm1997_vm4, %v4958_v28, 0.0  ;;  %v2333_v1 = vsel %vm2005_vm5, %v4958_v28, 0.0 }
 0x27f   : > { %v2581_v47 = vadd.f32 %v2325_v31, %v1708_v18  ;;  %vm2870_vm6 = vcmp.eq.s32.totalorder %v8428_v39, %v4993_v16  ;;  %vm2878_vm7 = vcmp.eq.s32.totalorder %v8429_v48, %v4993_v16  ;;  %vm505_vm8 = vcmp.eq.s32.totalorder %v8428_v39, %v4794_v29 }
 0x280   : > { %3914 = vmatpush1.bf16.msra.mxu1 %v3679_v41  ;;  %v2589_v10 = vadd.f32 %v2333_v1, %v1716_v44  ;;  %v3198_v15 = vsel %vm2870_vm6, %v5023_v37, 0.0  ;;  %v3206_v46 = vsel %vm2878_vm7, %v5023_v37, 0.0  ;;  %vm513_vm9 = vcmp.eq.s32.totalorder %v8429_v48, %v4794_v29 }
 0x281   : > { %v3454_v21 = vadd.f32 %v3198_v15, %v2581_v47  ;;  %v837_v54 = vsel %vm505_vm8, %v4834_v45, 0.0  ;;  %v845_v58 = vsel %vm513_vm9, %v4834_v45, 0.0  ;;  %vm1126_vm10 = vcmp.eq.s32.totalorder %v8428_v39, %v8400_v22 }
 0x282   : > { %v3462_v0 = vadd.f32 %v3206_v46, %v2589_v10  ;;  %vm1134_vm11 = vcmp.eq.s32.totalorder %v8429_v48, %v8400_v22  ;;  %v1454_v34 = vsel %vm1126_vm10, %v8401_v36, 0.0  ;;  %vm1999_vm12 = vcmp.eq.s32.totalorder %v8428_v39, %v8402_v51 }
 0x283   : > { %v1462_v40 = vsel %vm1134_vm11, %v8401_v36, 0.0  ;;  %v1710_v53 = vadd.f32 %v1454_v34, %v837_v54  ;;  %vm2007_vm13 = vcmp.eq.s32.totalorder %v8429_v48, %v8402_v51  ;;  %v2327_v42 = vsel %vm1999_vm12, %v8403_v55, 0.0 }
 0x284   : > { %v3686_v25 = vpack.c.bf16 %v3462_v0, %v3454_v21  ;;  %v1718_v61 = vadd.f32 %v1462_v40, %v845_v58  ;;  %v2335_v56 = vsel %vm2007_vm13, %v8403_v55, 0.0  ;;  %vm2872_vm14 = vcmp.eq.s32.totalorder %v8428_v39, %v8404_v52 }
 0x285   : > { %v2583_v11 = vadd.f32 %v2327_v42, %v1710_v53  ;;  %vm2880_vm15 = vcmp.eq.s32.totalorder %v8429_v48, %v8404_v52  ;;  %v3200_v18 = vsel %vm2872_vm14, %v8405_v6, 0.0  ;;  %vm502_vm0 = vcmp.eq.s32.totalorder %v8428_v39, %v8406_v12 }
 0x286   : > { %3874 = vmatprep.subr.bf16.mxu0 %v3686_v25  ;;  %v2591_v41 = vadd.f32 %v2335_v56, %v1718_v61  ;;  %v3208_v44 = vsel %vm2880_vm15, %v8405_v6, 0.0  ;;  %vm510_vm1 = vcmp.eq.s32.totalorder %v8429_v48, %v8406_v12  ;;  %v834_v31 = vsel %vm502_vm0, %v8408_v3, 0.0 }
 0x287   : > { %v3456_v1 = vadd.f32 %v3200_v18, %v2583_v11  ;;  %v842_v47 = vsel %vm510_vm1, %v8408_v3, 0.0  ;;  %vm1123_vm2 = vcmp.eq.s32.totalorder %v8428_v39, %v8407_v32  ;;  %vm1131_vm3 = vcmp.eq.s32.totalorder %v8429_v48, %v8407_v32 }
 0x288   : > { %v3464_v10 = vadd.f32 %v3208_v44, %v2591_v41  ;;  %v1451_v15 = vsel %vm1123_vm2, %v8409_v26, 0.0  ;;  %v1459_v46 = vsel %vm1131_vm3, %v8409_v26, 0.0  ;;  %vm1996_vm4 = vcmp.eq.s32.totalorder %v8428_v39, %v8410_v35 }
 0x289   : > { %v1707_v21 = vadd.f32 %v1451_v15, %v834_v31  ;;  %v1715_v54 = vadd.f32 %v1459_v46, %v842_v47  ;;  %vm2004_vm5 = vcmp.eq.s32.totalorder %v8429_v48, %v8410_v35  ;;  %v2324_v58 = vsel %vm1996_vm4, %v8411_v57, 0.0  ;;  %v8430_v46 = vld [vmem:[#allocation51_spill] sm:$0xff] }
 0x28a   : > { %v3688_v0 = vpack.c.bf16 %v3464_v10, %v3456_v1  ;;  %v2332_v34 = vsel %vm2004_vm5, %v8411_v57, 0.0  ;;  %vm2869_vm6 = vcmp.eq.s32.totalorder %v8428_v39, %v8412_v62  ;;  %vm2877_vm7 = vcmp.eq.s32.totalorder %v8429_v48, %v8412_v62 }
 0x28b   : > { %v2580_v40 = vadd.f32 %v2324_v58, %v1707_v21  ;;  %v2588_v53 = vadd.f32 %v2332_v34, %v1715_v54  ;;  %v3197_v42 = vsel %vm2869_vm6, %v8413_v13, 0.0  ;;  %v3205_v25 = vsel %vm2877_vm7, %v8413_v13, 0.0  ;;  %v8431_v34 = vld [vmem:[#allocation52_spill] sm:$0xff] }
 0x28c   : > { %3915 = vmatprep.subr.bf16.mxu1 %v3688_v0  ;;  %vm504_vm8 = vcmp.eq.s32.totalorder %v8428_v39, %v8414_v50  ;;  %vm512_vm9 = vcmp.eq.s32.totalorder %v8429_v48, %v8414_v50  ;;  %vm1125_vm10 = vcmp.eq.s32.totalorder %v8428_v39, %v8416_v23  ;;  %vm1133_vm11 = vcmp.eq.s32.totalorder %v8429_v48, %v8416_v23 }
 0x28d   : > { %v3453_v61 = vadd.f32 %v3197_v42, %v2580_v40  ;;  %v3461_v56 = vadd.f32 %v3205_v25, %v2588_v53  ;;  %v836_v11 = vsel %vm504_vm8, %v8415_v38, 0.0  ;;  %v844_v18 = vsel %vm512_vm9, %v8415_v38, 0.0 }
 0x28e   : > { %v1453_v41 = vsel %vm1125_vm10, %v8417_v63, 0.0  ;;  %v1461_v44 = vsel %vm1133_vm11, %v8417_v63, 0.0  ;;  %vm1998_vm12 = vcmp.eq.s32.totalorder %v8428_v39, %v8418_v24  ;;  %vm2006_vm13 = vcmp.eq.s32.totalorder %v8429_v48, %v8418_v24 }
 0x28f   : > { %v3685_v31 = vpack.c.bf16 %v3461_v56, %v3453_v61  ;;  %v1709_v1 = vadd.f32 %v1453_v41, %v836_v11  ;;  %v1717_v47 = vadd.f32 %v1461_v44, %v844_v18  ;;  %v2326_v10 = vsel %vm1998_vm12, %v8419_v14, 0.0 }
 0x290   : > { %v2334_v15 = vsel %vm2006_vm13, %v8419_v14, 0.0  ;;  %vm2871_vm14 = vcmp.eq.s32.totalorder %v8428_v39, %v8420_v30  ;;  %vm2879_vm15 = vcmp.eq.s32.totalorder %v8429_v48, %v8420_v30  ;;  %vm519_vm0 = vcmp.eq.s32.totalorder %v8430_v46, %v4786_v27 }
 0x291   : > { %3875 = vmatpush1.bf16.msra.mxu0 %v3685_v31  ;;  %v2582_v21 = vadd.f32 %v2326_v10, %v1709_v1  ;;  %v2590_v54 = vadd.f32 %v2334_v15, %v1717_v47  ;;  %v3199_v58 = vsel %vm2871_vm14, %v8421_v8, 0.0  ;;  %v3207_v0 = vsel %vm2879_vm15, %v8421_v8, 0.0 }
 0x292   : > { %vm527_vm1 = vcmp.eq.s32.totalorder %v8431_v34, %v4786_v27  ;;  %v851_v40 = vsel %vm519_vm0, %v4828_v43, 0.0  ;;  %vm1140_vm2 = vcmp.eq.s32.totalorder %v8430_v46, %v4867_v59  ;;  %vm1148_vm3 = vcmp.eq.s32.totalorder %v8431_v34, %v4867_v59 }
 0x293   : > { %v3455_v39 = vadd.f32 %v3199_v58, %v2582_v21  ;;  %v3463_v48 = vadd.f32 %v3207_v0, %v2590_v54  ;;  %v859_v53 = vsel %vm527_vm1, %v4828_v43, 0.0  ;;  %v1468_v42 = vsel %vm1140_vm2, %v4893_v33, 0.0 }
 0x294   : > { %v1476_v25 = vsel %vm1148_vm3, %v4893_v33, 0.0  ;;  %v1724_v61 = vadd.f32 %v1468_v42, %v851_v40  ;;  %vm2013_vm4 = vcmp.eq.s32.totalorder %v8430_v46, %v4930_v60  ;;  %vm2021_vm5 = vcmp.eq.s32.totalorder %v8431_v34, %v4930_v60 }
 0x295   : > { %v3687_v56 = vpack.c.bf16 %v3463_v48, %v3455_v39  ;;  %v1732_v11 = vadd.f32 %v1476_v25, %v859_v53  ;;  %v2341_v18 = vsel %vm2013_vm4, %v4958_v28, 0.0  ;;  %v2349_v41 = vsel %vm2021_vm5, %v4958_v28, 0.0 }
 0x296   : > { %v2597_v44 = vadd.f32 %v2341_v18, %v1724_v61  ;;  %vm2886_vm6 = vcmp.eq.s32.totalorder %v8430_v46, %v4993_v16  ;;  %vm2894_vm7 = vcmp.eq.s32.totalorder %v8431_v34, %v4993_v16  ;;  %vm521_vm8 = vcmp.eq.s32.totalorder %v8430_v46, %v4794_v29 }
 0x297   : > { %3916 = vmatpush1.bf16.msra.mxu1 %v3687_v56  ;;  %v2605_v31 = vadd.f32 %v2349_v41, %v1732_v11  ;;  %v3214_v1 = vsel %vm2886_vm6, %v5023_v37, 0.0  ;;  %v3222_v47 = vsel %vm2894_vm7, %v5023_v37, 0.0  ;;  %vm529_vm9 = vcmp.eq.s32.totalorder %v8431_v34, %v4794_v29 }
 0x298   : > { %v3470_v10 = vadd.f32 %v3214_v1, %v2597_v44  ;;  %v853_v15 = vsel %vm521_vm8, %v4834_v45, 0.0  ;;  %v861_v21 = vsel %vm529_vm9, %v4834_v45, 0.0  ;;  %vm1142_vm10 = vcmp.eq.s32.totalorder %v8430_v46, %v8400_v22 }
 0x299   : > { %v3478_v54 = vadd.f32 %v3222_v47, %v2605_v31  ;;  %vm1150_vm11 = vcmp.eq.s32.totalorder %v8431_v34, %v8400_v22  ;;  %v1470_v58 = vsel %vm1142_vm10, %v8401_v36, 0.0  ;;  %vm2015_vm12 = vcmp.eq.s32.totalorder %v8430_v46, %v8402_v51 }
 0x29a   : > { %v1478_v0 = vsel %vm1150_vm11, %v8401_v36, 0.0  ;;  %v1726_v40 = vadd.f32 %v1470_v58, %v853_v15  ;;  %vm2023_vm13 = vcmp.eq.s32.totalorder %v8431_v34, %v8402_v51  ;;  %v2343_v39 = vsel %vm2015_vm12, %v8403_v55, 0.0 }
 0x29b   : > { %v3694_v48 = vpack.c.bf16 %v3478_v54, %v3470_v10  ;;  %v1734_v53 = vadd.f32 %v1478_v0, %v861_v21  ;;  %v2351_v42 = vsel %vm2023_vm13, %v8403_v55, 0.0  ;;  %vm2888_vm14 = vcmp.eq.s32.totalorder %v8430_v46, %v8404_v52 }
 0x29c   : > { %v2599_v25 = vadd.f32 %v2343_v39, %v1726_v40  ;;  %vm2896_vm15 = vcmp.eq.s32.totalorder %v8431_v34, %v8404_v52  ;;  %v3216_v61 = vsel %vm2888_vm14, %v8405_v6, 0.0  ;;  %vm518_vm0 = vcmp.eq.s32.totalorder %v8430_v46, %v8406_v12 }
 0x29d   : > { %3876 = vmatprep.subr.bf16.mxu0 %v3694_v48  ;;  %v2607_v56 = vadd.f32 %v2351_v42, %v1734_v53  ;;  %v3224_v11 = vsel %vm2896_vm15, %v8405_v6, 0.0  ;;  %vm526_vm1 = vcmp.eq.s32.totalorder %v8431_v34, %v8406_v12  ;;  %v850_v18 = vsel %vm518_vm0, %v8408_v3, 0.0 }
 0x29e   : > { %v3472_v41 = vadd.f32 %v3216_v61, %v2599_v25  ;;  %v858_v44 = vsel %vm526_vm1, %v8408_v3, 0.0  ;;  %vm1139_vm2 = vcmp.eq.s32.totalorder %v8430_v46, %v8407_v32  ;;  %vm1147_vm3 = vcmp.eq.s32.totalorder %v8431_v34, %v8407_v32 }
 0x29f   : > { %v3480_v31 = vadd.f32 %v3224_v11, %v2607_v56  ;;  %v1467_v1 = vsel %vm1139_vm2, %v8409_v26, 0.0  ;;  %v1475_v47 = vsel %vm1147_vm3, %v8409_v26, 0.0  ;;  %vm2012_vm4 = vcmp.eq.s32.totalorder %v8430_v46, %v8410_v35 }
 0x2a0   : > { %v1723_v10 = vadd.f32 %v1467_v1, %v850_v18  ;;  %v1731_v15 = vadd.f32 %v1475_v47, %v858_v44  ;;  %vm2020_vm5 = vcmp.eq.s32.totalorder %v8431_v34, %v8410_v35  ;;  %v2340_v21 = vsel %vm2012_vm4, %v8411_v57, 0.0  ;;  %v8432_v47 = vld [vmem:[#allocation53_spill] sm:$0xff] }
 0x2a1   : > { %v3696_v54 = vpack.c.bf16 %v3480_v31, %v3472_v41  ;;  %v2348_v58 = vsel %vm2020_vm5, %v8411_v57, 0.0  ;;  %vm2885_vm6 = vcmp.eq.s32.totalorder %v8430_v46, %v8412_v62  ;;  %vm2893_vm7 = vcmp.eq.s32.totalorder %v8431_v34, %v8412_v62 }
 0x2a2   : > { %v2596_v0 = vadd.f32 %v2340_v21, %v1723_v10  ;;  %v2604_v40 = vadd.f32 %v2348_v58, %v1731_v15  ;;  %v3213_v39 = vsel %vm2885_vm6, %v8413_v13, 0.0  ;;  %v3221_v48 = vsel %vm2893_vm7, %v8413_v13, 0.0  ;;  %v8433_v58 = vld [vmem:[#allocation54_spill] sm:$0xff] }
 0x2a3   : > { %3917 = vmatprep.subr.bf16.mxu1 %v3696_v54  ;;  %vm520_vm8 = vcmp.eq.s32.totalorder %v8430_v46, %v8414_v50  ;;  %vm528_vm9 = vcmp.eq.s32.totalorder %v8431_v34, %v8414_v50  ;;  %vm1141_vm10 = vcmp.eq.s32.totalorder %v8430_v46, %v8416_v23  ;;  %vm1149_vm11 = vcmp.eq.s32.totalorder %v8431_v34, %v8416_v23 }
 0x2a4   : > { %v3469_v53 = vadd.f32 %v3213_v39, %v2596_v0  ;;  %v3477_v42 = vadd.f32 %v3221_v48, %v2604_v40  ;;  %v852_v25 = vsel %vm520_vm8, %v8415_v38, 0.0  ;;  %v860_v61 = vsel %vm528_vm9, %v8415_v38, 0.0 }
 0x2a5   : > { %v1469_v56 = vsel %vm1141_vm10, %v8417_v63, 0.0  ;;  %v1477_v11 = vsel %vm1149_vm11, %v8417_v63, 0.0  ;;  %vm2014_vm12 = vcmp.eq.s32.totalorder %v8430_v46, %v8418_v24  ;;  %vm2022_vm13 = vcmp.eq.s32.totalorder %v8431_v34, %v8418_v24 }
 0x2a6   : > { %v3693_v18 = vpack.c.bf16 %v3477_v42, %v3469_v53  ;;  %v1725_v41 = vadd.f32 %v1469_v56, %v852_v25  ;;  %v1733_v44 = vadd.f32 %v1477_v11, %v860_v61  ;;  %v2342_v31 = vsel %vm2014_vm12, %v8419_v14, 0.0 }
 0x2a7   : > { %v2350_v1 = vsel %vm2022_vm13, %v8419_v14, 0.0  ;;  %vm2887_vm14 = vcmp.eq.s32.totalorder %v8430_v46, %v8420_v30  ;;  %vm2895_vm15 = vcmp.eq.s32.totalorder %v8431_v34, %v8420_v30  ;;  %vm535_vm0 = vcmp.eq.s32.totalorder %v8432_v47, %v4786_v27 }
 0x2a8   : > { %3877 = vmatpush1.bf16.msra.mxu0 %v3693_v18  ;;  %v2598_v10 = vadd.f32 %v2342_v31, %v1725_v41  ;;  %v2606_v15 = vadd.f32 %v2350_v1, %v1733_v44  ;;  %v3215_v21 = vsel %vm2887_vm14, %v8421_v8, 0.0  ;;  %v3223_v54 = vsel %vm2895_vm15, %v8421_v8, 0.0 }
 0x2a9   : > { %vm543_vm1 = vcmp.eq.s32.totalorder %v8433_v58, %v4786_v27  ;;  %v867_v0 = vsel %vm535_vm0, %v4828_v43, 0.0  ;;  %vm1156_vm2 = vcmp.eq.s32.totalorder %v8432_v47, %v4867_v59  ;;  %vm1164_vm3 = vcmp.eq.s32.totalorder %v8433_v58, %v4867_v59 }
 0x2aa   : > { %v3471_v46 = vadd.f32 %v3215_v21, %v2598_v10  ;;  %v3479_v34 = vadd.f32 %v3223_v54, %v2606_v15  ;;  %v875_v40 = vsel %vm543_vm1, %v4828_v43, 0.0  ;;  %v1484_v39 = vsel %vm1156_vm2, %v4893_v33, 0.0 }
 0x2ab   : > { %v1492_v48 = vsel %vm1164_vm3, %v4893_v33, 0.0  ;;  %v1740_v53 = vadd.f32 %v1484_v39, %v867_v0  ;;  %vm2029_vm4 = vcmp.eq.s32.totalorder %v8432_v47, %v4930_v60  ;;  %vm2037_vm5 = vcmp.eq.s32.totalorder %v8433_v58, %v4930_v60 }
 0x2ac   : > { %v3695_v42 = vpack.c.bf16 %v3479_v34, %v3471_v46  ;;  %v1748_v25 = vadd.f32 %v1492_v48, %v875_v40  ;;  %v2357_v61 = vsel %vm2029_vm4, %v4958_v28, 0.0  ;;  %v2365_v56 = vsel %vm2037_vm5, %v4958_v28, 0.0 }
 0x2ad   : > { %v2613_v11 = vadd.f32 %v2357_v61, %v1740_v53  ;;  %vm2902_vm6 = vcmp.eq.s32.totalorder %v8432_v47, %v4993_v16  ;;  %vm2910_vm7 = vcmp.eq.s32.totalorder %v8433_v58, %v4993_v16  ;;  %vm537_vm8 = vcmp.eq.s32.totalorder %v8432_v47, %v4794_v29 }
 0x2ae   : > { %3918 = vmatpush1.bf16.msra.mxu1 %v3695_v42  ;;  %v2621_v18 = vadd.f32 %v2365_v56, %v1748_v25  ;;  %v3230_v41 = vsel %vm2902_vm6, %v5023_v37, 0.0  ;;  %v3238_v44 = vsel %vm2910_vm7, %v5023_v37, 0.0  ;;  %vm545_vm9 = vcmp.eq.s32.totalorder %v8433_v58, %v4794_v29 }
 0x2af   : > { %v3486_v31 = vadd.f32 %v3230_v41, %v2613_v11  ;;  %v869_v1 = vsel %vm537_vm8, %v4834_v45, 0.0  ;;  %v877_v10 = vsel %vm545_vm9, %v4834_v45, 0.0  ;;  %vm1158_vm10 = vcmp.eq.s32.totalorder %v8432_v47, %v8400_v22 }
 0x2b0   : > { %v3494_v15 = vadd.f32 %v3238_v44, %v2621_v18  ;;  %vm1166_vm11 = vcmp.eq.s32.totalorder %v8433_v58, %v8400_v22  ;;  %v1486_v21 = vsel %vm1158_vm10, %v8401_v36, 0.0  ;;  %vm2031_vm12 = vcmp.eq.s32.totalorder %v8432_v47, %v8402_v51 }
 0x2b1   : > { %v1494_v54 = vsel %vm1166_vm11, %v8401_v36, 0.0  ;;  %v1742_v0 = vadd.f32 %v1486_v21, %v869_v1  ;;  %vm2039_vm13 = vcmp.eq.s32.totalorder %v8433_v58, %v8402_v51  ;;  %v2359_v46 = vsel %vm2031_vm12, %v8403_v55, 0.0 }
 0x2b2   : > { %v3702_v34 = vpack.c.bf16 %v3494_v15, %v3486_v31  ;;  %v1750_v40 = vadd.f32 %v1494_v54, %v877_v10  ;;  %v2367_v39 = vsel %vm2039_vm13, %v8403_v55, 0.0  ;;  %vm2904_vm14 = vcmp.eq.s32.totalorder %v8432_v47, %v8404_v52 }
 0x2b3   : > { %v2615_v48 = vadd.f32 %v2359_v46, %v1742_v0  ;;  %vm2912_vm15 = vcmp.eq.s32.totalorder %v8433_v58, %v8404_v52  ;;  %v3232_v53 = vsel %vm2904_vm14, %v8405_v6, 0.0  ;;  %vm534_vm0 = vcmp.eq.s32.totalorder %v8432_v47, %v8406_v12 }
 0x2b4   : > { %3878 = vmatprep.subr.bf16.mxu0 %v3702_v34  ;;  %v2623_v42 = vadd.f32 %v2367_v39, %v1750_v40  ;;  %v3240_v25 = vsel %vm2912_vm15, %v8405_v6, 0.0  ;;  %vm542_vm1 = vcmp.eq.s32.totalorder %v8433_v58, %v8406_v12  ;;  %v866_v61 = vsel %vm534_vm0, %v8408_v3, 0.0 }
 0x2b5   : > { %v3488_v56 = vadd.f32 %v3232_v53, %v2615_v48  ;;  %v874_v11 = vsel %vm542_vm1, %v8408_v3, 0.0  ;;  %vm1155_vm2 = vcmp.eq.s32.totalorder %v8432_v47, %v8407_v32  ;;  %vm1163_vm3 = vcmp.eq.s32.totalorder %v8433_v58, %v8407_v32 }
 0x2b6   : > { %v3496_v18 = vadd.f32 %v3240_v25, %v2623_v42  ;;  %v1483_v41 = vsel %vm1155_vm2, %v8409_v26, 0.0  ;;  %v1491_v44 = vsel %vm1163_vm3, %v8409_v26, 0.0  ;;  %vm2028_vm4 = vcmp.eq.s32.totalorder %v8432_v47, %v8410_v35 }
 0x2b7   : > { %v1739_v31 = vadd.f32 %v1483_v41, %v866_v61  ;;  %v1747_v1 = vadd.f32 %v1491_v44, %v874_v11  ;;  %vm2036_vm5 = vcmp.eq.s32.totalorder %v8433_v58, %v8410_v35  ;;  %v2356_v10 = vsel %vm2028_vm4, %v8411_v57, 0.0  ;;  %v8434_v44 = vld [vmem:[#allocation55_spill] sm:$0xff] }
 0x2b8   : > { %v3704_v15 = vpack.c.bf16 %v3496_v18, %v3488_v56  ;;  %v2364_v21 = vsel %vm2036_vm5, %v8411_v57, 0.0  ;;  %vm2901_vm6 = vcmp.eq.s32.totalorder %v8432_v47, %v8412_v62  ;;  %vm2909_vm7 = vcmp.eq.s32.totalorder %v8433_v58, %v8412_v62 }
 0x2b9   : > { %v2612_v54 = vadd.f32 %v2356_v10, %v1739_v31  ;;  %v2620_v0 = vadd.f32 %v2364_v21, %v1747_v1  ;;  %v3229_v46 = vsel %vm2901_vm6, %v8413_v13, 0.0  ;;  %v3237_v34 = vsel %vm2909_vm7, %v8413_v13, 0.0  ;;  %v8435_v21 = vld [vmem:[#allocation56_spill] sm:$0xff] }
 0x2ba   : > { %3919 = vmatprep.subr.bf16.mxu1 %v3704_v15  ;;  %vm536_vm8 = vcmp.eq.s32.totalorder %v8432_v47, %v8414_v50  ;;  %vm544_vm9 = vcmp.eq.s32.totalorder %v8433_v58, %v8414_v50  ;;  %vm1157_vm10 = vcmp.eq.s32.totalorder %v8432_v47, %v8416_v23  ;;  %vm1165_vm11 = vcmp.eq.s32.totalorder %v8433_v58, %v8416_v23 }
 0x2bb   : > { %v3485_v40 = vadd.f32 %v3229_v46, %v2612_v54  ;;  %v3493_v39 = vadd.f32 %v3237_v34, %v2620_v0  ;;  %v868_v48 = vsel %vm536_vm8, %v8415_v38, 0.0  ;;  %v876_v53 = vsel %vm544_vm9, %v8415_v38, 0.0 }
 0x2bc   : > { %v1485_v42 = vsel %vm1157_vm10, %v8417_v63, 0.0  ;;  %v1493_v25 = vsel %vm1165_vm11, %v8417_v63, 0.0  ;;  %vm2030_vm12 = vcmp.eq.s32.totalorder %v8432_v47, %v8418_v24  ;;  %vm2038_vm13 = vcmp.eq.s32.totalorder %v8433_v58, %v8418_v24 }
 0x2bd   : > { %v3701_v61 = vpack.c.bf16 %v3493_v39, %v3485_v40  ;;  %v1741_v56 = vadd.f32 %v1485_v42, %v868_v48  ;;  %v1749_v11 = vadd.f32 %v1493_v25, %v876_v53  ;;  %v2358_v18 = vsel %vm2030_vm12, %v8419_v14, 0.0 }
 0x2be   : > { %v2366_v41 = vsel %vm2038_vm13, %v8419_v14, 0.0  ;;  %vm2903_vm14 = vcmp.eq.s32.totalorder %v8432_v47, %v8420_v30  ;;  %vm2911_vm15 = vcmp.eq.s32.totalorder %v8433_v58, %v8420_v30  ;;  %vm551_vm0 = vcmp.eq.s32.totalorder %v8434_v44, %v4786_v27 }
 0x2bf   : > { %3879 = vmatpush1.bf16.msra.mxu0 %v3701_v61  ;;  %v2614_v31 = vadd.f32 %v2358_v18, %v1741_v56  ;;  %v2622_v1 = vadd.f32 %v2366_v41, %v1749_v11  ;;  %v3231_v10 = vsel %vm2903_vm14, %v8421_v8, 0.0  ;;  %v3239_v15 = vsel %vm2911_vm15, %v8421_v8, 0.0 }
 0x2c0   : > { %vm559_vm1 = vcmp.eq.s32.totalorder %v8435_v21, %v4786_v27  ;;  %v883_v54 = vsel %vm551_vm0, %v4828_v43, 0.0  ;;  %vm1172_vm2 = vcmp.eq.s32.totalorder %v8434_v44, %v4867_v59  ;;  %vm1180_vm3 = vcmp.eq.s32.totalorder %v8435_v21, %v4867_v59 }
 0x2c1   : > { %v3487_v47 = vadd.f32 %v3231_v10, %v2614_v31  ;;  %v3495_v58 = vadd.f32 %v3239_v15, %v2622_v1  ;;  %v891_v0 = vsel %vm559_vm1, %v4828_v43, 0.0  ;;  %v1500_v46 = vsel %vm1172_vm2, %v4893_v33, 0.0 }
 0x2c2   : > { %v1508_v34 = vsel %vm1180_vm3, %v4893_v33, 0.0  ;;  %v1756_v40 = vadd.f32 %v1500_v46, %v883_v54  ;;  %vm2045_vm4 = vcmp.eq.s32.totalorder %v8434_v44, %v4930_v60  ;;  %vm2053_vm5 = vcmp.eq.s32.totalorder %v8435_v21, %v4930_v60 }
 0x2c3   : > { %v3703_v39 = vpack.c.bf16 %v3495_v58, %v3487_v47  ;;  %v1764_v48 = vadd.f32 %v1508_v34, %v891_v0  ;;  %v2373_v53 = vsel %vm2045_vm4, %v4958_v28, 0.0  ;;  %v2381_v42 = vsel %vm2053_vm5, %v4958_v28, 0.0 }
 0x2c4   : > { %v2629_v25 = vadd.f32 %v2373_v53, %v1756_v40  ;;  %vm2918_vm6 = vcmp.eq.s32.totalorder %v8434_v44, %v4993_v16  ;;  %vm2926_vm7 = vcmp.eq.s32.totalorder %v8435_v21, %v4993_v16  ;;  %vm553_vm8 = vcmp.eq.s32.totalorder %v8434_v44, %v4794_v29 }
 0x2c5   : > { %3920 = vmatpush1.bf16.msra.mxu1 %v3703_v39  ;;  %v2637_v61 = vadd.f32 %v2381_v42, %v1764_v48  ;;  %v3246_v56 = vsel %vm2918_vm6, %v5023_v37, 0.0  ;;  %v3254_v11 = vsel %vm2926_vm7, %v5023_v37, 0.0  ;;  %vm561_vm9 = vcmp.eq.s32.totalorder %v8435_v21, %v4794_v29 }
 0x2c6   : > { %v3502_v18 = vadd.f32 %v3246_v56, %v2629_v25  ;;  %v885_v41 = vsel %vm553_vm8, %v4834_v45, 0.0  ;;  %v893_v31 = vsel %vm561_vm9, %v4834_v45, 0.0  ;;  %vm1174_vm10 = vcmp.eq.s32.totalorder %v8434_v44, %v8400_v22 }
 0x2c7   : > { %v3510_v1 = vadd.f32 %v3254_v11, %v2637_v61  ;;  %vm1182_vm11 = vcmp.eq.s32.totalorder %v8435_v21, %v8400_v22  ;;  %v1502_v10 = vsel %vm1174_vm10, %v8401_v36, 0.0  ;;  %vm2047_vm12 = vcmp.eq.s32.totalorder %v8434_v44, %v8402_v51 }
 0x2c8   : > { %v1510_v15 = vsel %vm1182_vm11, %v8401_v36, 0.0  ;;  %v1758_v54 = vadd.f32 %v1502_v10, %v885_v41  ;;  %vm2055_vm13 = vcmp.eq.s32.totalorder %v8435_v21, %v8402_v51  ;;  %v2375_v47 = vsel %vm2047_vm12, %v8403_v55, 0.0 }
 0x2c9   : > { %v3710_v58 = vpack.c.bf16 %v3510_v1, %v3502_v18  ;;  %v1766_v0 = vadd.f32 %v1510_v15, %v893_v31  ;;  %v2383_v46 = vsel %vm2055_vm13, %v8403_v55, 0.0  ;;  %vm2920_vm14 = vcmp.eq.s32.totalorder %v8434_v44, %v8404_v52 }
 0x2ca   : > { %v2631_v34 = vadd.f32 %v2375_v47, %v1758_v54  ;;  %vm2928_vm15 = vcmp.eq.s32.totalorder %v8435_v21, %v8404_v52  ;;  %v3248_v40 = vsel %vm2920_vm14, %v8405_v6, 0.0  ;;  %vm550_vm0 = vcmp.eq.s32.totalorder %v8434_v44, %v8406_v12 }
 0x2cb   : > { %3880 = vmatprep.subr.bf16.mxu0 %v3710_v58  ;;  %v2639_v39 = vadd.f32 %v2383_v46, %v1766_v0  ;;  %v3256_v48 = vsel %vm2928_vm15, %v8405_v6, 0.0  ;;  %vm558_vm1 = vcmp.eq.s32.totalorder %v8435_v21, %v8406_v12  ;;  %v882_v53 = vsel %vm550_vm0, %v8408_v3, 0.0 }
 0x2cc   : > { %v3504_v42 = vadd.f32 %v3248_v40, %v2631_v34  ;;  %v890_v25 = vsel %vm558_vm1, %v8408_v3, 0.0  ;;  %vm1171_vm2 = vcmp.eq.s32.totalorder %v8434_v44, %v8407_v32  ;;  %vm1179_vm3 = vcmp.eq.s32.totalorder %v8435_v21, %v8407_v32 }
 0x2cd   : > { %v3512_v61 = vadd.f32 %v3256_v48, %v2639_v39  ;;  %v1499_v56 = vsel %vm1171_vm2, %v8409_v26, 0.0  ;;  %v1507_v11 = vsel %vm1179_vm3, %v8409_v26, 0.0  ;;  %vm2044_vm4 = vcmp.eq.s32.totalorder %v8434_v44, %v8410_v35 }
 0x2ce   : > { %v1755_v18 = vadd.f32 %v1499_v56, %v882_v53  ;;  %v1763_v41 = vadd.f32 %v1507_v11, %v890_v25  ;;  %vm2052_vm5 = vcmp.eq.s32.totalorder %v8435_v21, %v8410_v35  ;;  %v2372_v31 = vsel %vm2044_vm4, %v8411_v57, 0.0  ;;  %v8436_v11 = vld [vmem:[#allocation57_spill] sm:$0xff] }
 0x2cf   : > { %v3712_v1 = vpack.c.bf16 %v3512_v61, %v3504_v42  ;;  %v2380_v10 = vsel %vm2052_vm5, %v8411_v57, 0.0  ;;  %vm2917_vm6 = vcmp.eq.s32.totalorder %v8434_v44, %v8412_v62  ;;  %vm2925_vm7 = vcmp.eq.s32.totalorder %v8435_v21, %v8412_v62 }
 0x2d0   : > { %v2628_v15 = vadd.f32 %v2372_v31, %v1755_v18  ;;  %v2636_v54 = vadd.f32 %v2380_v10, %v1763_v41  ;;  %v3245_v47 = vsel %vm2917_vm6, %v8413_v13, 0.0  ;;  %v3253_v58 = vsel %vm2925_vm7, %v8413_v13, 0.0  ;;  %v8437_v10 = vld [vmem:[#allocation58_spill] sm:$0xff] }
 0x2d1   : > { %3921 = vmatprep.subr.bf16.mxu1 %v3712_v1  ;;  %vm552_vm8 = vcmp.eq.s32.totalorder %v8434_v44, %v8414_v50  ;;  %vm560_vm9 = vcmp.eq.s32.totalorder %v8435_v21, %v8414_v50  ;;  %vm1173_vm10 = vcmp.eq.s32.totalorder %v8434_v44, %v8416_v23  ;;  %vm1181_vm11 = vcmp.eq.s32.totalorder %v8435_v21, %v8416_v23 }
 0x2d2   : > { %v3501_v0 = vadd.f32 %v3245_v47, %v2628_v15  ;;  %v3509_v46 = vadd.f32 %v3253_v58, %v2636_v54  ;;  %v884_v34 = vsel %vm552_vm8, %v8415_v38, 0.0  ;;  %v892_v40 = vsel %vm560_vm9, %v8415_v38, 0.0 }
 0x2d3   : > { %v1501_v39 = vsel %vm1173_vm10, %v8417_v63, 0.0  ;;  %v1509_v48 = vsel %vm1181_vm11, %v8417_v63, 0.0  ;;  %vm2046_vm12 = vcmp.eq.s32.totalorder %v8434_v44, %v8418_v24  ;;  %vm2054_vm13 = vcmp.eq.s32.totalorder %v8435_v21, %v8418_v24 }
 0x2d4   : > { %v3709_v53 = vpack.c.bf16 %v3509_v46, %v3501_v0  ;;  %v1757_v42 = vadd.f32 %v1501_v39, %v884_v34  ;;  %v1765_v25 = vadd.f32 %v1509_v48, %v892_v40  ;;  %v2374_v61 = vsel %vm2046_vm12, %v8419_v14, 0.0 }
 0x2d5   : > { %v2382_v56 = vsel %vm2054_vm13, %v8419_v14, 0.0  ;;  %vm2919_vm14 = vcmp.eq.s32.totalorder %v8434_v44, %v8420_v30  ;;  %vm2927_vm15 = vcmp.eq.s32.totalorder %v8435_v21, %v8420_v30  ;;  %vm567_vm0 = vcmp.eq.s32.totalorder %v8436_v11, %v4786_v27 }
 0x2d6   : > { %3881 = vmatpush1.bf16.msra.mxu0 %v3709_v53  ;;  %v2630_v18 = vadd.f32 %v2374_v61, %v1757_v42  ;;  %v2638_v41 = vadd.f32 %v2382_v56, %v1765_v25  ;;  %v3247_v31 = vsel %vm2919_vm14, %v8421_v8, 0.0  ;;  %v3255_v1 = vsel %vm2927_vm15, %v8421_v8, 0.0 }
 0x2d7   : > { %vm575_vm1 = vcmp.eq.s32.totalorder %v8437_v10, %v4786_v27  ;;  %v899_v15 = vsel %vm567_vm0, %v4828_v43, 0.0  ;;  %vm1188_vm2 = vcmp.eq.s32.totalorder %v8436_v11, %v4867_v59  ;;  %vm1196_vm3 = vcmp.eq.s32.totalorder %v8437_v10, %v4867_v59 }
 0x2d8   : > { %v3503_v44 = vadd.f32 %v3247_v31, %v2630_v18  ;;  %v3511_v21 = vadd.f32 %v3255_v1, %v2638_v41  ;;  %v907_v54 = vsel %vm575_vm1, %v4828_v43, 0.0  ;;  %v1516_v47 = vsel %vm1188_vm2, %v4893_v33, 0.0 }
 0x2d9   : > { %v1524_v58 = vsel %vm1196_vm3, %v4893_v33, 0.0  ;;  %v1772_v0 = vadd.f32 %v1516_v47, %v899_v15  ;;  %vm2061_vm4 = vcmp.eq.s32.totalorder %v8436_v11, %v4930_v60  ;;  %vm2069_vm5 = vcmp.eq.s32.totalorder %v8437_v10, %v4930_v60 }
 0x2da   : > { %v3711_v46 = vpack.c.bf16 %v3511_v21, %v3503_v44  ;;  %v1780_v34 = vadd.f32 %v1524_v58, %v907_v54  ;;  %v2389_v40 = vsel %vm2061_vm4, %v4958_v28, 0.0  ;;  %v2397_v39 = vsel %vm2069_vm5, %v4958_v28, 0.0 }
 0x2db   : > { %v2645_v48 = vadd.f32 %v2389_v40, %v1772_v0  ;;  %vm2934_vm6 = vcmp.eq.s32.totalorder %v8436_v11, %v4993_v16  ;;  %vm2942_vm7 = vcmp.eq.s32.totalorder %v8437_v10, %v4993_v16  ;;  %vm569_vm8 = vcmp.eq.s32.totalorder %v8436_v11, %v4794_v29 }
 0x2dc   : > { %3922 = vmatpush1.bf16.msra.mxu1 %v3711_v46  ;;  %v2653_v53 = vadd.f32 %v2397_v39, %v1780_v34  ;;  %v3262_v42 = vsel %vm2934_vm6, %v5023_v37, 0.0  ;;  %v3270_v25 = vsel %vm2942_vm7, %v5023_v37, 0.0  ;;  %vm577_vm9 = vcmp.eq.s32.totalorder %v8437_v10, %v4794_v29 }
 0x2dd   : > { %v3518_v61 = vadd.f32 %v3262_v42, %v2645_v48  ;;  %v901_v56 = vsel %vm569_vm8, %v4834_v45, 0.0  ;;  %v909_v18 = vsel %vm577_vm9, %v4834_v45, 0.0  ;;  %vm1190_vm10 = vcmp.eq.s32.totalorder %v8436_v11, %v8400_v22 }
 0x2de   : > { %v3526_v41 = vadd.f32 %v3270_v25, %v2653_v53  ;;  %vm1198_vm11 = vcmp.eq.s32.totalorder %v8437_v10, %v8400_v22  ;;  %v1518_v31 = vsel %vm1190_vm10, %v8401_v36, 0.0  ;;  %vm2063_vm12 = vcmp.eq.s32.totalorder %v8436_v11, %v8402_v51 }
 0x2df   : > { %v1526_v1 = vsel %vm1198_vm11, %v8401_v36, 0.0  ;;  %v1774_v15 = vadd.f32 %v1518_v31, %v901_v56  ;;  %vm2071_vm13 = vcmp.eq.s32.totalorder %v8437_v10, %v8402_v51  ;;  %v2391_v44 = vsel %vm2063_vm12, %v8403_v55, 0.0 }
 0x2e0   : > { %v3718_v21 = vpack.c.bf16 %v3526_v41, %v3518_v61  ;;  %v1782_v54 = vadd.f32 %v1526_v1, %v909_v18  ;;  %v2399_v47 = vsel %vm2071_vm13, %v8403_v55, 0.0  ;;  %vm2936_vm14 = vcmp.eq.s32.totalorder %v8436_v11, %v8404_v52 }
 0x2e1   : > { %v2647_v58 = vadd.f32 %v2391_v44, %v1774_v15  ;;  %vm2944_vm15 = vcmp.eq.s32.totalorder %v8437_v10, %v8404_v52  ;;  %v3264_v0 = vsel %vm2936_vm14, %v8405_v6, 0.0  ;;  %vm566_vm0 = vcmp.eq.s32.totalorder %v8436_v11, %v8406_v12 }
 0x2e2   : > { %3882 = vmatprep.subr.bf16.mxu0 %v3718_v21  ;;  %v2655_v46 = vadd.f32 %v2399_v47, %v1782_v54  ;;  %v3272_v34 = vsel %vm2944_vm15, %v8405_v6, 0.0  ;;  %vm574_vm1 = vcmp.eq.s32.totalorder %v8437_v10, %v8406_v12  ;;  %v898_v40 = vsel %vm566_vm0, %v8408_v3, 0.0 }
 0x2e3   : > { %v3520_v39 = vadd.f32 %v3264_v0, %v2647_v58  ;;  %v906_v48 = vsel %vm574_vm1, %v8408_v3, 0.0  ;;  %vm1187_vm2 = vcmp.eq.s32.totalorder %v8436_v11, %v8407_v32  ;;  %vm1195_vm3 = vcmp.eq.s32.totalorder %v8437_v10, %v8407_v32 }
 0x2e4   : > { %v3528_v53 = vadd.f32 %v3272_v34, %v2655_v46  ;;  %v1515_v42 = vsel %vm1187_vm2, %v8409_v26, 0.0  ;;  %v1523_v25 = vsel %vm1195_vm3, %v8409_v26, 0.0  ;;  %vm2060_vm4 = vcmp.eq.s32.totalorder %v8436_v11, %v8410_v35 }
 0x2e5   : > { %v1771_v61 = vadd.f32 %v1515_v42, %v898_v40  ;;  %v1779_v56 = vadd.f32 %v1523_v25, %v906_v48  ;;  %vm2068_vm5 = vcmp.eq.s32.totalorder %v8437_v10, %v8410_v35  ;;  %v2388_v18 = vsel %vm2060_vm4, %v8411_v57, 0.0  ;;  %v8438_v25 = vld [vmem:[#allocation59_spill] sm:$0xff] }
 0x2e6   : > { %v3720_v41 = vpack.c.bf16 %v3528_v53, %v3520_v39  ;;  %v2396_v31 = vsel %vm2068_vm5, %v8411_v57, 0.0  ;;  %vm2933_vm6 = vcmp.eq.s32.totalorder %v8436_v11, %v8412_v62  ;;  %vm2941_vm7 = vcmp.eq.s32.totalorder %v8437_v10, %v8412_v62 }
 0x2e7   : > { %v2644_v1 = vadd.f32 %v2388_v18, %v1771_v61  ;;  %v2652_v15 = vadd.f32 %v2396_v31, %v1779_v56  ;;  %v3261_v44 = vsel %vm2933_vm6, %v8413_v13, 0.0  ;;  %v3269_v21 = vsel %vm2941_vm7, %v8413_v13, 0.0  ;;  %v8439_v31 = vld [vmem:[#allocation60_spill] sm:$0xff] }
 0x2e8   : > { %3923 = vmatprep.subr.bf16.mxu1 %v3720_v41  ;;  %vm568_vm8 = vcmp.eq.s32.totalorder %v8436_v11, %v8414_v50  ;;  %vm576_vm9 = vcmp.eq.s32.totalorder %v8437_v10, %v8414_v50  ;;  %vm1189_vm10 = vcmp.eq.s32.totalorder %v8436_v11, %v8416_v23  ;;  %vm1197_vm11 = vcmp.eq.s32.totalorder %v8437_v10, %v8416_v23 }
 0x2e9   : > { %v3517_v54 = vadd.f32 %v3261_v44, %v2644_v1  ;;  %v3525_v47 = vadd.f32 %v3269_v21, %v2652_v15  ;;  %v900_v58 = vsel %vm568_vm8, %v8415_v38, 0.0  ;;  %v908_v0 = vsel %vm576_vm9, %v8415_v38, 0.0 }
 0x2ea   : > { %v1517_v46 = vsel %vm1189_vm10, %v8417_v63, 0.0  ;;  %v1525_v34 = vsel %vm1197_vm11, %v8417_v63, 0.0  ;;  %vm2062_vm12 = vcmp.eq.s32.totalorder %v8436_v11, %v8418_v24  ;;  %vm2070_vm13 = vcmp.eq.s32.totalorder %v8437_v10, %v8418_v24 }
 0x2eb   : > { %v3717_v40 = vpack.c.bf16 %v3525_v47, %v3517_v54  ;;  %v1773_v39 = vadd.f32 %v1517_v46, %v900_v58  ;;  %v1781_v48 = vadd.f32 %v1525_v34, %v908_v0  ;;  %v2390_v53 = vsel %vm2062_vm12, %v8419_v14, 0.0 }
 0x2ec   : > { %v2398_v42 = vsel %vm2070_vm13, %v8419_v14, 0.0  ;;  %vm2935_vm14 = vcmp.eq.s32.totalorder %v8436_v11, %v8420_v30  ;;  %vm2943_vm15 = vcmp.eq.s32.totalorder %v8437_v10, %v8420_v30  ;;  %vm583_vm0 = vcmp.eq.s32.totalorder %v8438_v25, %v4786_v27 }
 0x2ed   : > { %3883 = vmatpush1.bf16.msra.mxu0 %v3717_v40  ;;  %v2646_v61 = vadd.f32 %v2390_v53, %v1773_v39  ;;  %v2654_v56 = vadd.f32 %v2398_v42, %v1781_v48  ;;  %v3263_v18 = vsel %vm2935_vm14, %v8421_v8, 0.0  ;;  %v3271_v41 = vsel %vm2943_vm15, %v8421_v8, 0.0 }
 0x2ee   : > { %vm591_vm1 = vcmp.eq.s32.totalorder %v8439_v31, %v4786_v27  ;;  %v915_v1 = vsel %vm583_vm0, %v4828_v43, 0.0  ;;  %vm1204_vm2 = vcmp.eq.s32.totalorder %v8438_v25, %v4867_v59  ;;  %vm1212_vm3 = vcmp.eq.s32.totalorder %v8439_v31, %v4867_v59 }
 0x2ef   : > { %v3519_v11 = vadd.f32 %v3263_v18, %v2646_v61  ;;  %v3527_v10 = vadd.f32 %v3271_v41, %v2654_v56  ;;  %v923_v15 = vsel %vm591_vm1, %v4828_v43, 0.0  ;;  %v1532_v44 = vsel %vm1204_vm2, %v4893_v33, 0.0 }
 0x2f0   : > { %v1540_v21 = vsel %vm1212_vm3, %v4893_v33, 0.0  ;;  %v1788_v54 = vadd.f32 %v1532_v44, %v915_v1  ;;  %vm2077_vm4 = vcmp.eq.s32.totalorder %v8438_v25, %v4930_v60  ;;  %vm2085_vm5 = vcmp.eq.s32.totalorder %v8439_v31, %v4930_v60 }
 0x2f1   : > { %v3719_v47 = vpack.c.bf16 %v3527_v10, %v3519_v11  ;;  %v1796_v58 = vadd.f32 %v1540_v21, %v923_v15  ;;  %v2405_v0 = vsel %vm2077_vm4, %v4958_v28, 0.0  ;;  %v2413_v46 = vsel %vm2085_vm5, %v4958_v28, 0.0 }
 0x2f2   : > { %v2661_v34 = vadd.f32 %v2405_v0, %v1788_v54  ;;  %vm2950_vm6 = vcmp.eq.s32.totalorder %v8438_v25, %v4993_v16  ;;  %vm2958_vm7 = vcmp.eq.s32.totalorder %v8439_v31, %v4993_v16  ;;  %vm585_vm8 = vcmp.eq.s32.totalorder %v8438_v25, %v4794_v29 }
 0x2f3   : > { %3924 = vmatpush1.bf16.msra.mxu1 %v3719_v47  ;;  %v2669_v40 = vadd.f32 %v2413_v46, %v1796_v58  ;;  %v3278_v39 = vsel %vm2950_vm6, %v5023_v37, 0.0  ;;  %v3286_v48 = vsel %vm2958_vm7, %v5023_v37, 0.0  ;;  %vm593_vm9 = vcmp.eq.s32.totalorder %v8439_v31, %v4794_v29 }
 0x2f4   : > { %v3534_v53 = vadd.f32 %v3278_v39, %v2661_v34  ;;  %v917_v42 = vsel %vm585_vm8, %v4834_v45, 0.0  ;;  %v925_v61 = vsel %vm593_vm9, %v4834_v45, 0.0  ;;  %vm1206_vm10 = vcmp.eq.s32.totalorder %v8438_v25, %v8400_v22 }
 0x2f5   : > { %v3542_v56 = vadd.f32 %v3286_v48, %v2669_v40  ;;  %vm1214_vm11 = vcmp.eq.s32.totalorder %v8439_v31, %v8400_v22  ;;  %v1534_v18 = vsel %vm1206_vm10, %v8401_v36, 0.0  ;;  %vm2079_vm12 = vcmp.eq.s32.totalorder %v8438_v25, %v8402_v51 }
 0x2f6   : > { %v1542_v41 = vsel %vm1214_vm11, %v8401_v36, 0.0  ;;  %v1790_v1 = vadd.f32 %v1534_v18, %v917_v42  ;;  %vm2087_vm13 = vcmp.eq.s32.totalorder %v8439_v31, %v8402_v51  ;;  %v2407_v11 = vsel %vm2079_vm12, %v8403_v55, 0.0 }
 0x2f7   : > { %v3726_v10 = vpack.c.bf16 %v3542_v56, %v3534_v53  ;;  %v1798_v15 = vadd.f32 %v1542_v41, %v925_v61  ;;  %v2415_v44 = vsel %vm2087_vm13, %v8403_v55, 0.0  ;;  %vm2952_vm14 = vcmp.eq.s32.totalorder %v8438_v25, %v8404_v52 }
 0x2f8   : > { %v2663_v21 = vadd.f32 %v2407_v11, %v1790_v1  ;;  %vm2960_vm15 = vcmp.eq.s32.totalorder %v8439_v31, %v8404_v52  ;;  %v3280_v54 = vsel %vm2952_vm14, %v8405_v6, 0.0  ;;  %vm582_vm0 = vcmp.eq.s32.totalorder %v8438_v25, %v8406_v12 }
 0x2f9   : > { %3884 = vmatprep.subr.bf16.mxu0 %v3726_v10  ;;  %v2671_v47 = vadd.f32 %v2415_v44, %v1798_v15  ;;  %v3288_v58 = vsel %vm2960_vm15, %v8405_v6, 0.0  ;;  %vm590_vm1 = vcmp.eq.s32.totalorder %v8439_v31, %v8406_v12  ;;  %v914_v0 = vsel %vm582_vm0, %v8408_v3, 0.0 }
 0x2fa   : > { %v3536_v46 = vadd.f32 %v3280_v54, %v2663_v21  ;;  %v922_v34 = vsel %vm590_vm1, %v8408_v3, 0.0  ;;  %vm1203_vm2 = vcmp.eq.s32.totalorder %v8438_v25, %v8407_v32  ;;  %vm1211_vm3 = vcmp.eq.s32.totalorder %v8439_v31, %v8407_v32 }
 0x2fb   : > { %v3544_v40 = vadd.f32 %v3288_v58, %v2671_v47  ;;  %v1531_v39 = vsel %vm1203_vm2, %v8409_v26, 0.0  ;;  %v1539_v48 = vsel %vm1211_vm3, %v8409_v26, 0.0  ;;  %vm2076_vm4 = vcmp.eq.s32.totalorder %v8438_v25, %v8410_v35 }
 0x2fc   : > { %v1787_v53 = vadd.f32 %v1531_v39, %v914_v0  ;;  %v1795_v42 = vadd.f32 %v1539_v48, %v922_v34  ;;  %vm2084_vm5 = vcmp.eq.s32.totalorder %v8439_v31, %v8410_v35  ;;  %v2404_v61 = vsel %vm2076_vm4, %v8411_v57, 0.0  ;;  %v8440_v48 = vld [vmem:[#allocation61_spill] sm:$0xff] }
 0x2fd   : > { %v3728_v56 = vpack.c.bf16 %v3544_v40, %v3536_v46  ;;  %v2412_v18 = vsel %vm2084_vm5, %v8411_v57, 0.0  ;;  %vm2949_vm6 = vcmp.eq.s32.totalorder %v8438_v25, %v8412_v62  ;;  %vm2957_vm7 = vcmp.eq.s32.totalorder %v8439_v31, %v8412_v62 }
 0x2fe   : > { %v2660_v41 = vadd.f32 %v2404_v61, %v1787_v53  ;;  %v2668_v1 = vadd.f32 %v2412_v18, %v1795_v42  ;;  %v3277_v11 = vsel %vm2949_vm6, %v8413_v13, 0.0  ;;  %v3285_v10 = vsel %vm2957_vm7, %v8413_v13, 0.0  ;;  %v8441_v18 = vld [vmem:[#allocation62_spill] sm:$0xff] }
 0x2ff   : > { %3925 = vmatprep.subr.bf16.mxu1 %v3728_v56  ;;  %vm584_vm8 = vcmp.eq.s32.totalorder %v8438_v25, %v8414_v50  ;;  %vm592_vm9 = vcmp.eq.s32.totalorder %v8439_v31, %v8414_v50  ;;  %vm1205_vm10 = vcmp.eq.s32.totalorder %v8438_v25, %v8416_v23  ;;  %vm1213_vm11 = vcmp.eq.s32.totalorder %v8439_v31, %v8416_v23 }
 0x300   : > { %v3533_v15 = vadd.f32 %v3277_v11, %v2660_v41  ;;  %v3541_v44 = vadd.f32 %v3285_v10, %v2668_v1  ;;  %v916_v21 = vsel %vm584_vm8, %v8415_v38, 0.0  ;;  %v924_v54 = vsel %vm592_vm9, %v8415_v38, 0.0 }
 0x301   : > { %v1533_v47 = vsel %vm1205_vm10, %v8417_v63, 0.0  ;;  %v1541_v58 = vsel %vm1213_vm11, %v8417_v63, 0.0  ;;  %vm2078_vm12 = vcmp.eq.s32.totalorder %v8438_v25, %v8418_v24  ;;  %vm2086_vm13 = vcmp.eq.s32.totalorder %v8439_v31, %v8418_v24 }
 0x302   : > { %v3725_v0 = vpack.c.bf16 %v3541_v44, %v3533_v15  ;;  %v1789_v46 = vadd.f32 %v1533_v47, %v916_v21  ;;  %v1797_v34 = vadd.f32 %v1541_v58, %v924_v54  ;;  %v2406_v40 = vsel %vm2078_vm12, %v8419_v14, 0.0 }
 0x303   : > { %v2414_v39 = vsel %vm2086_vm13, %v8419_v14, 0.0  ;;  %vm2951_vm14 = vcmp.eq.s32.totalorder %v8438_v25, %v8420_v30  ;;  %vm2959_vm15 = vcmp.eq.s32.totalorder %v8439_v31, %v8420_v30  ;;  %vm599_vm0 = vcmp.eq.s32.totalorder %v8440_v48, %v4786_v27 }
 0x304   : > { %3885 = vmatpush1.bf16.msra.mxu0 %v3725_v0  ;;  %v2662_v53 = vadd.f32 %v2406_v40, %v1789_v46  ;;  %v2670_v42 = vadd.f32 %v2414_v39, %v1797_v34  ;;  %v3279_v61 = vsel %vm2951_vm14, %v8421_v8, 0.0  ;;  %v3287_v56 = vsel %vm2959_vm15, %v8421_v8, 0.0 }
 0x305   : > { %vm607_vm1 = vcmp.eq.s32.totalorder %v8441_v18, %v4786_v27  ;;  %v931_v41 = vsel %vm599_vm0, %v4828_v43, 0.0  ;;  %vm1220_vm2 = vcmp.eq.s32.totalorder %v8440_v48, %v4867_v59  ;;  %vm1228_vm3 = vcmp.eq.s32.totalorder %v8441_v18, %v4867_v59 }
 0x306   : > { %v3535_v25 = vadd.f32 %v3279_v61, %v2662_v53  ;;  %v3543_v31 = vadd.f32 %v3287_v56, %v2670_v42  ;;  %v939_v1 = vsel %vm607_vm1, %v4828_v43, 0.0  ;;  %v1548_v11 = vsel %vm1220_vm2, %v4893_v33, 0.0 }
 0x307   : > { %v1556_v10 = vsel %vm1228_vm3, %v4893_v33, 0.0  ;;  %v1804_v15 = vadd.f32 %v1548_v11, %v931_v41  ;;  %vm2093_vm4 = vcmp.eq.s32.totalorder %v8440_v48, %v4930_v60  ;;  %vm2101_vm5 = vcmp.eq.s32.totalorder %v8441_v18, %v4930_v60 }
 0x308   : > { %v3727_v44 = vpack.c.bf16 %v3543_v31, %v3535_v25  ;;  %v1812_v21 = vadd.f32 %v1556_v10, %v939_v1  ;;  %v2421_v54 = vsel %vm2093_vm4, %v4958_v28, 0.0  ;;  %v2429_v47 = vsel %vm2101_vm5, %v4958_v28, 0.0 }
 0x309   : > { %v2677_v58 = vadd.f32 %v2421_v54, %v1804_v15  ;;  %vm2966_vm6 = vcmp.eq.s32.totalorder %v8440_v48, %v4993_v16  ;;  %vm2974_vm7 = vcmp.eq.s32.totalorder %v8441_v18, %v4993_v16  ;;  %vm601_vm8 = vcmp.eq.s32.totalorder %v8440_v48, %v4794_v29 }
 0x30a   : > { %3926 = vmatpush1.bf16.msra.mxu1 %v3727_v44  ;;  %v2685_v0 = vadd.f32 %v2429_v47, %v1812_v21  ;;  %v3294_v46 = vsel %vm2966_vm6, %v5023_v37, 0.0  ;;  %v3302_v34 = vsel %vm2974_vm7, %v5023_v37, 0.0  ;;  %vm609_vm9 = vcmp.eq.s32.totalorder %v8441_v18, %v4794_v29 }
 0x30b   : > { %v3550_v40 = vadd.f32 %v3294_v46, %v2677_v58  ;;  %v933_v39 = vsel %vm601_vm8, %v4834_v45, 0.0  ;;  %v941_v53 = vsel %vm609_vm9, %v4834_v45, 0.0  ;;  %vm1222_vm10 = vcmp.eq.s32.totalorder %v8440_v48, %v8400_v22 }
 0x30c   : > { %v3558_v42 = vadd.f32 %v3302_v34, %v2685_v0  ;;  %vm1230_vm11 = vcmp.eq.s32.totalorder %v8441_v18, %v8400_v22  ;;  %v1550_v61 = vsel %vm1222_vm10, %v8401_v36, 0.0  ;;  %vm2095_vm12 = vcmp.eq.s32.totalorder %v8440_v48, %v8402_v51 }
 0x30d   : > { %v1558_v56 = vsel %vm1230_vm11, %v8401_v36, 0.0  ;;  %v1806_v41 = vadd.f32 %v1550_v61, %v933_v39  ;;  %vm2103_vm13 = vcmp.eq.s32.totalorder %v8441_v18, %v8402_v51  ;;  %v2423_v25 = vsel %vm2095_vm12, %v8403_v55, 0.0 }
 0x30e   : > { %v3734_v31 = vpack.c.bf16 %v3558_v42, %v3550_v40  ;;  %v1814_v1 = vadd.f32 %v1558_v56, %v941_v53  ;;  %v2431_v11 = vsel %vm2103_vm13, %v8403_v55, 0.0  ;;  %vm2968_vm14 = vcmp.eq.s32.totalorder %v8440_v48, %v8404_v52 }
 0x30f   : > { %v2679_v10 = vadd.f32 %v2423_v25, %v1806_v41  ;;  %vm2976_vm15 = vcmp.eq.s32.totalorder %v8441_v18, %v8404_v52  ;;  %v3296_v15 = vsel %vm2968_vm14, %v8405_v6, 0.0  ;;  %vm598_vm0 = vcmp.eq.s32.totalorder %v8440_v48, %v8406_v12 }
 0x310   : > { %3886 = vmatprep.subr.bf16.mxu0 %v3734_v31  ;;  %v2687_v44 = vadd.f32 %v2431_v11, %v1814_v1  ;;  %v3304_v21 = vsel %vm2976_vm15, %v8405_v6, 0.0  ;;  %vm606_vm1 = vcmp.eq.s32.totalorder %v8441_v18, %v8406_v12  ;;  %v930_v54 = vsel %vm598_vm0, %v8408_v3, 0.0 }
 0x311   : > { %v3552_v47 = vadd.f32 %v3296_v15, %v2679_v10  ;;  %v938_v58 = vsel %vm606_vm1, %v8408_v3, 0.0  ;;  %vm1219_vm2 = vcmp.eq.s32.totalorder %v8440_v48, %v8407_v32  ;;  %vm1227_vm3 = vcmp.eq.s32.totalorder %v8441_v18, %v8407_v32 }
 0x312   : > { %v3560_v0 = vadd.f32 %v3304_v21, %v2687_v44  ;;  %v1547_v46 = vsel %vm1219_vm2, %v8409_v26, 0.0  ;;  %v1555_v34 = vsel %vm1227_vm3, %v8409_v26, 0.0  ;;  %vm2092_vm4 = vcmp.eq.s32.totalorder %v8440_v48, %v8410_v35  ;;  %v3818_v44 = vpop.f32.mrb[0].mxu0  ;;  %v3859_v21 = vpop.f32.mrb[0].mxu1 }
 0x313   : > { %v1803_v40 = vadd.f32 %v1547_v46, %v930_v54  ;;  %v1811_v39 = vadd.f32 %v1555_v34, %v938_v58  ;;  %vm2100_vm5 = vcmp.eq.s32.totalorder %v8441_v18, %v8410_v35  ;;  %v2420_v53 = vsel %vm2092_vm4, %v8411_v57, 0.0  ;;  %v3820_v58 = vpop.f32.mrb[1].mxu0  ;;  %3975 = vst [vmem:[%s7694_s6] sm:$0xff] %v3818_v44  ;;  %3977 = vst [vmem:[%s7694_s6 + $0x10] sm:$0xff] %v3859_v21 }
 0x314   : > { %v3736_v42 = vpack.c.bf16 %v3560_v0, %v3552_v47  ;;  %v2428_v61 = vsel %vm2100_vm5, %v8411_v57, 0.0  ;;  %vm2965_vm6 = vcmp.eq.s32.totalorder %v8440_v48, %v8412_v62  ;;  %vm2973_vm7 = vcmp.eq.s32.totalorder %v8441_v18, %v8412_v62  ;;  %v3861_v0 = vpop.f32.mrb[1].mxu1  ;;  %3976 = vst [vmem:[%s7694_s6 + $0x8] sm:$0xff] %v3820_v58 }
 0x315   : > { %v2676_v56 = vadd.f32 %v2420_v53, %v1803_v40  ;;  %v2684_v41 = vadd.f32 %v2428_v61, %v1811_v39  ;;  %v3293_v25 = vsel %vm2965_vm6, %v8413_v13, 0.0  ;;  %v3301_v31 = vsel %vm2973_vm7, %v8413_v13, 0.0  ;;  %3978 = vst [vmem:[%s7694_s6 + $0x18] sm:$0xff] %v3861_v0  ;;  %v3822_v53 = vpop.f32.mrb[2].mxu0 }
 0x316   : > { %3927 = vmatprep.subr.bf16.mxu1 %v3736_v42  ;;  %vm600_vm8 = vcmp.eq.s32.totalorder %v8440_v48, %v8414_v50  ;;  %vm608_vm9 = vcmp.eq.s32.totalorder %v8441_v18, %v8414_v50  ;;  %vm1221_vm10 = vcmp.eq.s32.totalorder %v8440_v48, %v8416_v23  ;;  %vm1229_vm11 = vcmp.eq.s32.totalorder %v8441_v18, %v8416_v23  ;;  %v3863_v42 = vpop.f32.mrb[2].mxu1 }
 0x317   : > { %v3549_v1 = vadd.f32 %v3293_v25, %v2676_v56  ;;  %v3557_v11 = vadd.f32 %v3301_v31, %v2684_v41  ;;  %v932_v10 = vsel %vm600_vm8, %v8415_v38, 0.0  ;;  %v940_v15 = vsel %vm608_vm9, %v8415_v38, 0.0  ;;  %v8442_v56 = vld [vmem:[#allocation63_spill] sm:$0xff]  ;;  %v3823_v41 = vpop.f32.mrb[3].mxu0  ;;  %v3864_v25 = vpop.f32.mrb[3].mxu1 }
 0x318   : > { %v1549_v54 = vsel %vm1221_vm10, %v8417_v63, 0.0  ;;  %v1557_v47 = vsel %vm1229_vm11, %v8417_v63, 0.0  ;;  %vm2094_vm12 = vcmp.eq.s32.totalorder %v8440_v48, %v8418_v24  ;;  %vm2102_vm13 = vcmp.eq.s32.totalorder %v8441_v18, %v8418_v24 }
 0x319   : > { %v3733_v46 = vpack.c.bf16 %v3557_v11, %v3549_v1  ;;  %v1805_v34 = vadd.f32 %v1549_v54, %v932_v10  ;;  %v1813_v40 = vadd.f32 %v1557_v47, %v940_v15  ;;  %v2422_v39 = vsel %vm2094_vm12, %v8419_v14, 0.0  ;;  %v8443_v15 = vld [vmem:[#allocation64_spill] sm:$0xff] }
 0x31a   : > { %v2430_v61 = vsel %vm2102_vm13, %v8419_v14, 0.0  ;;  %vm2967_vm14 = vcmp.eq.s32.totalorder %v8440_v48, %v8420_v30  ;;  %vm2975_vm15 = vcmp.eq.s32.totalorder %v8441_v18, %v8420_v30  ;;  %vm615_vm0 = vcmp.eq.s32.totalorder %v8442_v56, %v4786_v27 }
 0x31b   : > { %3887 = vmatpush1.bf16.msra.mxu0 %v3733_v46  ;;  %v2678_v31 = vadd.f32 %v2422_v39, %v1805_v34  ;;  %v2686_v1 = vadd.f32 %v2430_v61, %v1813_v40  ;;  %v3295_v11 = vsel %vm2967_vm14, %v8421_v8, 0.0  ;;  %v3303_v10 = vsel %vm2975_vm15, %v8421_v8, 0.0 }
 0x31c   : > { %vm623_vm1 = vcmp.eq.s32.totalorder %v8443_v15, %v4786_v27  ;;  %v947_v48 = vsel %vm615_vm0, %v4828_v43, 0.0  ;;  %vm1236_vm2 = vcmp.eq.s32.totalorder %v8442_v56, %v4867_v59  ;;  %vm1244_vm3 = vcmp.eq.s32.totalorder %v8443_v15, %v4867_v59 }
 0x31d   : > { %v3551_v18 = vadd.f32 %v3295_v11, %v2678_v31  ;;  %v3559_v44 = vadd.f32 %v3303_v10, %v2686_v1  ;;  %v955_v21 = vsel %vm623_vm1, %v4828_v43, 0.0  ;;  %v1564_v54 = vsel %vm1236_vm2, %v4893_v33, 0.0 }
 0x31e   : > { %v1572_v47 = vsel %vm1244_vm3, %v4893_v33, 0.0  ;;  %v1820_v58 = vadd.f32 %v1564_v54, %v947_v48  ;;  %vm2109_vm4 = vcmp.eq.s32.totalorder %v8442_v56, %v4930_v60  ;;  %vm2117_vm5 = vcmp.eq.s32.totalorder %v8443_v15, %v4930_v60 }
 0x31f   : > { %v3735_v0 = vpack.c.bf16 %v3559_v44, %v3551_v18  ;;  %v1828_v46 = vadd.f32 %v1572_v47, %v955_v21  ;;  %v2437_v34 = vsel %vm2109_vm4, %v4958_v28, 0.0  ;;  %v2445_v40 = vsel %vm2117_vm5, %v4958_v28, 0.0 }
 0x320   : > { %v2693_v39 = vadd.f32 %v2437_v34, %v1820_v58  ;;  %vm2982_vm6 = vcmp.eq.s32.totalorder %v8442_v56, %v4993_v16  ;;  %vm2990_vm7 = vcmp.eq.s32.totalorder %v8443_v15, %v4993_v16  ;;  %vm617_vm8 = vcmp.eq.s32.totalorder %v8442_v56, %v4794_v29 }
 0x321   : > { %3928 = vmatpush1.bf16.msra.mxu1 %v3735_v0  ;;  %v2701_v53 = vadd.f32 %v2445_v40, %v1828_v46  ;;  %v3310_v42 = vsel %vm2982_vm6, %v5023_v37, 0.0  ;;  %v3318_v61 = vsel %vm2990_vm7, %v5023_v37, 0.0  ;;  %vm625_vm9 = vcmp.eq.s32.totalorder %v8443_v15, %v4794_v29 }
 0x322   : > { %v3566_v41 = vadd.f32 %v3310_v42, %v2693_v39  ;;  %v949_v25 = vsel %vm617_vm8, %v4834_v45, 0.0  ;;  %v957_v31 = vsel %vm625_vm9, %v4834_v45, 0.0  ;;  %vm1238_vm10 = vcmp.eq.s32.totalorder %v8442_v56, %v8400_v22 }
 0x323   : > { %v3574_v1 = vadd.f32 %v3318_v61, %v2701_v53  ;;  %vm1246_vm11 = vcmp.eq.s32.totalorder %v8443_v15, %v8400_v22  ;;  %v1566_v11 = vsel %vm1238_vm10, %v8401_v36, 0.0  ;;  %vm2111_vm12 = vcmp.eq.s32.totalorder %v8442_v56, %v8402_v51 }
 0x324   : > { %v1574_v10 = vsel %vm1246_vm11, %v8401_v36, 0.0  ;;  %v1822_v48 = vadd.f32 %v1566_v11, %v949_v25  ;;  %vm2119_vm13 = vcmp.eq.s32.totalorder %v8443_v15, %v8402_v51  ;;  %v2439_v18 = vsel %vm2111_vm12, %v8403_v55, 0.0 }
 0x325   : > { %v3742_v44 = vpack.c.bf16 %v3574_v1, %v3566_v41  ;;  %v1830_v21 = vadd.f32 %v1574_v10, %v957_v31  ;;  %v2447_v54 = vsel %vm2119_vm13, %v8403_v55, 0.0  ;;  %vm2984_vm14 = vcmp.eq.s32.totalorder %v8442_v56, %v8404_v52 }
 0x326   : > { %v2695_v47 = vadd.f32 %v2439_v18, %v1822_v48  ;;  %vm2992_vm15 = vcmp.eq.s32.totalorder %v8443_v15, %v8404_v52  ;;  %v3312_v58 = vsel %vm2984_vm14, %v8405_v6, 0.0  ;;  %vm614_vm0 = vcmp.eq.s32.totalorder %v8442_v56, %v8406_v12 }
 0x327   : > { %3888 = vmatprep.subr.bf16.mxu0 %v3742_v44  ;;  %v2703_v0 = vadd.f32 %v2447_v54, %v1830_v21  ;;  %v3320_v46 = vsel %vm2992_vm15, %v8405_v6, 0.0  ;;  %vm622_vm1 = vcmp.eq.s32.totalorder %v8443_v15, %v8406_v12  ;;  %v946_v34 = vsel %vm614_vm0, %v8408_v3, 0.0 }
 0x328   : > { %v3568_v40 = vadd.f32 %v3312_v58, %v2695_v47  ;;  %v954_v39 = vsel %vm622_vm1, %v8408_v3, 0.0  ;;  %vm1235_vm2 = vcmp.eq.s32.totalorder %v8442_v56, %v8407_v32  ;;  %vm1243_vm3 = vcmp.eq.s32.totalorder %v8443_v15, %v8407_v32 }
 0x329   : > { %v3576_v53 = vadd.f32 %v3320_v46, %v2703_v0  ;;  %v1563_v42 = vsel %vm1235_vm2, %v8409_v26, 0.0  ;;  %v1571_v61 = vsel %vm1243_vm3, %v8409_v26, 0.0  ;;  %vm2108_vm4 = vcmp.eq.s32.totalorder %v8442_v56, %v8410_v35 }
 0x32a   : > { %v1819_v41 = vadd.f32 %v1563_v42, %v946_v34  ;;  %v1827_v25 = vadd.f32 %v1571_v61, %v954_v39  ;;  %vm2116_vm5 = vcmp.eq.s32.totalorder %v8443_v15, %v8410_v35  ;;  %v2436_v31 = vsel %vm2108_vm4, %v8411_v57, 0.0 }
 0x32b   : > { %v3744_v1 = vpack.c.bf16 %v3576_v53, %v3568_v40  ;;  %v2444_v11 = vsel %vm2116_vm5, %v8411_v57, 0.0  ;;  %vm2981_vm6 = vcmp.eq.s32.totalorder %v8442_v56, %v8412_v62  ;;  %vm2989_vm7 = vcmp.eq.s32.totalorder %v8443_v15, %v8412_v62 }
 0x32c   : > { %v2692_v10 = vadd.f32 %v2436_v31, %v1819_v41  ;;  %v2700_v48 = vadd.f32 %v2444_v11, %v1827_v25  ;;  %v3309_v18 = vsel %vm2981_vm6, %v8413_v13, 0.0  ;;  %v3317_v44 = vsel %vm2989_vm7, %v8413_v13, 0.0 }
 0x32d   : > { %3929 = vmatprep.subr.bf16.mxu1 %v3744_v1  ;;  %vm616_vm8 = vcmp.eq.s32.totalorder %v8442_v56, %v8414_v50  ;;  %vm624_vm9 = vcmp.eq.s32.totalorder %v8443_v15, %v8414_v50  ;;  %vm1237_vm10 = vcmp.eq.s32.totalorder %v8442_v56, %v8416_v23  ;;  %vm1245_vm11 = vcmp.eq.s32.totalorder %v8443_v15, %v8416_v23 }
 0x32e   : > { %v3565_v21 = vadd.f32 %v3309_v18, %v2692_v10  ;;  %v3573_v54 = vadd.f32 %v3317_v44, %v2700_v48  ;;  %v948_v47 = vsel %vm616_vm8, %v8415_v38, 0.0  ;;  %v956_v58 = vsel %vm624_vm9, %v8415_v38, 0.0 }
 0x32f   : > { %v1565_v0 = vsel %vm1237_vm10, %v8417_v63, 0.0  ;;  %v1573_v46 = vsel %vm1245_vm11, %v8417_v63, 0.0  ;;  %vm2110_vm12 = vcmp.eq.s32.totalorder %v8442_v56, %v8418_v24  ;;  %vm2118_vm13 = vcmp.eq.s32.totalorder %v8443_v15, %v8418_v24 }
 0x330   : > { %v3741_v34 = vpack.c.bf16 %v3573_v54, %v3565_v21  ;;  %v1821_v40 = vadd.f32 %v1565_v0, %v948_v47  ;;  %v1829_v39 = vadd.f32 %v1573_v46, %v956_v58  ;;  %v2438_v53 = vsel %vm2110_vm12, %v8419_v14, 0.0 }
 0x331   : > { %v2446_v42 = vsel %vm2118_vm13, %v8419_v14, 0.0  ;;  %vm2983_vm14 = vcmp.eq.s32.totalorder %v8442_v56, %v8420_v30  ;;  %vm2991_vm15 = vcmp.eq.s32.totalorder %v8443_v15, %v8420_v30  ;;  %vm631_vm0 = vcmp.eq.s32.totalorder %v6232_v2, %v4786_v27 }
 0x332   : > { %3889 = vmatpush1.bf16.msra.mxu0 %v3741_v34  ;;  %v2694_v61 = vadd.f32 %v2438_v53, %v1821_v40  ;;  %v2702_v41 = vadd.f32 %v2446_v42, %v1829_v39  ;;  %v3311_v25 = vsel %vm2983_vm14, %v8421_v8, 0.0  ;;  %v3319_v31 = vsel %vm2991_vm15, %v8421_v8, 0.0 }
 0x333   : > { %vm639_vm1 = vcmp.eq.s32.totalorder %v6235_v5, %v4786_v27  ;;  %v963_v1 = vsel %vm631_vm0, %v4828_v43, 0.0  ;;  %vm1252_vm2 = vcmp.eq.s32.totalorder %v6232_v2, %v4867_v59  ;;  %vm1260_vm3 = vcmp.eq.s32.totalorder %v6235_v5, %v4867_v59 }
 0x334   : > { %v3567_v56 = vadd.f32 %v3311_v25, %v2694_v61  ;;  %v3575_v15 = vadd.f32 %v3319_v31, %v2702_v41  ;;  %v971_v11 = vsel %vm639_vm1, %v4828_v43, 0.0  ;;  %v1580_v10 = vsel %vm1252_vm2, %v4893_v33, 0.0 }
 0x335   : > { %v1588_v48 = vsel %vm1260_vm3, %v4893_v33, 0.0  ;;  %v1836_v18 = vadd.f32 %v1580_v10, %v963_v1  ;;  %vm2125_vm4 = vcmp.eq.s32.totalorder %v6232_v2, %v4930_v60  ;;  %vm2133_vm5 = vcmp.eq.s32.totalorder %v6235_v5, %v4930_v60 }
 0x336   : > { %v3743_v44 = vpack.c.bf16 %v3575_v15, %v3567_v56  ;;  %v1844_v21 = vadd.f32 %v1588_v48, %v971_v11  ;;  %v2453_v54 = vsel %vm2125_vm4, %v4958_v28, 0.0  ;;  %v2461_v47 = vsel %vm2133_vm5, %v4958_v28, 0.0 }
 0x337   : > { %v2709_v58 = vadd.f32 %v2453_v54, %v1836_v18  ;;  %vm2998_vm6 = vcmp.eq.s32.totalorder %v6232_v2, %v4993_v16  ;;  %vm3006_vm7 = vcmp.eq.s32.totalorder %v6235_v5, %v4993_v16  ;;  %vm633_vm8 = vcmp.eq.s32.totalorder %v6232_v2, %v4794_v29 }
 0x338   : > { %3930 = vmatpush1.bf16.msra.mxu1 %v3743_v44  ;;  %v2717_v0 = vadd.f32 %v2461_v47, %v1844_v21  ;;  %v3326_v46 = vsel %vm2998_vm6, %v5023_v37, 0.0  ;;  %v3334_v34 = vsel %vm3006_vm7, %v5023_v37, 0.0  ;;  %vm641_vm9 = vcmp.eq.s32.totalorder %v6235_v5, %v4794_v29 }
 0x339   : > { %v3582_v40 = vadd.f32 %v3326_v46, %v2709_v58  ;;  %v965_v39 = vsel %vm633_vm8, %v4834_v45, 0.0  ;;  %v973_v53 = vsel %vm641_vm9, %v4834_v45, 0.0  ;;  %vm1254_vm10 = vcmp.eq.s32.totalorder %v6232_v2, %v8400_v22 }
 0x33a   : > { %v3590_v42 = vadd.f32 %v3334_v34, %v2717_v0  ;;  %vm1262_vm11 = vcmp.eq.s32.totalorder %v6235_v5, %v8400_v22  ;;  %v1582_v61 = vsel %vm1254_vm10, %v8401_v36, 0.0  ;;  %vm2127_vm12 = vcmp.eq.s32.totalorder %v6232_v2, %v8402_v51 }
 0x33b   : > { %v1590_v41 = vsel %vm1262_vm11, %v8401_v36, 0.0  ;;  %v1838_v25 = vadd.f32 %v1582_v61, %v965_v39  ;;  %vm2135_vm13 = vcmp.eq.s32.totalorder %v6235_v5, %v8402_v51  ;;  %v2455_v31 = vsel %vm2127_vm12, %v8403_v55, 0.0 }
 0x33c   : > { %v3750_v1 = vpack.c.bf16 %v3590_v42, %v3582_v40  ;;  %v1846_v56 = vadd.f32 %v1590_v41, %v973_v53  ;;  %v2463_v15 = vsel %vm2135_vm13, %v8403_v55, 0.0  ;;  %vm3000_vm14 = vcmp.eq.s32.totalorder %v6232_v2, %v8404_v52 }
 0x33d   : > { %v2711_v11 = vadd.f32 %v2455_v31, %v1838_v25  ;;  %vm3008_vm15 = vcmp.eq.s32.totalorder %v6235_v5, %v8404_v52  ;;  %v3328_v10 = vsel %vm3000_vm14, %v8405_v6, 0.0  ;;  %vm630_vm0 = vcmp.eq.s32.totalorder %v6232_v2, %v8406_v12 }
 0x33e   : > { %3890 = vmatprep.subr.bf16.mxu0 %v3750_v1  ;;  %v2719_v48 = vadd.f32 %v2463_v15, %v1846_v56  ;;  %v3336_v18 = vsel %vm3008_vm15, %v8405_v6, 0.0  ;;  %vm638_vm1 = vcmp.eq.s32.totalorder %v6235_v5, %v8406_v12  ;;  %v962_v44 = vsel %vm630_vm0, %v8408_v3, 0.0 }
 0x33f   : > { %v3584_v21 = vadd.f32 %v3328_v10, %v2711_v11  ;;  %v970_v54 = vsel %vm638_vm1, %v8408_v3, 0.0  ;;  %vm1251_vm2 = vcmp.eq.s32.totalorder %v6232_v2, %v8407_v32  ;;  %vm1259_vm3 = vcmp.eq.s32.totalorder %v6235_v5, %v8407_v32 }
 0x340   : > { %v3592_v47 = vadd.f32 %v3336_v18, %v2719_v48  ;;  %v1579_v58 = vsel %vm1251_vm2, %v8409_v26, 0.0  ;;  %v1587_v0 = vsel %vm1259_vm3, %v8409_v26, 0.0  ;;  %vm2124_vm4 = vcmp.eq.s32.totalorder %v6232_v2, %v8410_v35 }
 0x341   : > { %v1835_v46 = vadd.f32 %v1579_v58, %v962_v44  ;;  %v1843_v34 = vadd.f32 %v1587_v0, %v970_v54  ;;  %vm2132_vm5 = vcmp.eq.s32.totalorder %v6235_v5, %v8410_v35  ;;  %v2452_v40 = vsel %vm2124_vm4, %v8411_v57, 0.0 }
 0x342   : > { %v3752_v39 = vpack.c.bf16 %v3592_v47, %v3584_v21  ;;  %v2460_v53 = vsel %vm2132_vm5, %v8411_v57, 0.0  ;;  %vm2997_vm6 = vcmp.eq.s32.totalorder %v6232_v2, %v8412_v62  ;;  %vm3005_vm7 = vcmp.eq.s32.totalorder %v6235_v5, %v8412_v62 }
 0x343   : > { %v2708_v42 = vadd.f32 %v2452_v40, %v1835_v46  ;;  %v2716_v61 = vadd.f32 %v2460_v53, %v1843_v34  ;;  %v3325_v41 = vsel %vm2997_vm6, %v8413_v13, 0.0  ;;  %v3333_v25 = vsel %vm3005_vm7, %v8413_v13, 0.0 }
 0x344   : > { %3931 = vmatprep.subr.bf16.mxu1 %v3752_v39  ;;  %vm632_vm8 = vcmp.eq.s32.totalorder %v6232_v2, %v8414_v50  ;;  %vm640_vm9 = vcmp.eq.s32.totalorder %v6235_v5, %v8414_v50  ;;  %vm1253_vm10 = vcmp.eq.s32.totalorder %v6232_v2, %v8416_v23  ;;  %vm1261_vm11 = vcmp.eq.s32.totalorder %v6235_v5, %v8416_v23 }
 0x345   : > { %v3581_v31 = vadd.f32 %v3325_v41, %v2708_v42  ;;  %v3589_v1 = vadd.f32 %v3333_v25, %v2716_v61  ;;  %v964_v56 = vsel %vm632_vm8, %v8415_v38, 0.0  ;;  %v972_v15 = vsel %vm640_vm9, %v8415_v38, 0.0 }
 0x346   : > { %v1581_v11 = vsel %vm1253_vm10, %v8417_v63, 0.0  ;;  %v1589_v10 = vsel %vm1261_vm11, %v8417_v63, 0.0  ;;  %vm2126_vm12 = vcmp.eq.s32.totalorder %v6232_v2, %v8418_v24  ;;  %vm2134_vm13 = vcmp.eq.s32.totalorder %v6235_v5, %v8418_v24 }
 0x347   : > { %v3749_v48 = vpack.c.bf16 %v3589_v1, %v3581_v31  ;;  %v1837_v18 = vadd.f32 %v1581_v11, %v964_v56  ;;  %v1845_v44 = vadd.f32 %v1589_v10, %v972_v15  ;;  %v2454_v21 = vsel %vm2126_vm12, %v8419_v14, 0.0 }
 0x348   : > { %v2462_v54 = vsel %vm2134_vm13, %v8419_v14, 0.0  ;;  %vm2999_vm14 = vcmp.eq.s32.totalorder %v6232_v2, %v8420_v30  ;;  %vm3007_vm15 = vcmp.eq.s32.totalorder %v6235_v5, %v8420_v30  ;;  %vm647_vm0 = vcmp.eq.s32.totalorder %v6238_v19, %v4786_v27 }
 0x349   : > { %3891 = vmatpush1.bf16.msra.mxu0 %v3749_v48  ;;  %v2710_v47 = vadd.f32 %v2454_v21, %v1837_v18  ;;  %v2718_v58 = vadd.f32 %v2462_v54, %v1845_v44  ;;  %v3327_v0 = vsel %vm2999_vm14, %v8421_v8, 0.0  ;;  %v3335_v46 = vsel %vm3007_vm15, %v8421_v8, 0.0 }
 0x34a   : > { %vm655_vm1 = vcmp.eq.s32.totalorder %v6241_v20, %v4786_v27  ;;  %v979_v34 = vsel %vm647_vm0, %v4828_v43, 0.0  ;;  %vm1268_vm2 = vcmp.eq.s32.totalorder %v6238_v19, %v4867_v59  ;;  %vm1276_vm3 = vcmp.eq.s32.totalorder %v6241_v20, %v4867_v59 }
 0x34b   : > { %v3583_v2 = vadd.f32 %v3327_v0, %v2710_v47  ;;  %v3591_v5 = vadd.f32 %v3335_v46, %v2718_v58  ;;  %v987_v40 = vsel %vm655_vm1, %v4828_v43, 0.0  ;;  %v1596_v39 = vsel %vm1268_vm2, %v4893_v33, 0.0 }
 0x34c   : > { %v1604_v53 = vsel %vm1276_vm3, %v4893_v33, 0.0  ;;  %v1852_v42 = vadd.f32 %v1596_v39, %v979_v34  ;;  %vm2141_vm4 = vcmp.eq.s32.totalorder %v6238_v19, %v4930_v60  ;;  %vm2149_vm5 = vcmp.eq.s32.totalorder %v6241_v20, %v4930_v60 }
 0x34d   : > { %v3751_v61 = vpack.c.bf16 %v3591_v5, %v3583_v2  ;;  %v1860_v41 = vadd.f32 %v1604_v53, %v987_v40  ;;  %v2469_v25 = vsel %vm2141_vm4, %v4958_v28, 0.0  ;;  %v2477_v31 = vsel %vm2149_vm5, %v4958_v28, 0.0 }
 0x34e   : > { %v2725_v1 = vadd.f32 %v2469_v25, %v1852_v42  ;;  %vm3014_vm6 = vcmp.eq.s32.totalorder %v6238_v19, %v4993_v16  ;;  %vm3022_vm7 = vcmp.eq.s32.totalorder %v6241_v20, %v4993_v16  ;;  %vm649_vm8 = vcmp.eq.s32.totalorder %v6238_v19, %v4794_v29 }
 0x34f   : > { %3932 = vmatpush1.bf16.msra.mxu1 %v3751_v61  ;;  %v2733_v56 = vadd.f32 %v2477_v31, %v1860_v41  ;;  %v3342_v15 = vsel %vm3014_vm6, %v5023_v37, 0.0  ;;  %v3350_v11 = vsel %vm3022_vm7, %v5023_v37, 0.0  ;;  %vm657_vm9 = vcmp.eq.s32.totalorder %v6241_v20, %v4794_v29 }
 0x350   : > { %v3598_v10 = vadd.f32 %v3342_v15, %v2725_v1  ;;  %v981_v48 = vsel %vm649_vm8, %v4834_v45, 0.0  ;;  %v989_v18 = vsel %vm657_vm9, %v4834_v45, 0.0  ;;  %vm1270_vm10 = vcmp.eq.s32.totalorder %v6238_v19, %v8400_v22 }
 0x351   : > { %v3606_v44 = vadd.f32 %v3350_v11, %v2733_v56  ;;  %vm1278_vm11 = vcmp.eq.s32.totalorder %v6241_v20, %v8400_v22  ;;  %v1598_v21 = vsel %vm1270_vm10, %v8401_v36, 0.0  ;;  %vm2143_vm12 = vcmp.eq.s32.totalorder %v6238_v19, %v8402_v51 }
 0x352   : > { %v1606_v54 = vsel %vm1278_vm11, %v8401_v36, 0.0  ;;  %v1854_v47 = vadd.f32 %v1598_v21, %v981_v48  ;;  %vm2151_vm13 = vcmp.eq.s32.totalorder %v6241_v20, %v8402_v51  ;;  %v2471_v58 = vsel %vm2143_vm12, %v8403_v55, 0.0 }
 0x353   : > { %v3758_v0 = vpack.c.bf16 %v3606_v44, %v3598_v10  ;;  %v1862_v46 = vadd.f32 %v1606_v54, %v989_v18  ;;  %v2479_v34 = vsel %vm2151_vm13, %v8403_v55, 0.0  ;;  %vm3016_vm14 = vcmp.eq.s32.totalorder %v6238_v19, %v8404_v52 }
 0x354   : > { %v2727_v2 = vadd.f32 %v2471_v58, %v1854_v47  ;;  %vm3024_vm15 = vcmp.eq.s32.totalorder %v6241_v20, %v8404_v52  ;;  %v3344_v5 = vsel %vm3016_vm14, %v8405_v6, 0.0  ;;  %vm646_vm0 = vcmp.eq.s32.totalorder %v6238_v19, %v8406_v12 }
 0x355   : > { %3892 = vmatprep.subr.bf16.mxu0 %v3758_v0  ;;  %v2735_v40 = vadd.f32 %v2479_v34, %v1862_v46  ;;  %v3352_v39 = vsel %vm3024_vm15, %v8405_v6, 0.0  ;;  %vm654_vm1 = vcmp.eq.s32.totalorder %v6241_v20, %v8406_v12  ;;  %v978_v53 = vsel %vm646_vm0, %v8408_v3, 0.0 }
 0x356   : > { %v3600_v42 = vadd.f32 %v3344_v5, %v2727_v2  ;;  %v986_v61 = vsel %vm654_vm1, %v8408_v3, 0.0  ;;  %vm1267_vm2 = vcmp.eq.s32.totalorder %v6238_v19, %v8407_v32  ;;  %vm1275_vm3 = vcmp.eq.s32.totalorder %v6241_v20, %v8407_v32 }
 0x357   : > { %v3608_v41 = vadd.f32 %v3352_v39, %v2735_v40  ;;  %v1595_v25 = vsel %vm1267_vm2, %v8409_v26, 0.0  ;;  %v1603_v31 = vsel %vm1275_vm3, %v8409_v26, 0.0  ;;  %vm2140_vm4 = vcmp.eq.s32.totalorder %v6238_v19, %v8410_v35 }
 0x358   : > { %v1851_v1 = vadd.f32 %v1595_v25, %v978_v53  ;;  %v1859_v56 = vadd.f32 %v1603_v31, %v986_v61  ;;  %vm2148_vm5 = vcmp.eq.s32.totalorder %v6241_v20, %v8410_v35  ;;  %v2468_v15 = vsel %vm2140_vm4, %v8411_v57, 0.0 }
 0x359   : > { %v3760_v11 = vpack.c.bf16 %v3608_v41, %v3600_v42  ;;  %v2476_v10 = vsel %vm2148_vm5, %v8411_v57, 0.0  ;;  %vm3013_vm6 = vcmp.eq.s32.totalorder %v6238_v19, %v8412_v62  ;;  %vm3021_vm7 = vcmp.eq.s32.totalorder %v6241_v20, %v8412_v62 }
 0x35a   : > { %v2724_v48 = vadd.f32 %v2468_v15, %v1851_v1  ;;  %v2732_v18 = vadd.f32 %v2476_v10, %v1859_v56  ;;  %v3341_v44 = vsel %vm3013_vm6, %v8413_v13, 0.0  ;;  %v3349_v21 = vsel %vm3021_vm7, %v8413_v13, 0.0 }
 0x35b   : > { %3933 = vmatprep.subr.bf16.mxu1 %v3760_v11  ;;  %vm648_vm8 = vcmp.eq.s32.totalorder %v6238_v19, %v8414_v50  ;;  %vm656_vm9 = vcmp.eq.s32.totalorder %v6241_v20, %v8414_v50  ;;  %vm1269_vm10 = vcmp.eq.s32.totalorder %v6238_v19, %v8416_v23  ;;  %vm1277_vm11 = vcmp.eq.s32.totalorder %v6241_v20, %v8416_v23 }
 0x35c   : > { %v3597_v54 = vadd.f32 %v3341_v44, %v2724_v48  ;;  %v3605_v47 = vadd.f32 %v3349_v21, %v2732_v18  ;;  %v980_v58 = vsel %vm648_vm8, %v8415_v38, 0.0  ;;  %v988_v0 = vsel %vm656_vm9, %v8415_v38, 0.0 }
 0x35d   : > { %v1597_v46 = vsel %vm1269_vm10, %v8417_v63, 0.0  ;;  %v1605_v34 = vsel %vm1277_vm11, %v8417_v63, 0.0  ;;  %vm2142_vm12 = vcmp.eq.s32.totalorder %v6238_v19, %v8418_v24  ;;  %vm2150_vm13 = vcmp.eq.s32.totalorder %v6241_v20, %v8418_v24 }
 0x35e   : > { %v3757_v2 = vpack.c.bf16 %v3605_v47, %v3597_v54  ;;  %v1853_v5 = vadd.f32 %v1597_v46, %v980_v58  ;;  %v1861_v40 = vadd.f32 %v1605_v34, %v988_v0  ;;  %v2470_v39 = vsel %vm2142_vm12, %v8419_v14, 0.0 }
 0x35f   : > { %v2478_v53 = vsel %vm2150_vm13, %v8419_v14, 0.0  ;;  %vm3015_vm14 = vcmp.eq.s32.totalorder %v6238_v19, %v8420_v30  ;;  %vm3023_vm15 = vcmp.eq.s32.totalorder %v6241_v20, %v8420_v30  ;;  %vm663_vm0 = vcmp.eq.s32.totalorder %v6244_v49, %v4786_v27 }
 0x360   : > { %3893 = vmatpush1.bf16.msra.mxu0 %v3757_v2  ;;  %v2726_v42 = vadd.f32 %v2470_v39, %v1853_v5  ;;  %v2734_v61 = vadd.f32 %v2478_v53, %v1861_v40  ;;  %v3343_v41 = vsel %vm3015_vm14, %v8421_v8, 0.0  ;;  %v3351_v25 = vsel %vm3023_vm15, %v8421_v8, 0.0 }
 0x361   : > { %vm671_vm1 = vcmp.eq.s32.totalorder %v6247_v4, %v4786_v27  ;;  %v995_v31 = vsel %vm663_vm0, %v4828_v43, 0.0  ;;  %vm1284_vm2 = vcmp.eq.s32.totalorder %v6244_v49, %v4867_v59  ;;  %vm1292_vm3 = vcmp.eq.s32.totalorder %v6247_v4, %v4867_v59 }
 0x362   : > { %v3599_v19 = vadd.f32 %v3343_v41, %v2726_v42  ;;  %v3607_v20 = vadd.f32 %v3351_v25, %v2734_v61  ;;  %v1003_v1 = vsel %vm671_vm1, %v4828_v43, 0.0  ;;  %v1612_v56 = vsel %vm1284_vm2, %v4893_v33, 0.0 }
 0x363   : > { %v1620_v15 = vsel %vm1292_vm3, %v4893_v33, 0.0  ;;  %v1868_v11 = vadd.f32 %v1612_v56, %v995_v31  ;;  %vm2157_vm4 = vcmp.eq.s32.totalorder %v6244_v49, %v4930_v60  ;;  %vm2165_vm5 = vcmp.eq.s32.totalorder %v6247_v4, %v4930_v60 }
 0x364   : > { %v3759_v10 = vpack.c.bf16 %v3607_v20, %v3599_v19  ;;  %v1876_v48 = vadd.f32 %v1620_v15, %v1003_v1  ;;  %v2485_v18 = vsel %vm2157_vm4, %v4958_v28, 0.0  ;;  %v2493_v44 = vsel %vm2165_vm5, %v4958_v28, 0.0 }
 0x365   : > { %v2741_v21 = vadd.f32 %v2485_v18, %v1868_v11  ;;  %vm3030_vm6 = vcmp.eq.s32.totalorder %v6244_v49, %v4993_v16  ;;  %vm3038_vm7 = vcmp.eq.s32.totalorder %v6247_v4, %v4993_v16  ;;  %vm665_vm8 = vcmp.eq.s32.totalorder %v6244_v49, %v4794_v29 }
 0x366   : > { %3934 = vmatpush1.bf16.msra.mxu1 %v3759_v10  ;;  %v2749_v54 = vadd.f32 %v2493_v44, %v1876_v48  ;;  %v3358_v47 = vsel %vm3030_vm6, %v5023_v37, 0.0  ;;  %v3366_v58 = vsel %vm3038_vm7, %v5023_v37, 0.0  ;;  %vm673_vm9 = vcmp.eq.s32.totalorder %v6247_v4, %v4794_v29 }
 0x367   : > { %v3614_v0 = vadd.f32 %v3358_v47, %v2741_v21  ;;  %v997_v46 = vsel %vm665_vm8, %v4834_v45, 0.0  ;;  %v1005_v34 = vsel %vm673_vm9, %v4834_v45, 0.0  ;;  %vm1286_vm10 = vcmp.eq.s32.totalorder %v6244_v49, %v8400_v22 }
 0x368   : > { %v3622_v2 = vadd.f32 %v3366_v58, %v2749_v54  ;;  %vm1294_vm11 = vcmp.eq.s32.totalorder %v6247_v4, %v8400_v22  ;;  %v1614_v5 = vsel %vm1286_vm10, %v8401_v36, 0.0  ;;  %vm2159_vm12 = vcmp.eq.s32.totalorder %v6244_v49, %v8402_v51 }
 0x369   : > { %v1622_v40 = vsel %vm1294_vm11, %v8401_v36, 0.0  ;;  %v1870_v39 = vadd.f32 %v1614_v5, %v997_v46  ;;  %vm2167_vm13 = vcmp.eq.s32.totalorder %v6247_v4, %v8402_v51  ;;  %v2487_v53 = vsel %vm2159_vm12, %v8403_v55, 0.0 }
 0x36a   : > { %v3766_v42 = vpack.c.bf16 %v3622_v2, %v3614_v0  ;;  %v1878_v61 = vadd.f32 %v1622_v40, %v1005_v34  ;;  %v2495_v41 = vsel %vm2167_vm13, %v8403_v55, 0.0  ;;  %vm3032_vm14 = vcmp.eq.s32.totalorder %v6244_v49, %v8404_v52 }
 0x36b   : > { %v2743_v25 = vadd.f32 %v2487_v53, %v1870_v39  ;;  %vm3040_vm15 = vcmp.eq.s32.totalorder %v6247_v4, %v8404_v52  ;;  %v3360_v31 = vsel %vm3032_vm14, %v8405_v6, 0.0  ;;  %vm662_vm0 = vcmp.eq.s32.totalorder %v6244_v49, %v8406_v12 }
 0x36c   : > { %3894 = vmatprep.subr.bf16.mxu0 %v3766_v42  ;;  %v2751_v19 = vadd.f32 %v2495_v41, %v1878_v61  ;;  %v3368_v20 = vsel %vm3040_vm15, %v8405_v6, 0.0  ;;  %vm670_vm1 = vcmp.eq.s32.totalorder %v6247_v4, %v8406_v12  ;;  %v994_v1 = vsel %vm662_vm0, %v8408_v3, 0.0 }
 0x36d   : > { %v3616_v56 = vadd.f32 %v3360_v31, %v2743_v25  ;;  %v1002_v15 = vsel %vm670_vm1, %v8408_v3, 0.0  ;;  %vm1283_vm2 = vcmp.eq.s32.totalorder %v6244_v49, %v8407_v32  ;;  %vm1291_vm3 = vcmp.eq.s32.totalorder %v6247_v4, %v8407_v32 }
 0x36e   : > { %v3624_v11 = vadd.f32 %v3368_v20, %v2751_v19  ;;  %v1611_v10 = vsel %vm1283_vm2, %v8409_v26, 0.0  ;;  %v1619_v48 = vsel %vm1291_vm3, %v8409_v26, 0.0  ;;  %vm2156_vm4 = vcmp.eq.s32.totalorder %v6244_v49, %v8410_v35 }
 0x36f   : > { %v1867_v18 = vadd.f32 %v1611_v10, %v994_v1  ;;  %v1875_v44 = vadd.f32 %v1619_v48, %v1002_v15  ;;  %vm2164_vm5 = vcmp.eq.s32.totalorder %v6247_v4, %v8410_v35  ;;  %v2484_v21 = vsel %vm2156_vm4, %v8411_v57, 0.0 }
 0x370   : > { %v3768_v54 = vpack.c.bf16 %v3624_v11, %v3616_v56  ;;  %v2492_v47 = vsel %vm2164_vm5, %v8411_v57, 0.0  ;;  %vm3029_vm6 = vcmp.eq.s32.totalorder %v6244_v49, %v8412_v62  ;;  %vm3037_vm7 = vcmp.eq.s32.totalorder %v6247_v4, %v8412_v62 }
 0x371   : > { %v2740_v58 = vadd.f32 %v2484_v21, %v1867_v18  ;;  %v2748_v0 = vadd.f32 %v2492_v47, %v1875_v44  ;;  %v3357_v46 = vsel %vm3029_vm6, %v8413_v13, 0.0  ;;  %v3365_v34 = vsel %vm3037_vm7, %v8413_v13, 0.0 }
 0x372   : > { %3935 = vmatprep.subr.bf16.mxu1 %v3768_v54  ;;  %vm664_vm8 = vcmp.eq.s32.totalorder %v6244_v49, %v8414_v50  ;;  %vm672_vm9 = vcmp.eq.s32.totalorder %v6247_v4, %v8414_v50  ;;  %vm1285_vm10 = vcmp.eq.s32.totalorder %v6244_v49, %v8416_v23  ;;  %vm1293_vm11 = vcmp.eq.s32.totalorder %v6247_v4, %v8416_v23 }
 0x373   : > { %v3613_v2 = vadd.f32 %v3357_v46, %v2740_v58  ;;  %v3621_v5 = vadd.f32 %v3365_v34, %v2748_v0  ;;  %v996_v40 = vsel %vm664_vm8, %v8415_v38, 0.0  ;;  %v1004_v39 = vsel %vm672_vm9, %v8415_v38, 0.0 }
 0x374   : > { %v1613_v53 = vsel %vm1285_vm10, %v8417_v63, 0.0  ;;  %v1621_v42 = vsel %vm1293_vm11, %v8417_v63, 0.0  ;;  %vm2158_vm12 = vcmp.eq.s32.totalorder %v6244_v49, %v8418_v24  ;;  %vm2166_vm13 = vcmp.eq.s32.totalorder %v6247_v4, %v8418_v24 }
 0x375   : > { %v3765_v61 = vpack.c.bf16 %v3621_v5, %v3613_v2  ;;  %v1869_v41 = vadd.f32 %v1613_v53, %v996_v40  ;;  %v1877_v25 = vadd.f32 %v1621_v42, %v1004_v39  ;;  %v2486_v31 = vsel %vm2158_vm12, %v8419_v14, 0.0 }
 0x376   : > { %v2494_v19 = vsel %vm2166_vm13, %v8419_v14, 0.0  ;;  %vm3031_vm14 = vcmp.eq.s32.totalorder %v6244_v49, %v8420_v30  ;;  %vm3039_vm15 = vcmp.eq.s32.totalorder %v6247_v4, %v8420_v30  ;;  %vm679_vm0 = vcmp.eq.s32.totalorder %v6536_v9, %v4786_v27 }
 0x377   : > { %3895 = vmatpush1.bf16.msra.mxu0 %v3765_v61  ;;  %v2742_v20 = vadd.f32 %v2486_v31, %v1869_v41  ;;  %v2750_v1 = vadd.f32 %v2494_v19, %v1877_v25  ;;  %v3359_v56 = vsel %vm3031_vm14, %v8421_v8, 0.0  ;;  %v3367_v15 = vsel %vm3039_vm15, %v8421_v8, 0.0 }
 0x378   : > { %vm687_vm1 = vcmp.eq.s32.totalorder %v6541_v17, %v4786_v27  ;;  %v1011_v11 = vsel %vm679_vm0, %v4828_v43, 0.0  ;;  %vm1300_vm2 = vcmp.eq.s32.totalorder %v6536_v9, %v4867_v59  ;;  %vm1308_vm3 = vcmp.eq.s32.totalorder %v6541_v17, %v4867_v59 }
 0x379   : > { %v3615_v49 = vadd.f32 %v3359_v56, %v2742_v20  ;;  %v3623_v4 = vadd.f32 %v3367_v15, %v2750_v1  ;;  %v1019_v10 = vsel %vm687_vm1, %v4828_v43, 0.0  ;;  %v1628_v48 = vsel %vm1300_vm2, %v4893_v33, 0.0 }
 0x37a   : > { %v1636_v18 = vsel %vm1308_vm3, %v4893_v33, 0.0  ;;  %v1884_v44 = vadd.f32 %v1628_v48, %v1011_v11  ;;  %vm2173_vm4 = vcmp.eq.s32.totalorder %v6536_v9, %v4930_v60  ;;  %vm2181_vm5 = vcmp.eq.s32.totalorder %v6541_v17, %v4930_v60 }
 0x37b   : > { %v3767_v27 = vpack.c.bf16 %v3623_v4, %v3615_v49  ;;  %v1892_v21 = vadd.f32 %v1636_v18, %v1019_v10  ;;  %v2501_v54 = vsel %vm2173_vm4, %v4958_v28, 0.0  ;;  %v2509_v59 = vsel %vm2181_vm5, %v4958_v28, 0.0 }
 0x37c   : > { %v2757_v47 = vadd.f32 %v2501_v54, %v1884_v44  ;;  %vm3046_vm6 = vcmp.eq.s32.totalorder %v6536_v9, %v4993_v16  ;;  %vm3054_vm7 = vcmp.eq.s32.totalorder %v6541_v17, %v4993_v16  ;;  %vm681_vm8 = vcmp.eq.s32.totalorder %v6536_v9, %v4794_v29 }
 0x37d   : > { %3936 = vmatpush1.bf16.msra.mxu1 %v3767_v27  ;;  %v2765_v43 = vadd.f32 %v2509_v59, %v1892_v21  ;;  %v3374_v60 = vsel %vm3046_vm6, %v5023_v37, 0.0  ;;  %v3382_v33 = vsel %vm3054_vm7, %v5023_v37, 0.0  ;;  %vm689_vm9 = vcmp.eq.s32.totalorder %v6541_v17, %v4794_v29 }
 0x37e   : > { %v3630_v28 = vadd.f32 %v3374_v60, %v2757_v47  ;;  %v1013_v58 = vsel %vm681_vm8, %v4834_v45, 0.0  ;;  %v1021_v0 = vsel %vm689_vm9, %v4834_v45, 0.0  ;;  %vm1302_vm10 = vcmp.eq.s32.totalorder %v6536_v9, %v8400_v22 }
 0x37f   : > { %v3638_v16 = vadd.f32 %v3382_v33, %v2765_v43  ;;  %vm1310_vm11 = vcmp.eq.s32.totalorder %v6541_v17, %v8400_v22  ;;  %v1630_v46 = vsel %vm1302_vm10, %v8401_v36, 0.0  ;;  %vm2175_vm12 = vcmp.eq.s32.totalorder %v6536_v9, %v8402_v51 }
 0x380   : > { %v1638_v37 = vsel %vm1310_vm11, %v8401_v36, 0.0  ;;  %v1886_v29 = vadd.f32 %v1630_v46, %v1013_v58  ;;  %vm2183_vm13 = vcmp.eq.s32.totalorder %v6541_v17, %v8402_v51  ;;  %v2503_v45 = vsel %vm2175_vm12, %v8403_v55, 0.0 }
 0x381   : > { %v3774_v34 = vpack.c.bf16 %v3638_v16, %v3630_v28  ;;  %v1894_v2 = vadd.f32 %v1638_v37, %v1021_v0  ;;  %v2511_v5 = vsel %vm2183_vm13, %v8403_v55, 0.0  ;;  %vm3048_vm14 = vcmp.eq.s32.totalorder %v6536_v9, %v8404_v52 }
 0x382   : > { %v2759_v22 = vadd.f32 %v2503_v45, %v1886_v29  ;;  %vm3056_vm15 = vcmp.eq.s32.totalorder %v6541_v17, %v8404_v52  ;;  %v3376_v40 = vsel %vm3048_vm14, %v8405_v6, 0.0  ;;  %vm678_vm0 = vcmp.eq.s32.totalorder %v6536_v9, %v8406_v12 }
 0x383   : > { %3896 = vmatprep.subr.bf16.mxu0 %v3774_v34  ;;  %v2767_v36 = vadd.f32 %v2511_v5, %v1894_v2  ;;  %v3384_v51 = vsel %vm3056_vm15, %v8405_v6, 0.0  ;;  %vm686_vm1 = vcmp.eq.s32.totalorder %v6541_v17, %v8406_v12  ;;  %v1010_v55 = vsel %vm678_vm0, %v8408_v3, 0.0 }
 0x384   : > { %v3632_v39 = vadd.f32 %v3376_v40, %v2759_v22  ;;  %v1018_v53 = vsel %vm686_vm1, %v8408_v3, 0.0  ;;  %vm1299_vm2 = vcmp.eq.s32.totalorder %v6536_v9, %v8407_v32  ;;  %vm1307_vm3 = vcmp.eq.s32.totalorder %v6541_v17, %v8407_v32 }
 0x385   : > { %v3640_v52 = vadd.f32 %v3384_v51, %v2767_v36  ;;  %v1627_v42 = vsel %vm1299_vm2, %v8409_v26, 0.0  ;;  %v1635_v61 = vsel %vm1307_vm3, %v8409_v26, 0.0  ;;  %vm2172_vm4 = vcmp.eq.s32.totalorder %v6536_v9, %v8410_v35 }
 0x386   : > { %v1883_v6 = vadd.f32 %v1627_v42, %v1010_v55  ;;  %v1891_v12 = vadd.f32 %v1635_v61, %v1018_v53  ;;  %vm2180_vm5 = vcmp.eq.s32.totalorder %v6541_v17, %v8410_v35  ;;  %v2500_v3 = vsel %vm2172_vm4, %v8411_v57, 0.0 }
 0x387   : > { %v3776_v41 = vpack.c.bf16 %v3640_v52, %v3632_v39  ;;  %v2508_v25 = vsel %vm2180_vm5, %v8411_v57, 0.0  ;;  %vm3045_vm6 = vcmp.eq.s32.totalorder %v6536_v9, %v8412_v62  ;;  %vm3053_vm7 = vcmp.eq.s32.totalorder %v6541_v17, %v8412_v62 }
 0x388   : > { %v2756_v32 = vadd.f32 %v2500_v3, %v1883_v6  ;;  %v2764_v26 = vadd.f32 %v2508_v25, %v1891_v12  ;;  %v3373_v31 = vsel %vm3045_vm6, %v8413_v13, 0.0  ;;  %v3381_v19 = vsel %vm3053_vm7, %v8413_v13, 0.0 }
 0x389   : > { %3937 = vmatprep.subr.bf16.mxu1 %v3776_v41  ;;  %vm680_vm8 = vcmp.eq.s32.totalorder %v6536_v9, %v8414_v50  ;;  %vm688_vm9 = vcmp.eq.s32.totalorder %v6541_v17, %v8414_v50  ;;  %vm1301_vm10 = vcmp.eq.s32.totalorder %v6536_v9, %v8416_v23  ;;  %vm1309_vm11 = vcmp.eq.s32.totalorder %v6541_v17, %v8416_v23 }
 0x38a   : > { %v3629_v35 = vadd.f32 %v3373_v31, %v2756_v32  ;;  %v3637_v57 = vadd.f32 %v3381_v19, %v2764_v26  ;;  %v1012_v62 = vsel %vm680_vm8, %v8415_v38, 0.0  ;;  %v1020_v20 = vsel %vm688_vm9, %v8415_v38, 0.0 }
 0x38b   : > { %v1629_v13 = vsel %vm1301_vm10, %v8417_v63, 0.0  ;;  %v1637_v1 = vsel %vm1309_vm11, %v8417_v63, 0.0  ;;  %vm2174_vm12 = vcmp.eq.s32.totalorder %v6536_v9, %v8418_v24  ;;  %vm2182_vm13 = vcmp.eq.s32.totalorder %v6541_v17, %v8418_v24 }
 0x38c   : > { %v3773_v50 = vpack.c.bf16 %v3637_v57, %v3629_v35  ;;  %v1885_v56 = vadd.f32 %v1629_v13, %v1012_v62  ;;  %v1893_v15 = vadd.f32 %v1637_v1, %v1020_v20  ;;  %v2502_v23 = vsel %vm2174_vm12, %v8419_v14, 0.0 }
 0x38d   : > { %v2510_v11 = vsel %vm2182_vm13, %v8419_v14, 0.0  ;;  %vm3047_vm14 = vcmp.eq.s32.totalorder %v6536_v9, %v8420_v30  ;;  %vm3055_vm15 = vcmp.eq.s32.totalorder %v6541_v17, %v8420_v30 }
 0x38e   : > { %3897 = vmatpush1.bf16.msra.mxu0 %v3773_v50  ;;  %v2758_v38 = vadd.f32 %v2502_v23, %v1885_v56  ;;  %v2766_v63 = vadd.f32 %v2510_v11, %v1893_v15  ;;  %v3375_v24 = vsel %vm3047_vm14, %v8421_v8, 0.0  ;;  %v3383_v49 = vsel %vm3055_vm15, %v8421_v8, 0.0 }
 0x390   : > { %v3631_v4 = vadd.f32 %v3375_v24, %v2758_v38  ;;  %v3639_v10 = vadd.f32 %v3383_v49, %v2766_v63 }
 0x391   : > { %3899 = vmatmul.mubr.bf16.vlgmr.msra.gmra.mrb[4].mxu0 %v6640_v7 }
 0x392   : > { %v3775_v14 = vpack.c.bf16 %v3639_v10, %v3631_v4 }
 0x394   : > { %3938 = vmatpush1.bf16.msra.mxu1 %v3775_v14 }
 0x397   : > { %3940 = vmatmul.mubr.bf16.vlgmr.msra.gmra.mrb[4].mxu1 %v6640_v7 }
 0x464   : > { %v3900_v9 = vpop.f32.mrb[4].mxu0 }
 0x465   : > { %3979 = vst [vmem:[%s7694_s6 + $0x20] sm:$0xff] %v3900_v9  ;;  %v3902_v17 = vpop.f32.mrb[5].mxu0 }
 0x466   : > { %3980 = vst [vmem:[%s7694_s6 + $0x28] sm:$0xff] %v3902_v17  ;;  %v3904_v30 = vpop.f32.mrb[6].mxu0 }
 0x467   : > { %v3905_v8 = vpop.f32.mrb[7].mxu0 }
 0x46a   : > { %v3941_v48 = vpop.f32.mrb[4].mxu1 }
 0x46b   : > { %3981 = vst [vmem:[%s7694_s6 + $0x30] sm:$0xff] %v3941_v48  ;;  %v3943_v7 = vpop.f32.mrb[5].mxu1 }
 0x46c   : > { %3982 = vst [vmem:[%s7694_s6 + $0x38] sm:$0xff] %v3943_v7  ;;  %v3945_v18 = vpop.f32.mrb[6].mxu1 }
 0x46d   : > { %v3946_v44 = vpop.f32.mrb[7].mxu1 }
 0x46e   : > { %4374 = shalt.err (!%p4371_p13)
}
 0x46f   : > { %s4375_s18 = scalar_lea.hbm %s8197_s14, 1024  ;;  %s4379_s12 = scalar_lea.hbm %s8256_s3, 8192 }
 0x470   : > { %p4376_p10 = scmp.ne.s32.totalorder %s8197_s14, %s4375_s18  ;;  %p4380_p5 = scmp.lt.u32.totalorder %s8197_s14, %s8256_s3 }
 0x471   : > { %p4381_p1 = scmp.lt.u32.totalorder %s4379_s12, %s4375_s18  ;;  %p4383_p2 = scmp.lt.u32.totalorder %s4375_s18, %s8197_s14 }
 0x472   : > { %p4377_p12 = pnand %p4376_p10, %p8444_p6 }
 0x473   : > { %p4382_p0 = por %p4381_p1, %p4380_p5 }
 0x474   : > { %p4378_p3 = pneg %p4377_p12 }
 0x475   : > { %p4384_p4 = por %p4383_p2, %p4382_p0 }
 0x477   : > { %p4385_p7 = pnand %p4384_p4, %p4378_p3 }
 0x479   : > { %4388 = shalt.err (!%p4385_p7)
}
 0x47a   : > { %4187 = dma.vmem_to_hbm [thread:$0]  (%p8444_p6), %s8199_s21, 1024, %s8197_s14, %s3984_s15  }
 0x47b PF: > { %s8445_s10 = sld [smem:[#allocation13_spill]]  ;;  %s8446_s7 = sld [smem:[#allocation19_spill]] }
 0x47c   : > { %p4204_p8 = scmp.ge.s32.totalorder %s4463_s19, 2 }
 0x481   : > { %s4014_s26 = sand.u32 1, %s8445_s10   ;;  %p8447_p9 = scmp.ne.s32.totalorder %s8446_s7, 0 }
 0x482   : > { %s4015_s20 = scalar_lea.sflag [#allocation5], %s4014_s26 }
 0x483   : > { %p4200_p11 = pnand %p4204_p8, %p8447_p9 }
 0x485   : > { %4430 = dma.done.wait (!%p4200_p11), %s4015_s20, 1024  }
 0x486   : > { %4432 = vsyncadd (!%p4200_p11), %s4015_s20, 4294966272  ;;  %s22_s19 = sadd.s32 1, %s4463_s19   ;;  %s8448_s27 = sld [smem:[#allocation14_spill]] }
 0x487   : > { %p19_p13 = scmp.ge.s32.totalorder %s22_s19, 10   ;;  %s8449_s14 = sld [smem:[#allocation20_spill]] }
 0x488   : > { %s8450_s15 = sld [smem:[#allocation15_spill]]  ;;  %s8451_s16 = sld [smem:[#allocation16_spill]] }
 0x489   : > { %s8452_s17 = sld [smem:[#allocation17_spill]]  ;;  %s8453_s18 = sld [smem:[#allocation18_spill]] }
 0x48a   : > { %s8454_s12 = smov %s4439_s13  ;;  %21 = sbr.rel (!%p19_p13) target bundleno = 11 (0xb), region = 109 }
 0x48c   : > { %s8455_s13 = smov %s8448_s27 }
 0x491   :  { %4020 = vsyncpa [#allocation4], 1 }
 0x492   :  { %4022 = vsyncpa [#allocation4 + $0x1], 1 }
 0x493   :  { %4023 = vsyncpa [#allocation7], 1 }
 0x494   :  { %4025 = vsyncpa [#allocation7 + $0x1], 1 }
 0x495   :  { %4026 = vsyncpa [#allocation5], 1 }
 0x496   :  { %4028 = vsyncpa [#allocation5 + $0x1], 1 }

</bundles_post_ra>
